<compile_context>
chip_gen: v7x
topology: tpu7x:2x2x1
jax: 0.10.0
libtpu: 0.0.40
codegen_flags: <defaults>
</compile_context>

<pallas_src>
import jax
import jax.numpy as jnp
from jax.experimental import pallas as pl
from jax.experimental.pallas import tpu as pltpu

BN_EPS = 1e-5


# ---------------------------------------------------------------------------
# In-kernel helpers.
# ---------------------------------------------------------------------------
def _dot(a, b):
    return jnp.dot(a, b, preferred_element_type=jnp.float32)


def _relu_bn(y, gamma, beta):
    """ReLU then training-mode BatchNorm1d (two-pass stats, biased variance)."""
    y = jnp.maximum(y, 0.0)
    inv_m = 1.0 / y.shape[0]
    mean = jnp.sum(y, axis=0, keepdims=True) * inv_m
    d = y - mean
    var = jnp.sum(d * d, axis=0, keepdims=True) * inv_m
    return d * (gamma * jax.lax.rsqrt(var + BN_EPS)) + beta


def _pool2(y, scr):
    """MaxPool1d(kernel=2, stride=2) over rows: stash y in a VMEM scratch and
    read the even / odd rows back with stride-2 loads (pairs never cross an
    example boundary because every per-example length is even)."""
    scr[...] = y
    half = y.shape[0] // 2
    return jnp.maximum(scr[pl.ds(0, half, stride=2), :],
                       scr[pl.ds(1, half, stride=2), :])


# ---------------------------------------------------------------------------
# Fused whole-network kernel (trace-time unrolled over the 6 conv blocks).
# ---------------------------------------------------------------------------
def _make_ticnn_kernel(batch, lo1, channels, dw_layers, classes):
    n_blocks = dw_layers + 1                     # number of conv blocks (6)
    chans = ([channels, channels * 2, channels * 4]
             + [channels * 4] * (dw_layers - 3) + [channels * 4])

    # middle (pad=1) blocks: (per-example length in, C_in, C_out)
    mid = []
    l_in = lo1 // 2
    for i in range(1, n_blocks - 1):
        mid.append((l_in, chans[i - 1], chans[i]))
        l_in //= 2
    l_last = l_in                                # length entering pad=0 block (8)
    pooled_last = (l_last - 2) // 2              # 3: matches x.view(-1, 4C*3)

    def kernel(*refs):
        it = iter(refs)
        patches_ref = next(it)
        wc1_ref, g1_ref, bt1_ref = next(it), next(it), next(it)
        mids = [(next(it), next(it), next(it)) for _ in mid]
        wl_ref, gl_ref, btl_ref = next(it), next(it), next(it)
        fc1w_ref, fc1b_ref, fc2w_ref, fc2b_ref = (next(it), next(it),
                                                  next(it), next(it))
        out_ref = next(it)
        y1_scr = next(it)
        mid_scrs = [next(it) for _ in mid]
        yl_scr = next(it)

        # ---- block 1: Conv1d(1, C, k=64, s=8, p=31) as one K=64 matmul -----
        y = _dot(patches_ref[...], wc1_ref[...])                 # (N*lo1, C) f32
        a = _relu_bn(_pool2(y, y1_scr), g1_ref[...], bt1_ref[...])

        # ---- blocks 2..5: Conv1d(k=3, s=1, p=1) + pool + relu + bn ---------
        for (li, ci, _co), (w_ref, g_ref, bt_ref), y_scr in zip(mid, mids, mid_scrs):
            rows = batch * li
            # position within the example (li is a power of 2); one iota reused
            # for both boundary masks.
            pos = jnp.bitwise_and(
                jax.lax.broadcasted_iota(jnp.int32, (rows, ci), 0), li - 1)
            a_m1 = jnp.where(pos >= 1, pltpu.roll(a, 1, axis=0), 0.0)        # x[l-1]
            a_p1 = jnp.where(pos <= li - 2, pltpu.roll(a, rows - 1, axis=0), 0.0)  # x[l+1]
            a_cat = jnp.concatenate([a_m1, a, a_p1], axis=1)     # K = 3*C_in
            y = _dot(a_cat.astype(jnp.bfloat16), w_ref[...])     # one fat-K matmul
            a = _relu_bn(_pool2(y, y_scr), g_ref[...], bt_ref[...])

        # ---- final block: Conv1d(k=3, s=1, p=0) + pool + relu + bn ---------
        rows = batch * l_last
        ci = chans[-2]
        pos = jnp.bitwise_and(
            jax.lax.broadcasted_iota(jnp.int32, (rows, ci), 0), l_last - 1)
        # explicit masks: no cross-example data ever enters a_p1 / a_p2.
        a_p1 = jnp.where(pos <= l_last - 2, pltpu.roll(a, rows - 1, axis=0), 0.0)
        a_p2 = jnp.where(pos <= l_last - 3, pltpu.roll(a, rows - 2, axis=0), 0.0)
        a_cat = jnp.concatenate([a, a_p1, a_p2], axis=1)
        yl_scr[...] = _dot(a_cat.astype(jnp.bfloat16), wl_ref[...])  # (N*8, 4C)

        # pool + relu: pooled_p[n] = relu(max(y[n, 2p], y[n, 2p+1])), p = 0..2.
        # The "valid"-conv tail rows (l = 6, 7) are never read.
        pooled = []
        for p in range(pooled_last):
            e = yl_scr[pl.ds(2 * p, batch, stride=l_last), :]
            o = yl_scr[pl.ds(2 * p + 1, batch, stride=l_last), :]
            pooled.append(jnp.maximum(jnp.maximum(e, o), 0.0))   # (N, 4C)

        # training-mode BN over all N*pooled_last rows (two-pass, f32).
        inv_m = 1.0 / (pooled_last * batch)
        mean = sum(jnp.sum(q, axis=0, keepdims=True) for q in pooled) * inv_m
        var = sum(jnp.sum((q - mean) * (q - mean), axis=0, keepdims=True)
                  for q in pooled) * inv_m
        scale = gl_ref[...] * jax.lax.rsqrt(var + BN_EPS)

        # ---- head: torch channel-major flatten folded into fc1 (sum over l) -
        h = fc1b_ref[...]
        for p in range(pooled_last):
            a_p = (pooled[p] - mean) * scale + btl_ref[...]       # (N, 4C) f32
            h = h + _dot(a_p.astype(jnp.bfloat16), fc1w_ref[p])
        h = jnp.maximum(h, 0.0)
        logits = _dot(h.astype(jnp.bfloat16), fc2w_ref[...]) + fc2b_ref[...]
        z = logits - jnp.max(logits, axis=1, keepdims=True)
        out_ref[...] = z - jnp.log(jnp.sum(jnp.exp(z), axis=1, keepdims=True))

    return kernel


# ---------------------------------------------------------------------------
# Forward pass wrapper (one-time host-side conv1 im2col + single pallas_call).
# ---------------------------------------------------------------------------
def ticnn_forward(x, params):
    """x: (N, 1, L) float32.  Mirrors TICNN.forward (training-mode BatchNorm)."""
    N, cin, L = x.shape
    assert cin == 1
    channels = params["conv1_w"].shape[1]
    classes = params["fc2_w"].shape[1]
    dw_layers = len(params["conv_w"])                    # == DW_layers

    K1, S1, P1 = 64, 8, 31
    lo1 = (L + 2 * P1 - K1) // S1 + 1                    # conv1 output length (256)
    assert lo1 % 2 == 0 and (lo1 // 2) >> (dw_layers - 1) == 8, "need L=2048 geometry"

    # One-time im2col for conv1: pad + reshape + static slices only (no gather),
    # shipped bf16 to halve the only real HBM read.  Column ordering is tap
    # k = S1*a + b, matching the (K1, C) weight layout.
    # TODO(synk): for large batches assemble the patches in-kernel from the
    # padded raw signal to avoid the 8x HBM inflation.
    xp = jnp.pad(x[:, 0, :], ((0, 0), (P1, P1)))
    needed = max(S1 * (lo1 - 1) + K1, xp.shape[1])
    pad_to = -(-needed // S1) * S1
    xp = jnp.pad(xp, ((0, 0), (0, pad_to - xp.shape[1])))
    x8 = xp.reshape(N, pad_to // S1, S1)                 # x8[n, m, b] = xp[n, S1*m + b]
    patches = jnp.concatenate([x8[:, a:a + lo1, :] for a in range(K1 // S1)], axis=2)
    patches = patches.reshape(N * lo1, K1).astype(jnp.bfloat16)   # (N*lo1, 64)

    bf16 = jnp.bfloat16
    inputs = [patches, params["conv1_w"].astype(bf16),
              params["bn_gamma"][0], params["bn_beta"][0]]
    for i in range(1, dw_layers + 1):
        w = params["conv_w"][i - 1]                      # (3, Cin, Cout), tap-major
        inputs += [w.reshape(3 * w.shape[1], w.shape[2]).astype(bf16),
                   params["bn_gamma"][i], params["bn_beta"][i]]
    inputs += [params["fc1_w"].astype(bf16), params["fc1_b"],
               params["fc2_w"].astype(bf16), params["fc2_b"]]

    # One f32 VMEM scratch per conv block (pre-pool conv output), read back with
    # stride-2 row loads for MaxPool1d(2).  Total ~0.5 MiB at N=2.
    chans_out = ([channels, channels * 2, channels * 4]
                 + [channels * 4] * (dw_layers - 3) + [channels * 4])
    scratch, l = [], lo1
    for c in chans_out:
        scratch.append(pltpu.VMEM((N * l, c), jnp.float32))
        l //= 2

    kernel = _make_ticnn_kernel(N, lo1, channels, dw_layers, classes)

    # NOTE: no grid — the whole working set (~1 MiB at N=2) stays in VMEM; only
    # HBM traffic is the bf16 patches in and the (N, classes) logits out.
    # TODO(synk): for real batch sizes add a row-tiled "parallel" grid (2 TCs on
    # v7x) with a cross-tile two-pass BatchNorm reduction.
    return pl.pallas_call(
        kernel,
        out_shape=jax.ShapeDtypeStruct((N, classes), jnp.float32),
        scratch_shapes=scratch,
        compiler_params=pltpu.CompilerParams(vmem_limit_bytes=8 * 1024 * 1024),
    )(*inputs)


# ---------------------------------------------------------------------------
# Parameter init (PyTorch-layout tensors, reordered to kernel layouts, f32).
# ---------------------------------------------------------------------------
def init_params(key, channels=16, DW_layers=5, classes=2):
    n_layers = DW_layers + 1
    keys = jax.random.split(key, n_layers + 2)
    chans_out = ([channels, channels * 2, channels * 4]
                 + [channels * 4] * (DW_layers - 3) + [channels * 4])
    chans_in = [1] + chans_out[:-1]

    def kaiming(k, cout, cin, ksize):
        std = (2.0 / (cin * ksize)) ** 0.5
        return jax.random.normal(k, (cout, cin, ksize), jnp.float32) * std

    # conv1: torch (C, 1, 64)  ->  (64, C), row index = tap k
    w1_t = kaiming(keys[0], chans_out[0], 1, 64)
    conv1_w = jnp.transpose(w1_t.reshape(chans_out[0], 64))

    # convs 2..6: torch (Cout, Cin, 3)  ->  (3, Cin, Cout) per-tap stack
    conv_w = []
    for i in range(1, n_layers):
        wt = kaiming(keys[i], chans_out[i], chans_in[i], 3)
        conv_w.append(jnp.transpose(wt, (2, 1, 0)))

    bn_gamma = [jnp.ones((1, c), jnp.float32) for c in chans_out]
    bn_beta = [jnp.zeros((1, c), jnp.float32) for c in chans_out]

    c4 = channels * 4
    feat = c4 * 3
    fc1_t = jax.random.normal(keys[n_layers], (100, feat), jnp.float32) * (2.0 / feat) ** 0.5
    # torch flatten of (N, 4C, 3) is channel-major: feature f = c*3 + l -> (3, 4C, 100)
    fc1_w = jnp.transpose(fc1_t.reshape(100, c4, 3), (2, 1, 0))
    fc1_b = jnp.zeros((1, 100), jnp.float32)
    fc2_t = jax.random.normal(keys[n_layers + 1], (classes, 100), jnp.float32) * (2.0 / 100) ** 0.5
    fc2_w = jnp.transpose(fc2_t)
    fc2_b = jnp.zeros((1, classes), jnp.float32)

    return {"conv1_w": conv1_w, "conv_w": conv_w,
            "bn_gamma": bn_gamma, "bn_beta": bn_beta,
            "fc1_w": fc1_w, "fc1_b": fc1_b, "fc2_w": fc2_w, "fc2_b": fc2_b}


if __name__ == "__main__":
    key = jax.random.PRNGKey(0)
    pkey, xkey = jax.random.split(key)

    # Module defaults: channels=16 (x.view(-1, 64*3) hard-codes 4*channels == 64),
    # DW_layers=5, classes=2.  L=2048 is the length that makes the final conv
    # stack end at length 3, as the hard-coded view requires.
    channels, DW_layers, classes = 16, 5, 2
    params = init_params(pkey, channels, DW_layers, classes)

    N, L = 2, 2048
    x = jax.random.normal(xkey, (N, 1, L), jnp.float32)

    fwd = jax.jit(ticnn_forward)
    out = jax.block_until_ready(fwd(x, params))

    assert out.shape == (N, classes), out.shape
    assert bool(jnp.all(jnp.isfinite(out)))
    # rows of log_softmax should exp-sum to 1
    assert bool(jnp.allclose(jnp.sum(jnp.exp(out), axis=1), 1.0, atol=1e-5))
    print("KERNEL_OK")
</pallas_src>

<mosaic_0001>
module attributes {stable_mosaic.version = 11 : i64} {
  func.func @kernel(%arg0: memref<512x64xbf16, #tpu.memory_space<vmem>>, %arg1: memref<64x16xbf16, #tpu.memory_space<vmem>>, %arg2: memref<1x16xf32, #tpu.memory_space<vmem>>, %arg3: memref<1x16xf32, #tpu.memory_space<vmem>>, %arg4: memref<48x32xbf16, #tpu.memory_space<vmem>>, %arg5: memref<1x32xf32, #tpu.memory_space<vmem>>, %arg6: memref<1x32xf32, #tpu.memory_space<vmem>>, %arg7: memref<96x64xbf16, #tpu.memory_space<vmem>>, %arg8: memref<1x64xf32, #tpu.memory_space<vmem>>, %arg9: memref<1x64xf32, #tpu.memory_space<vmem>>, %arg10: memref<192x64xbf16, #tpu.memory_space<vmem>>, %arg11: memref<1x64xf32, #tpu.memory_space<vmem>>, %arg12: memref<1x64xf32, #tpu.memory_space<vmem>>, %arg13: memref<192x64xbf16, #tpu.memory_space<vmem>>, %arg14: memref<1x64xf32, #tpu.memory_space<vmem>>, %arg15: memref<1x64xf32, #tpu.memory_space<vmem>>, %arg16: memref<192x64xbf16, #tpu.memory_space<vmem>>, %arg17: memref<1x64xf32, #tpu.memory_space<vmem>>, %arg18: memref<1x64xf32, #tpu.memory_space<vmem>>, %arg19: memref<3x64x100xbf16, #tpu.memory_space<vmem>>, %arg20: memref<1x100xf32, #tpu.memory_space<vmem>>, %arg21: memref<100x2xbf16, #tpu.memory_space<vmem>>, %arg22: memref<1x2xf32, #tpu.memory_space<vmem>>, %arg23: memref<2x2xf32, #tpu.memory_space<vmem>>, %arg24: memref<512x16xf32, #tpu.memory_space<vmem>>, %arg25: memref<256x32xf32, #tpu.memory_space<vmem>>, %arg26: memref<128x64xf32, #tpu.memory_space<vmem>>, %arg27: memref<64x64xf32, #tpu.memory_space<vmem>>, %arg28: memref<32x64xf32, #tpu.memory_space<vmem>>, %arg29: memref<16x64xf32, #tpu.memory_space<vmem>>) attributes {dimension_semantics = [], scalar_prefetch = 0 : i64, scratch_operands = 6 : i64, tpu.core_type = #tpu.core_type<tc>} {
    %c0 = arith.constant 0 : index
    %c0_0 = arith.constant 0 : index
    %0 = vector.load %arg0[%c0, %c0_0] : memref<512x64xbf16, #tpu.memory_space<vmem>>, vector<512x64xbf16>
    %c0_1 = arith.constant 0 : index
    %c0_2 = arith.constant 0 : index
    %1 = vector.load %arg1[%c0_1, %c0_2] : memref<64x16xbf16, #tpu.memory_space<vmem>>, vector<64x16xbf16>
    %cst = arith.constant dense<0.000000e+00> : vector<512x16xf32>
    %2 = tpu.matmul %0, %1, %cst {dimension_numbers = #tpu.dot_dimension_numbers<[1], [0], [0], [1], [0, 0, 1, 1], [], []>} : vector<512x64xbf16>, vector<64x16xbf16>, vector<512x16xf32> -> vector<512x16xf32>
    %c0_3 = arith.constant 0 : index
    %c0_4 = arith.constant 0 : index
    %3 = vector.load %arg24[%c0_3, %c0_4] : memref<512x16xf32, #tpu.memory_space<vmem>>, vector<512x16xf32>
    tpu.vector_store %arg24[%c0_3, %c0_4], %2 {strides = array<i32>} : memref<512x16xf32, #tpu.memory_space<vmem>>, vector<512x16xf32>,
    %c0_5 = arith.constant 0 : index
    %c0_6 = arith.constant 0 : index
    %4 = tpu.strided_load %arg24[%c0_5, %c0_6] {strides = array<i32: 2, 1>} : memref<512x16xf32, #tpu.memory_space<vmem>>, vector<256x16xf32>
    %c1 = arith.constant 1 : index
    %c0_7 = arith.constant 0 : index
    %5 = tpu.strided_load %arg24[%c1, %c0_7] {strides = array<i32: 2, 1>} : memref<512x16xf32, #tpu.memory_space<vmem>>, vector<256x16xf32>
    %6 = arith.maximumf %4, %5 : vector<256x16xf32>
    %c0_8 = arith.constant 0 : index
    %c0_9 = arith.constant 0 : index
    %7 = vector.load %arg2[%c0_8, %c0_9] : memref<1x16xf32, #tpu.memory_space<vmem>>, vector<1x16xf32>
    %c0_10 = arith.constant 0 : index
    %c0_11 = arith.constant 0 : index
    %8 = vector.load %arg3[%c0_10, %c0_11] : memref<1x16xf32, #tpu.memory_space<vmem>>, vector<1x16xf32>
    %cst_12 = arith.constant 0.000000e+00 : f32
    %9 = vector.broadcast %cst_12 : f32 to vector<256x16xf32>
    %10 = arith.maximumf %6, %9 : vector<256x16xf32>
    %cst_13 = arith.constant dense<0.000000e+00> : vector<16xf32>
    %11 = vector.multi_reduction <add>, %10, %cst_13 [0] : vector<256x16xf32> to vector<16xf32>
    %12 = vector.shape_cast %11 : vector<16xf32> to vector<1x16xf32>
    %cst_14 = arith.constant 3.906250e-03 : f32
    %13 = vector.broadcast %cst_14 : f32 to vector<1x16xf32>
    %14 = arith.mulf %12, %13 : vector<1x16xf32>
    %15 = vector.broadcast %14 : vector<1x16xf32> to vector<256x16xf32>
    %16 = arith.subf %10, %15 : vector<256x16xf32>
    %17 = arith.mulf %16, %16 : vector<256x16xf32>
    %cst_15 = arith.constant dense<0.000000e+00> : vector<16xf32>
    %18 = vector.multi_reduction <add>, %17, %cst_15 [0] : vector<256x16xf32> to vector<16xf32>
    %19 = vector.shape_cast %18 : vector<16xf32> to vector<1x16xf32>
    %cst_16 = arith.constant 3.906250e-03 : f32
    %20 = vector.broadcast %cst_16 : f32 to vector<1x16xf32>
    %21 = arith.mulf %19, %20 : vector<1x16xf32>
    %cst_17 = arith.constant 9.99999974E-6 : f32
    %22 = vector.broadcast %cst_17 : f32 to vector<1x16xf32>
    %23 = arith.addf %21, %22 : vector<1x16xf32>
    %24 = math.rsqrt %23 : vector<1x16xf32>
    %25 = arith.mulf %7, %24 : vector<1x16xf32>
    %26 = vector.broadcast %25 : vector<1x16xf32> to vector<256x16xf32>
    %27 = arith.mulf %16, %26 : vector<256x16xf32>
    %28 = vector.broadcast %8 : vector<1x16xf32> to vector<256x16xf32>
    %29 = arith.addf %27, %28 : vector<256x16xf32>
    %30 = tpu.iota {dimensions = array<i32: 0>} : vector<256x16xi32>
    %c127_i32 = arith.constant 127 : i32
    %31 = vector.broadcast %c127_i32 : i32 to vector<256x16xi32>
    %32 = arith.andi %30, %31 : vector<256x16xi32>
    %c1_i32 = arith.constant 1 : i32
    %33 = vector.broadcast %c1_i32 : i32 to vector<256x16xi32>
    %34 = arith.cmpi sge, %32, %33 : vector<256x16xi32>
    %c1_i32_18 = arith.constant 1 : i32
    %35 = tpu.dynamic_rotate %29 by %c1_i32_18 dim 0 : vector<256x16xf32>, i32 -> vector<256x16xf32>
    %cst_19 = arith.constant 0.000000e+00 : f32
    %36 = vector.broadcast %cst_19 : f32 to vector<256x16xf32>
    %37 = arith.select %34, %35, %36 : vector<256x16xi1>, vector<256x16xf32>
    %c126_i32 = arith.constant 126 : i32
    %38 = vector.broadcast %c126_i32 : i32 to vector<256x16xi32>
    %39 = arith.cmpi sle, %32, %38 : vector<256x16xi32>
    %c255_i32 = arith.constant 255 : i32
    %40 = tpu.dynamic_rotate %29 by %c255_i32 dim 0 : vector<256x16xf32>, i32 -> vector<256x16xf32>
    %cst_20 = arith.constant 0.000000e+00 : f32
    %41 = vector.broadcast %cst_20 : f32 to vector<256x16xf32>
    %42 = arith.select %39, %40, %41 : vector<256x16xi1>, vector<256x16xf32>
    %43 = tpu.concatenate %37, %29, %42 in 1 : vector<256x16xf32>, vector<256x16xf32>, vector<256x16xf32> -> vector<256x48xf32>
    %44 = arith.truncf %43 : vector<256x48xf32> to vector<256x48xbf16>
    %c0_21 = arith.constant 0 : index
    %c0_22 = arith.constant 0 : index
    %45 = vector.load %arg4[%c0_21, %c0_22] : memref<48x32xbf16, #tpu.memory_space<vmem>>, vector<48x32xbf16>
    %cst_23 = arith.constant dense<0.000000e+00> : vector<256x32xf32>
    %46 = tpu.matmul %44, %45, %cst_23 {dimension_numbers = #tpu.dot_dimension_numbers<[1], [0], [0], [1], [0, 0, 1, 1], [], []>} : vector<256x48xbf16>, vector<48x32xbf16>, vector<256x32xf32> -> vector<256x32xf32>
    %c0_24 = arith.constant 0 : index
    %c0_25 = arith.constant 0 : index
    %47 = vector.load %arg25[%c0_24, %c0_25] : memref<256x32xf32, #tpu.memory_space<vmem>>, vector<256x32xf32>
    tpu.vector_store %arg25[%c0_24, %c0_25], %46 {strides = array<i32>} : memref<256x32xf32, #tpu.memory_space<vmem>>, vector<256x32xf32>,
    %c0_26 = arith.constant 0 : index
    %c0_27 = arith.constant 0 : index
    %48 = tpu.strided_load %arg25[%c0_26, %c0_27] {strides = array<i32: 2, 1>} : memref<256x32xf32, #tpu.memory_space<vmem>>, vector<128x32xf32>
    %c1_28 = arith.constant 1 : index
    %c0_29 = arith.constant 0 : index
    %49 = tpu.strided_load %arg25[%c1_28, %c0_29] {strides = array<i32: 2, 1>} : memref<256x32xf32, #tpu.memory_space<vmem>>, vector<128x32xf32>
    %50 = arith.maximumf %48, %49 : vector<128x32xf32>
    %c0_30 = arith.constant 0 : index
    %c0_31 = arith.constant 0 : index
    %51 = vector.load %arg5[%c0_30, %c0_31] : memref<1x32xf32, #tpu.memory_space<vmem>>, vector<1x32xf32>
    %c0_32 = arith.constant 0 : index
    %c0_33 = arith.constant 0 : index
    %52 = vector.load %arg6[%c0_32, %c0_33] : memref<1x32xf32, #tpu.memory_space<vmem>>, vector<1x32xf32>
    %cst_34 = arith.constant 0.000000e+00 : f32
    %53 = vector.broadcast %cst_34 : f32 to vector<128x32xf32>
    %54 = arith.maximumf %50, %53 : vector<128x32xf32>
    %cst_35 = arith.constant dense<0.000000e+00> : vector<32xf32>
    %55 = vector.multi_reduction <add>, %54, %cst_35 [0] : vector<128x32xf32> to vector<32xf32>
    %56 = vector.shape_cast %55 : vector<32xf32> to vector<1x32xf32>
    %cst_36 = arith.constant 7.812500e-03 : f32
    %57 = vector.broadcast %cst_36 : f32 to vector<1x32xf32>
    %58 = arith.mulf %56, %57 : vector<1x32xf32>
    %59 = vector.broadcast %58 : vector<1x32xf32> to vector<128x32xf32>
    %60 = arith.subf %54, %59 : vector<128x32xf32>
    %61 = arith.mulf %60, %60 : vector<128x32xf32>
    %cst_37 = arith.constant dense<0.000000e+00> : vector<32xf32>
    %62 = vector.multi_reduction <add>, %61, %cst_37 [0] : vector<128x32xf32> to vector<32xf32>
    %63 = vector.shape_cast %62 : vector<32xf32> to vector<1x32xf32>
    %cst_38 = arith.constant 7.812500e-03 : f32
    %64 = vector.broadcast %cst_38 : f32 to vector<1x32xf32>
    %65 = arith.mulf %63, %64 : vector<1x32xf32>
    %cst_39 = arith.constant 9.99999974E-6 : f32
    %66 = vector.broadcast %cst_39 : f32 to vector<1x32xf32>
    %67 = arith.addf %65, %66 : vector<1x32xf32>
    %68 = math.rsqrt %67 : vector<1x32xf32>
    %69 = arith.mulf %51, %68 : vector<1x32xf32>
    %70 = vector.broadcast %69 : vector<1x32xf32> to vector<128x32xf32>
    %71 = arith.mulf %60, %70 : vector<128x32xf32>
    %72 = vector.broadcast %52 : vector<1x32xf32> to vector<128x32xf32>
    %73 = arith.addf %71, %72 : vector<128x32xf32>
    %74 = tpu.iota {dimensions = array<i32: 0>} : vector<128x32xi32>
    %c63_i32 = arith.constant 63 : i32
    %75 = vector.broadcast %c63_i32 : i32 to vector<128x32xi32>
    %76 = arith.andi %74, %75 : vector<128x32xi32>
    %c1_i32_40 = arith.constant 1 : i32
    %77 = vector.broadcast %c1_i32_40 : i32 to vector<128x32xi32>
    %78 = arith.cmpi sge, %76, %77 : vector<128x32xi32>
    %c1_i32_41 = arith.constant 1 : i32
    %79 = tpu.dynamic_rotate %73 by %c1_i32_41 dim 0 : vector<128x32xf32>, i32 -> vector<128x32xf32>
    %cst_42 = arith.constant 0.000000e+00 : f32
    %80 = vector.broadcast %cst_42 : f32 to vector<128x32xf32>
    %81 = arith.select %78, %79, %80 : vector<128x32xi1>, vector<128x32xf32>
    %c62_i32 = arith.constant 62 : i32
    %82 = vector.broadcast %c62_i32 : i32 to vector<128x32xi32>
    %83 = arith.cmpi sle, %76, %82 : vector<128x32xi32>
    %c127_i32_43 = arith.constant 127 : i32
    %84 = tpu.dynamic_rotate %73 by %c127_i32_43 dim 0 : vector<128x32xf32>, i32 -> vector<128x32xf32>
    %cst_44 = arith.constant 0.000000e+00 : f32
    %85 = vector.broadcast %cst_44 : f32 to vector<128x32xf32>
    %86 = arith.select %83, %84, %85 : vector<128x32xi1>, vector<128x32xf32>
    %87 = tpu.concatenate %81, %73, %86 in 1 : vector<128x32xf32>, vector<128x32xf32>, vector<128x32xf32> -> vector<128x96xf32>
    %88 = arith.truncf %87 : vector<128x96xf32> to vector<128x96xbf16>
    %c0_45 = arith.constant 0 : index
    %c0_46 = arith.constant 0 : index
    %89 = vector.load %arg7[%c0_45, %c0_46] : memref<96x64xbf16, #tpu.memory_space<vmem>>, vector<96x64xbf16>
    %cst_47 = arith.constant dense<0.000000e+00> : vector<128x64xf32>
    %90 = tpu.matmul %88, %89, %cst_47 {dimension_numbers = #tpu.dot_dimension_numbers<[1], [0], [0], [1], [0, 0, 1, 1], [], []>} : vector<128x96xbf16>, vector<96x64xbf16>, vector<128x64xf32> -> vector<128x64xf32>
    %c0_48 = arith.constant 0 : index
    %c0_49 = arith.constant 0 : index
    %91 = vector.load %arg26[%c0_48, %c0_49] : memref<128x64xf32, #tpu.memory_space<vmem>>, vector<128x64xf32>
    tpu.vector_store %arg26[%c0_48, %c0_49], %90 {strides = array<i32>} : memref<128x64xf32, #tpu.memory_space<vmem>>, vector<128x64xf32>,
    %c0_50 = arith.constant 0 : index
    %c0_51 = arith.constant 0 : index
    %92 = tpu.strided_load %arg26[%c0_50, %c0_51] {strides = array<i32: 2, 1>} : memref<128x64xf32, #tpu.memory_space<vmem>>, vector<64x64xf32>
    %c1_52 = arith.constant 1 : index
    %c0_53 = arith.constant 0 : index
    %93 = tpu.strided_load %arg26[%c1_52, %c0_53] {strides = array<i32: 2, 1>} : memref<128x64xf32, #tpu.memory_space<vmem>>, vector<64x64xf32>
    %94 = arith.maximumf %92, %93 : vector<64x64xf32>
    %c0_54 = arith.constant 0 : index
    %c0_55 = arith.constant 0 : index
    %95 = vector.load %arg8[%c0_54, %c0_55] : memref<1x64xf32, #tpu.memory_space<vmem>>, vector<1x64xf32>
    %c0_56 = arith.constant 0 : index
    %c0_57 = arith.constant 0 : index
    %96 = vector.load %arg9[%c0_56, %c0_57] : memref<1x64xf32, #tpu.memory_space<vmem>>, vector<1x64xf32>
    %cst_58 = arith.constant 0.000000e+00 : f32
    %97 = vector.broadcast %cst_58 : f32 to vector<64x64xf32>
    %98 = arith.maximumf %94, %97 : vector<64x64xf32>
    %cst_59 = arith.constant dense<0.000000e+00> : vector<64xf32>
    %99 = vector.multi_reduction <add>, %98, %cst_59 [0] : vector<64x64xf32> to vector<64xf32>
    %100 = vector.shape_cast %99 : vector<64xf32> to vector<1x64xf32>
    %cst_60 = arith.constant 1.562500e-02 : f32
    %101 = vector.broadcast %cst_60 : f32 to vector<1x64xf32>
    %102 = arith.mulf %100, %101 : vector<1x64xf32>
    %103 = vector.broadcast %102 : vector<1x64xf32> to vector<64x64xf32>
    %104 = arith.subf %98, %103 : vector<64x64xf32>
    %105 = arith.mulf %104, %104 : vector<64x64xf32>
    %cst_61 = arith.constant dense<0.000000e+00> : vector<64xf32>
    %106 = vector.multi_reduction <add>, %105, %cst_61 [0] : vector<64x64xf32> to vector<64xf32>
    %107 = vector.shape_cast %106 : vector<64xf32> to vector<1x64xf32>
    %cst_62 = arith.constant 1.562500e-02 : f32
    %108 = vector.broadcast %cst_62 : f32 to vector<1x64xf32>
    %109 = arith.mulf %107, %108 : vector<1x64xf32>
    %cst_63 = arith.constant 9.99999974E-6 : f32
    %110 = vector.broadcast %cst_63 : f32 to vector<1x64xf32>
    %111 = arith.addf %109, %110 : vector<1x64xf32>
    %112 = math.rsqrt %111 : vector<1x64xf32>
    %113 = arith.mulf %95, %112 : vector<1x64xf32>
    %114 = vector.broadcast %113 : vector<1x64xf32> to vector<64x64xf32>
    %115 = arith.mulf %104, %114 : vector<64x64xf32>
    %116 = vector.broadcast %96 : vector<1x64xf32> to vector<64x64xf32>
    %117 = arith.addf %115, %116 : vector<64x64xf32>
    %118 = tpu.iota {dimensions = array<i32: 0>} : vector<64x64xi32>
    %c31_i32 = arith.constant 31 : i32
    %119 = vector.broadcast %c31_i32 : i32 to vector<64x64xi32>
    %120 = arith.andi %118, %119 : vector<64x64xi32>
    %c1_i32_64 = arith.constant 1 : i32
    %121 = vector.broadcast %c1_i32_64 : i32 to vector<64x64xi32>
    %122 = arith.cmpi sge, %120, %121 : vector<64x64xi32>
    %c1_i32_65 = arith.constant 1 : i32
    %123 = tpu.dynamic_rotate %117 by %c1_i32_65 dim 0 : vector<64x64xf32>, i32 -> vector<64x64xf32>
    %cst_66 = arith.constant 0.000000e+00 : f32
    %124 = vector.broadcast %cst_66 : f32 to vector<64x64xf32>
    %125 = arith.select %122, %123, %124 : vector<64x64xi1>, vector<64x64xf32>
    %c30_i32 = arith.constant 30 : i32
    %126 = vector.broadcast %c30_i32 : i32 to vector<64x64xi32>
    %127 = arith.cmpi sle, %120, %126 : vector<64x64xi32>
    %c63_i32_67 = arith.constant 63 : i32
    %128 = tpu.dynamic_rotate %117 by %c63_i32_67 dim 0 : vector<64x64xf32>, i32 -> vector<64x64xf32>
    %cst_68 = arith.constant 0.000000e+00 : f32
    %129 = vector.broadcast %cst_68 : f32 to vector<64x64xf32>
    %130 = arith.select %127, %128, %129 : vector<64x64xi1>, vector<64x64xf32>
    %131 = tpu.concatenate %125, %117, %130 in 1 : vector<64x64xf32>, vector<64x64xf32>, vector<64x64xf32> -> vector<64x192xf32>
    %132 = arith.truncf %131 : vector<64x192xf32> to vector<64x192xbf16>
    %c0_69 = arith.constant 0 : index
    %c0_70 = arith.constant 0 : index
    %133 = vector.load %arg10[%c0_69, %c0_70] : memref<192x64xbf16, #tpu.memory_space<vmem>>, vector<192x64xbf16>
    %cst_71 = arith.constant dense<0.000000e+00> : vector<64x64xf32>
    %134 = tpu.matmul %132, %133, %cst_71 {dimension_numbers = #tpu.dot_dimension_numbers<[1], [0], [0], [1], [0, 0, 1, 1], [], []>} : vector<64x192xbf16>, vector<192x64xbf16>, vector<64x64xf32> -> vector<64x64xf32>
    %c0_72 = arith.constant 0 : index
    %c0_73 = arith.constant 0 : index
    %135 = vector.load %arg27[%c0_72, %c0_73] : memref<64x64xf32, #tpu.memory_space<vmem>>, vector<64x64xf32>
    tpu.vector_store %arg27[%c0_72, %c0_73], %134 {strides = array<i32>} : memref<64x64xf32, #tpu.memory_space<vmem>>, vector<64x64xf32>,
    %c0_74 = arith.constant 0 : index
    %c0_75 = arith.constant 0 : index
    %136 = tpu.strided_load %arg27[%c0_74, %c0_75] {strides = array<i32: 2, 1>} : memref<64x64xf32, #tpu.memory_space<vmem>>, vector<32x64xf32>
    %c1_76 = arith.constant 1 : index
    %c0_77 = arith.constant 0 : index
    %137 = tpu.strided_load %arg27[%c1_76, %c0_77] {strides = array<i32: 2, 1>} : memref<64x64xf32, #tpu.memory_space<vmem>>, vector<32x64xf32>
    %138 = arith.maximumf %136, %137 : vector<32x64xf32>
    %c0_78 = arith.constant 0 : index
    %c0_79 = arith.constant 0 : index
    %139 = vector.load %arg11[%c0_78, %c0_79] : memref<1x64xf32, #tpu.memory_space<vmem>>, vector<1x64xf32>
    %c0_80 = arith.constant 0 : index
    %c0_81 = arith.constant 0 : index
    %140 = vector.load %arg12[%c0_80, %c0_81] : memref<1x64xf32, #tpu.memory_space<vmem>>, vector<1x64xf32>
    %cst_82 = arith.constant 0.000000e+00 : f32
    %141 = vector.broadcast %cst_82 : f32 to vector<32x64xf32>
    %142 = arith.maximumf %138, %141 : vector<32x64xf32>
    %cst_83 = arith.constant dense<0.000000e+00> : vector<64xf32>
    %143 = vector.multi_reduction <add>, %142, %cst_83 [0] : vector<32x64xf32> to vector<64xf32>
    %144 = vector.shape_cast %143 : vector<64xf32> to vector<1x64xf32>
    %cst_84 = arith.constant 3.125000e-02 : f32
    %145 = vector.broadcast %cst_84 : f32 to vector<1x64xf32>
    %146 = arith.mulf %144, %145 : vector<1x64xf32>
    %147 = vector.broadcast %146 : vector<1x64xf32> to vector<32x64xf32>
    %148 = arith.subf %142, %147 : vector<32x64xf32>
    %149 = arith.mulf %148, %148 : vector<32x64xf32>
    %cst_85 = arith.constant dense<0.000000e+00> : vector<64xf32>
    %150 = vector.multi_reduction <add>, %149, %cst_85 [0] : vector<32x64xf32> to vector<64xf32>
    %151 = vector.shape_cast %150 : vector<64xf32> to vector<1x64xf32>
    %cst_86 = arith.constant 3.125000e-02 : f32
    %152 = vector.broadcast %cst_86 : f32 to vector<1x64xf32>
    %153 = arith.mulf %151, %152 : vector<1x64xf32>
    %cst_87 = arith.constant 9.99999974E-6 : f32
    %154 = vector.broadcast %cst_87 : f32 to vector<1x64xf32>
    %155 = arith.addf %153, %154 : vector<1x64xf32>
    %156 = math.rsqrt %155 : vector<1x64xf32>
    %157 = arith.mulf %139, %156 : vector<1x64xf32>
    %158 = vector.broadcast %157 : vector<1x64xf32> to vector<32x64xf32>
    %159 = arith.mulf %148, %158 : vector<32x64xf32>
    %160 = vector.broadcast %140 : vector<1x64xf32> to vector<32x64xf32>
    %161 = arith.addf %159, %160 : vector<32x64xf32>
    %162 = tpu.iota {dimensions = array<i32: 0>} : vector<32x64xi32>
    %c15_i32 = arith.constant 15 : i32
    %163 = vector.broadcast %c15_i32 : i32 to vector<32x64xi32>
    %164 = arith.andi %162, %163 : vector<32x64xi32>
    %c1_i32_88 = arith.constant 1 : i32
    %165 = vector.broadcast %c1_i32_88 : i32 to vector<32x64xi32>
    %166 = arith.cmpi sge, %164, %165 : vector<32x64xi32>
    %c1_i32_89 = arith.constant 1 : i32
    %167 = tpu.dynamic_rotate %161 by %c1_i32_89 dim 0 : vector<32x64xf32>, i32 -> vector<32x64xf32>
    %cst_90 = arith.constant 0.000000e+00 : f32
    %168 = vector.broadcast %cst_90 : f32 to vector<32x64xf32>
    %169 = arith.select %166, %167, %168 : vector<32x64xi1>, vector<32x64xf32>
    %c14_i32 = arith.constant 14 : i32
    %170 = vector.broadcast %c14_i32 : i32 to vector<32x64xi32>
    %171 = arith.cmpi sle, %164, %170 : vector<32x64xi32>
    %c31_i32_91 = arith.constant 31 : i32
    %172 = tpu.dynamic_rotate %161 by %c31_i32_91 dim 0 : vector<32x64xf32>, i32 -> vector<32x64xf32>
    %cst_92 = arith.constant 0.000000e+00 : f32
    %173 = vector.broadcast %cst_92 : f32 to vector<32x64xf32>
    %174 = arith.select %171, %172, %173 : vector<32x64xi1>, vector<32x64xf32>
    %175 = tpu.concatenate %169, %161, %174 in 1 : vector<32x64xf32>, vector<32x64xf32>, vector<32x64xf32> -> vector<32x192xf32>
    %176 = arith.truncf %175 : vector<32x192xf32> to vector<32x192xbf16>
    %c0_93 = arith.constant 0 : index
    %c0_94 = arith.constant 0 : index
    %177 = vector.load %arg13[%c0_93, %c0_94] : memref<192x64xbf16, #tpu.memory_space<vmem>>, vector<192x64xbf16>
    %cst_95 = arith.constant dense<0.000000e+00> : vector<32x64xf32>
    %178 = tpu.matmul %176, %177, %cst_95 {dimension_numbers = #tpu.dot_dimension_numbers<[1], [0], [0], [1], [0, 0, 1, 1], [], []>} : vector<32x192xbf16>, vector<192x64xbf16>, vector<32x64xf32> -> vector<32x64xf32>
    %c0_96 = arith.constant 0 : index
    %c0_97 = arith.constant 0 : index
    %179 = vector.load %arg28[%c0_96, %c0_97] : memref<32x64xf32, #tpu.memory_space<vmem>>, vector<32x64xf32>
    tpu.vector_store %arg28[%c0_96, %c0_97], %178 {strides = array<i32>} : memref<32x64xf32, #tpu.memory_space<vmem>>, vector<32x64xf32>,
    %c0_98 = arith.constant 0 : index
    %c0_99 = arith.constant 0 : index
    %180 = tpu.strided_load %arg28[%c0_98, %c0_99] {strides = array<i32: 2, 1>} : memref<32x64xf32, #tpu.memory_space<vmem>>, vector<16x64xf32>
    %c1_100 = arith.constant 1 : index
    %c0_101 = arith.constant 0 : index
    %181 = tpu.strided_load %arg28[%c1_100, %c0_101] {strides = array<i32: 2, 1>} : memref<32x64xf32, #tpu.memory_space<vmem>>, vector<16x64xf32>
    %182 = arith.maximumf %180, %181 : vector<16x64xf32>
    %c0_102 = arith.constant 0 : index
    %c0_103 = arith.constant 0 : index
    %183 = vector.load %arg14[%c0_102, %c0_103] : memref<1x64xf32, #tpu.memory_space<vmem>>, vector<1x64xf32>
    %c0_104 = arith.constant 0 : index
    %c0_105 = arith.constant 0 : index
    %184 = vector.load %arg15[%c0_104, %c0_105] : memref<1x64xf32, #tpu.memory_space<vmem>>, vector<1x64xf32>
    %cst_106 = arith.constant 0.000000e+00 : f32
    %185 = vector.broadcast %cst_106 : f32 to vector<16x64xf32>
    %186 = arith.maximumf %182, %185 : vector<16x64xf32>
    %cst_107 = arith.constant dense<0.000000e+00> : vector<64xf32>
    %187 = vector.multi_reduction <add>, %186, %cst_107 [0] : vector<16x64xf32> to vector<64xf32>
    %188 = vector.shape_cast %187 : vector<64xf32> to vector<1x64xf32>
    %cst_108 = arith.constant 6.250000e-02 : f32
    %189 = vector.broadcast %cst_108 : f32 to vector<1x64xf32>
    %190 = arith.mulf %188, %189 : vector<1x64xf32>
    %191 = vector.broadcast %190 : vector<1x64xf32> to vector<16x64xf32>
    %192 = arith.subf %186, %191 : vector<16x64xf32>
    %193 = arith.mulf %192, %192 : vector<16x64xf32>
    %cst_109 = arith.constant dense<0.000000e+00> : vector<64xf32>
    %194 = vector.multi_reduction <add>, %193, %cst_109 [0] : vector<16x64xf32> to vector<64xf32>
    %195 = vector.shape_cast %194 : vector<64xf32> to vector<1x64xf32>
    %cst_110 = arith.constant 6.250000e-02 : f32
    %196 = vector.broadcast %cst_110 : f32 to vector<1x64xf32>
    %197 = arith.mulf %195, %196 : vector<1x64xf32>
    %cst_111 = arith.constant 9.99999974E-6 : f32
    %198 = vector.broadcast %cst_111 : f32 to vector<1x64xf32>
    %199 = arith.addf %197, %198 : vector<1x64xf32>
    %200 = math.rsqrt %199 : vector<1x64xf32>
    %201 = arith.mulf %183, %200 : vector<1x64xf32>
    %202 = vector.broadcast %201 : vector<1x64xf32> to vector<16x64xf32>
    %203 = arith.mulf %192, %202 : vector<16x64xf32>
    %204 = vector.broadcast %184 : vector<1x64xf32> to vector<16x64xf32>
    %205 = arith.addf %203, %204 : vector<16x64xf32>
    %206 = tpu.iota {dimensions = array<i32: 0>} : vector<16x64xi32>
    %c7_i32 = arith.constant 7 : i32
    %207 = vector.broadcast %c7_i32 : i32 to vector<16x64xi32>
    %208 = arith.andi %206, %207 : vector<16x64xi32>
    %c6_i32 = arith.constant 6 : i32
    %209 = vector.broadcast %c6_i32 : i32 to vector<16x64xi32>
    %210 = arith.cmpi sle, %208, %209 : vector<16x64xi32>
    %c15_i32_112 = arith.constant 15 : i32
    %211 = tpu.dynamic_rotate %205 by %c15_i32_112 dim 0 : vector<16x64xf32>, i32 -> vector<16x64xf32>
    %cst_113 = arith.constant 0.000000e+00 : f32
    %212 = vector.broadcast %cst_113 : f32 to vector<16x64xf32>
    %213 = arith.select %210, %211, %212 : vector<16x64xi1>, vector<16x64xf32>
    %c5_i32 = arith.constant 5 : i32
    %214 = vector.broadcast %c5_i32 : i32 to vector<16x64xi32>
    %215 = arith.cmpi sle, %208, %214 : vector<16x64xi32>
    %c14_i32_114 = arith.constant 14 : i32
    %216 = tpu.dynamic_rotate %205 by %c14_i32_114 dim 0 : vector<16x64xf32>, i32 -> vector<16x64xf32>
    %cst_115 = arith.constant 0.000000e+00 : f32
    %217 = vector.broadcast %cst_115 : f32 to vector<16x64xf32>
    %218 = arith.select %215, %216, %217 : vector<16x64xi1>, vector<16x64xf32>
    %219 = tpu.concatenate %205, %213, %218 in 1 : vector<16x64xf32>, vector<16x64xf32>, vector<16x64xf32> -> vector<16x192xf32>
    %220 = arith.truncf %219 : vector<16x192xf32> to vector<16x192xbf16>
    %c0_116 = arith.constant 0 : index
    %c0_117 = arith.constant 0 : index
    %221 = vector.load %arg16[%c0_116, %c0_117] : memref<192x64xbf16, #tpu.memory_space<vmem>>, vector<192x64xbf16>
    %cst_118 = arith.constant dense<0.000000e+00> : vector<16x64xf32>
    %222 = tpu.matmul %220, %221, %cst_118 {dimension_numbers = #tpu.dot_dimension_numbers<[1], [0], [0], [1], [0, 0, 1, 1], [], []>} : vector<16x192xbf16>, vector<192x64xbf16>, vector<16x64xf32> -> vector<16x64xf32>
    %c0_119 = arith.constant 0 : index
    %c0_120 = arith.constant 0 : index
    %223 = vector.load %arg29[%c0_119, %c0_120] : memref<16x64xf32, #tpu.memory_space<vmem>>, vector<16x64xf32>
    tpu.vector_store %arg29[%c0_119, %c0_120], %222 {strides = array<i32>} : memref<16x64xf32, #tpu.memory_space<vmem>>, vector<16x64xf32>,
    %c0_121 = arith.constant 0 : index
    %c0_122 = arith.constant 0 : index
    %224 = tpu.strided_load %arg29[%c0_121, %c0_122] {strides = array<i32: 8, 1>} : memref<16x64xf32, #tpu.memory_space<vmem>>, vector<2x64xf32>
    %c1_123 = arith.constant 1 : index
    %c0_124 = arith.constant 0 : index
    %225 = tpu.strided_load %arg29[%c1_123, %c0_124] {strides = array<i32: 8, 1>} : memref<16x64xf32, #tpu.memory_space<vmem>>, vector<2x64xf32>
    %226 = arith.maximumf %224, %225 : vector<2x64xf32>
    %cst_125 = arith.constant 0.000000e+00 : f32
    %227 = vector.broadcast %cst_125 : f32 to vector<2x64xf32>
    %228 = arith.maximumf %226, %227 : vector<2x64xf32>
    %c2 = arith.constant 2 : index
    %c0_126 = arith.constant 0 : index
    %229 = tpu.strided_load %arg29[%c2, %c0_126] {strides = array<i32: 8, 1>} : memref<16x64xf32, #tpu.memory_space<vmem>>, vector<2x64xf32>
    %c3 = arith.constant 3 : index
    %c0_127 = arith.constant 0 : index
    %230 = tpu.strided_load %arg29[%c3, %c0_127] {strides = array<i32: 8, 1>} : memref<16x64xf32, #tpu.memory_space<vmem>>, vector<2x64xf32>
    %231 = arith.maximumf %229, %230 : vector<2x64xf32>
    %cst_128 = arith.constant 0.000000e+00 : f32
    %232 = vector.broadcast %cst_128 : f32 to vector<2x64xf32>
    %233 = arith.maximumf %231, %232 : vector<2x64xf32>
    %c4 = arith.constant 4 : index
    %c0_129 = arith.constant 0 : index
    %234 = tpu.strided_load %arg29[%c4, %c0_129] {strides = array<i32: 8, 1>} : memref<16x64xf32, #tpu.memory_space<vmem>>, vector<2x64xf32>
    %c5 = arith.constant 5 : index
    %c0_130 = arith.constant 0 : index
    %235 = tpu.strided_load %arg29[%c5, %c0_130] {strides = array<i32: 8, 1>} : memref<16x64xf32, #tpu.memory_space<vmem>>, vector<2x64xf32>
    %236 = arith.maximumf %234, %235 : vector<2x64xf32>
    %cst_131 = arith.constant 0.000000e+00 : f32
    %237 = vector.broadcast %cst_131 : f32 to vector<2x64xf32>
    %238 = arith.maximumf %236, %237 : vector<2x64xf32>
    %cst_132 = arith.constant dense<0.000000e+00> : vector<64xf32>
    %239 = vector.multi_reduction <add>, %228, %cst_132 [0] : vector<2x64xf32> to vector<64xf32>
    %240 = vector.shape_cast %239 : vector<64xf32> to vector<1x64xf32>
    %cst_133 = arith.constant 0.000000e+00 : f32
    %241 = vector.broadcast %cst_133 : f32 to vector<1x64xf32>
    %242 = arith.addf %241, %240 : vector<1x64xf32>
    %cst_134 = arith.constant dense<0.000000e+00> : vector<64xf32>
    %243 = vector.multi_reduction <add>, %233, %cst_134 [0] : vector<2x64xf32> to vector<64xf32>
    %244 = vector.shape_cast %243 : vector<64xf32> to vector<1x64xf32>
    %245 = arith.addf %242, %244 : vector<1x64xf32>
    %cst_135 = arith.constant dense<0.000000e+00> : vector<64xf32>
    %246 = vector.multi_reduction <add>, %238, %cst_135 [0] : vector<2x64xf32> to vector<64xf32>
    %247 = vector.shape_cast %246 : vector<64xf32> to vector<1x64xf32>
    %248 = arith.addf %245, %247 : vector<1x64xf32>
    %cst_136 = arith.constant 0.166666672 : f32
    %249 = vector.broadcast %cst_136 : f32 to vector<1x64xf32>
    %250 = arith.mulf %248, %249 : vector<1x64xf32>
    %251 = vector.broadcast %250 : vector<1x64xf32> to vector<2x64xf32>
    %252 = arith.subf %228, %251 : vector<2x64xf32>
    %253 = vector.broadcast %250 : vector<1x64xf32> to vector<2x64xf32>
    %254 = arith.subf %228, %253 : vector<2x64xf32>
    %255 = arith.mulf %252, %254 : vector<2x64xf32>
    %cst_137 = arith.constant dense<0.000000e+00> : vector<64xf32>
    %256 = vector.multi_reduction <add>, %255, %cst_137 [0] : vector<2x64xf32> to vector<64xf32>
    %257 = vector.shape_cast %256 : vector<64xf32> to vector<1x64xf32>
    %cst_138 = arith.constant 0.000000e+00 : f32
    %258 = vector.broadcast %cst_138 : f32 to vector<1x64xf32>
    %259 = arith.addf %258, %257 : vector<1x64xf32>
    %260 = vector.broadcast %250 : vector<1x64xf32> to vector<2x64xf32>
    %261 = arith.subf %233, %260 : vector<2x64xf32>
    %262 = vector.broadcast %250 : vector<1x64xf32> to vector<2x64xf32>
    %263 = arith.subf %233, %262 : vector<2x64xf32>
    %264 = arith.mulf %261, %263 : vector<2x64xf32>
    %cst_139 = arith.constant dense<0.000000e+00> : vector<64xf32>
    %265 = vector.multi_reduction <add>, %264, %cst_139 [0] : vector<2x64xf32> to vector<64xf32>
    %266 = vector.shape_cast %265 : vector<64xf32> to vector<1x64xf32>
    %267 = arith.addf %259, %266 : vector<1x64xf32>
    %268 = vector.broadcast %250 : vector<1x64xf32> to vector<2x64xf32>
    %269 = arith.subf %238, %268 : vector<2x64xf32>
    %270 = vector.broadcast %250 : vector<1x64xf32> to vector<2x64xf32>
    %271 = arith.subf %238, %270 : vector<2x64xf32>
    %272 = arith.mulf %269, %271 : vector<2x64xf32>
    %cst_140 = arith.constant dense<0.000000e+00> : vector<64xf32>
    %273 = vector.multi_reduction <add>, %272, %cst_140 [0] : vector<2x64xf32> to vector<64xf32>
    %274 = vector.shape_cast %273 : vector<64xf32> to vector<1x64xf32>
    %275 = arith.addf %267, %274 : vector<1x64xf32>
    %cst_141 = arith.constant 0.166666672 : f32
    %276 = vector.broadcast %cst_141 : f32 to vector<1x64xf32>
    %277 = arith.mulf %275, %276 : vector<1x64xf32>
    %c0_142 = arith.constant 0 : index
    %c0_143 = arith.constant 0 : index
    %278 = vector.load %arg17[%c0_142, %c0_143] : memref<1x64xf32, #tpu.memory_space<vmem>>, vector<1x64xf32>
    %cst_144 = arith.constant 9.99999974E-6 : f32
    %279 = vector.broadcast %cst_144 : f32 to vector<1x64xf32>
    %280 = arith.addf %277, %279 : vector<1x64xf32>
    %281 = math.rsqrt %280 : vector<1x64xf32>
    %282 = arith.mulf %278, %281 : vector<1x64xf32>
    %c0_145 = arith.constant 0 : index
    %c0_146 = arith.constant 0 : index
    %283 = vector.load %arg20[%c0_145, %c0_146] : memref<1x100xf32, #tpu.memory_space<vmem>>, vector<1x100xf32>
    %284 = vector.broadcast %250 : vector<1x64xf32> to vector<2x64xf32>
    %285 = arith.subf %228, %284 : vector<2x64xf32>
    %286 = vector.broadcast %282 : vector<1x64xf32> to vector<2x64xf32>
    %287 = arith.mulf %285, %286 : vector<2x64xf32>
    %c0_147 = arith.constant 0 : index
    %c0_148 = arith.constant 0 : index
    %288 = vector.load %arg18[%c0_147, %c0_148] : memref<1x64xf32, #tpu.memory_space<vmem>>, vector<1x64xf32>
    %289 = vector.broadcast %288 : vector<1x64xf32> to vector<2x64xf32>
    %290 = arith.addf %287, %289 : vector<2x64xf32>
    %291 = arith.truncf %290 : vector<2x64xf32> to vector<2x64xbf16>
    %c0_149 = arith.constant 0 : index
    %c0_150 = arith.constant 0 : index
    %c0_151 = arith.constant 0 : index
    %292 = vector.load %arg19[%c0_149, %c0_150, %c0_151] : memref<3x64x100xbf16, #tpu.memory_space<vmem>>, vector<1x64x100xbf16>
    %293 = vector.shape_cast %292 : vector<1x64x100xbf16> to vector<64x100xbf16>
    %cst_152 = arith.constant dense<0.000000e+00> : vector<2x100xf32>
    %294 = tpu.matmul %291, %293, %cst_152 {dimension_numbers = #tpu.dot_dimension_numbers<[1], [0], [0], [1], [0, 0, 1, 1], [], []>} : vector<2x64xbf16>, vector<64x100xbf16>, vector<2x100xf32> -> vector<2x100xf32>
    %295 = vector.broadcast %283 : vector<1x100xf32> to vector<2x100xf32>
    %296 = arith.addf %295, %294 : vector<2x100xf32>
    %297 = vector.broadcast %250 : vector<1x64xf32> to vector<2x64xf32>
    %298 = arith.subf %233, %297 : vector<2x64xf32>
    %299 = vector.broadcast %282 : vector<1x64xf32> to vector<2x64xf32>
    %300 = arith.mulf %298, %299 : vector<2x64xf32>
    %c0_153 = arith.constant 0 : index
    %c0_154 = arith.constant 0 : index
    %301 = vector.load %arg18[%c0_153, %c0_154] : memref<1x64xf32, #tpu.memory_space<vmem>>, vector<1x64xf32>
    %302 = vector.broadcast %301 : vector<1x64xf32> to vector<2x64xf32>
    %303 = arith.addf %300, %302 : vector<2x64xf32>
    %304 = arith.truncf %303 : vector<2x64xf32> to vector<2x64xbf16>
    %c1_155 = arith.constant 1 : index
    %c0_156 = arith.constant 0 : index
    %c0_157 = arith.constant 0 : index
    %305 = vector.load %arg19[%c1_155, %c0_156, %c0_157] : memref<3x64x100xbf16, #tpu.memory_space<vmem>>, vector<1x64x100xbf16>
    %306 = vector.shape_cast %305 : vector<1x64x100xbf16> to vector<64x100xbf16>
    %cst_158 = arith.constant dense<0.000000e+00> : vector<2x100xf32>
    %307 = tpu.matmul %304, %306, %cst_158 {dimension_numbers = #tpu.dot_dimension_numbers<[1], [0], [0], [1], [0, 0, 1, 1], [], []>} : vector<2x64xbf16>, vector<64x100xbf16>, vector<2x100xf32> -> vector<2x100xf32>
    %308 = arith.addf %296, %307 : vector<2x100xf32>
    %309 = vector.broadcast %250 : vector<1x64xf32> to vector<2x64xf32>
    %310 = arith.subf %238, %309 : vector<2x64xf32>
    %311 = vector.broadcast %282 : vector<1x64xf32> to vector<2x64xf32>
    %312 = arith.mulf %310, %311 : vector<2x64xf32>
    %c0_159 = arith.constant 0 : index
    %c0_160 = arith.constant 0 : index
    %313 = vector.load %arg18[%c0_159, %c0_160] : memref<1x64xf32, #tpu.memory_space<vmem>>, vector<1x64xf32>
    %314 = vector.broadcast %313 : vector<1x64xf32> to vector<2x64xf32>
    %315 = arith.addf %312, %314 : vector<2x64xf32>
    %316 = arith.truncf %315 : vector<2x64xf32> to vector<2x64xbf16>
    %c2_161 = arith.constant 2 : index
    %c0_162 = arith.constant 0 : index
    %c0_163 = arith.constant 0 : index
    %317 = vector.load %arg19[%c2_161, %c0_162, %c0_163] : memref<3x64x100xbf16, #tpu.memory_space<vmem>>, vector<1x64x100xbf16>
    %318 = vector.shape_cast %317 : vector<1x64x100xbf16> to vector<64x100xbf16>
    %cst_164 = arith.constant dense<0.000000e+00> : vector<2x100xf32>
    %319 = tpu.matmul %316, %318, %cst_164 {dimension_numbers = #tpu.dot_dimension_numbers<[1], [0], [0], [1], [0, 0, 1, 1], [], []>} : vector<2x64xbf16>, vector<64x100xbf16>, vector<2x100xf32> -> vector<2x100xf32>
    %320 = arith.addf %308, %319 : vector<2x100xf32>
    %cst_165 = arith.constant 0.000000e+00 : f32
    %321 = vector.broadcast %cst_165 : f32 to vector<2x100xf32>
    %322 = arith.maximumf %320, %321 : vector<2x100xf32>
    %323 = arith.truncf %322 : vector<2x100xf32> to vector<2x100xbf16>
    %c0_166 = arith.constant 0 : index
    %c0_167 = arith.constant 0 : index
    %324 = vector.load %arg21[%c0_166, %c0_167] : memref<100x2xbf16, #tpu.memory_space<vmem>>, vector<100x2xbf16>
    %cst_168 = arith.constant dense<0.000000e+00> : vector<2x2xf32>
    %325 = tpu.matmul %323, %324, %cst_168 {dimension_numbers = #tpu.dot_dimension_numbers<[1], [0], [0], [1], [0, 0, 1, 1], [], []>} : vector<2x100xbf16>, vector<100x2xbf16>, vector<2x2xf32> -> vector<2x2xf32>
    %c0_169 = arith.constant 0 : index
    %c0_170 = arith.constant 0 : index
    %326 = vector.load %arg22[%c0_169, %c0_170] : memref<1x2xf32, #tpu.memory_space<vmem>>, vector<1x2xf32>
    %327 = vector.broadcast %326 : vector<1x2xf32> to vector<2x2xf32>
    %328 = arith.addf %325, %327 : vector<2x2xf32>
    %cst_171 = arith.constant dense<0xFF800000> : vector<2xf32>
    %329 = vector.multi_reduction <maximumf>, %328, %cst_171 [1] : vector<2x2xf32> to vector<2xf32>
    %330 = vector.shape_cast %329 : vector<2xf32> to vector<2x1xf32>
    %331 = vector.broadcast %330 : vector<2x1xf32> to vector<2x2xf32>
    %332 = arith.subf %328, %331 : vector<2x2xf32>
    %333 = math.exp %332 : vector<2x2xf32>
    %cst_172 = arith.constant dense<0.000000e+00> : vector<2xf32>
    %334 = vector.multi_reduction <add>, %333, %cst_172 [1] : vector<2x2xf32> to vector<2xf32>
    %335 = vector.shape_cast %334 : vector<2xf32> to vector<2x1xf32>
    %336 = math.log %335 : vector<2x1xf32>
    %337 = vector.broadcast %336 : vector<2x1xf32> to vector<2x2xf32>
    %338 = arith.subf %332, %337 : vector<2x2xf32>
    %c0_173 = arith.constant 0 : index
    %c0_174 = arith.constant 0 : index
    %339 = vector.load %arg23[%c0_173, %c0_174] : memref<2x2xf32, #tpu.memory_space<vmem>>, vector<2x2xf32>
    tpu.vector_store %arg23[%c0_173, %c0_174], %338 {strides = array<i32>} : memref<2x2xf32, #tpu.memory_space<vmem>>, vector<2x2xf32>,
    return
  }
}

</mosaic_0001>

<bundles_post_ra>
// kernel: ticnn_forward.1
= control target key start
LH: loop header
LB: loop body
LE: loop exit
PB: predicated region body
PF: predicated region fallthrough
CT: control target
= control target key end

     0   :  { %s7664_s0 = inlined_call_operand.vmem [shape: bf16[512,64], index: 0, kind: input, shape index: {}]   ;;  %s7665_s1 = inlined_call_operand.vmem [shape: bf16[64,16], index: 1, kind: input, shape index: {}]   ;;  %s7666_s2 = inlined_call_operand.vmem [shape: f32[1,16], index: 2, kind: input, shape index: {}]   ;;  %s7667_s3 = inlined_call_operand.vmem [shape: f32[1,16], index: 3, kind: input, shape index: {}]   ;;  %s7668_s4 = inlined_call_operand.vmem [shape: bf16[48,32], index: 4, kind: input, shape index: {}]   ;;  %s7669_s5 = inlined_call_operand.vmem [shape: f32[1,32], index: 5, kind: input, shape index: {}]   ;;  %s7670_s6 = inlined_call_operand.vmem [shape: f32[1,32], index: 6, kind: input, shape index: {}]   ;;  %s7671_s7 = inlined_call_operand.vmem [shape: bf16[96,64], index: 7, kind: input, shape index: {}]   ;;  %s7672_s8 = inlined_call_operand.vmem [shape: f32[1,64], index: 8, kind: input, shape index: {}]   ;;  %s7673_s9 = inlined_call_operand.vmem [shape: f32[1,64], index: 9, kind: input, shape index: {}]   ;;  %s7674_s10 = inlined_call_operand.vmem [shape: bf16[192,64], index: 10, kind: input, shape index: {}]   ;;  %s7675_s11 = inlined_call_operand.vmem [shape: f32[1,64], index: 11, kind: input, shape index: {}]   ;;  %s7676_s12 = inlined_call_operand.vmem [shape: f32[1,64], index: 12, kind: input, shape index: {}]   ;;  %s7677_s13 = inlined_call_operand.vmem [shape: bf16[192,64], index: 13, kind: input, shape index: {}]   ;;  %s7678_s14 = inlined_call_operand.vmem [shape: f32[1,64], index: 14, kind: input, shape index: {}]   ;;  %s7679_s15 = inlined_call_operand.vmem [shape: f32[1,64], index: 15, kind: input, shape index: {}]   ;;  %s7680_s16 = inlined_call_operand.vmem [shape: bf16[192,64], index: 16, kind: input, shape index: {}]   ;;  %s7681_s17 = inlined_call_operand.vmem [shape: f32[1,64], index: 17, kind: input, shape index: {}]   ;;  %s7682_s18 = inlined_call_operand.vmem [shape: f32[1,64], index: 18, kind: input, shape index: {}]   ;;  %s7683_s19 = inlined_call_operand.vmem [shape: bf16[3,64,100], index: 19, kind: input, shape index: {}]   ;;  %s7684_s20 = inlined_call_operand.vmem [shape: f32[1,100], index: 20, kind: input, shape index: {}]   ;;  %s7685_s21 = inlined_call_operand.vmem [shape: bf16[100,2], index: 21, kind: input, shape index: {}]   ;;  %s7686_s22 = inlined_call_operand.vmem [shape: f32[1,2], index: 22, kind: input, shape index: {}]   ;;  %s7687_s23 = inlined_call_operand.hbm [shape: f32[2,2], index: 23, kind: output, shape index: {}]  }
   0x1   :  { %7692 = sst [smem:[#allocation11_spill]] %s7664_s0 }
   0x2   :  { %7693 = sst [smem:[#allocation12_spill]] %s7665_s1 }
   0x3   :  { %7694 = sst [smem:[#allocation13_spill]] %s7666_s2 }
   0x4   :  { %7695 = sst [smem:[#allocation14_spill]] %s7667_s3 }
   0x5   :  { %7696 = sst [smem:[#allocation15_spill]] %s7668_s4 }
   0x6   :  { %7697 = sst [smem:[#allocation16_spill]] %s7669_s5 }
   0x7   :  { %7698 = sst [smem:[#allocation17_spill]] %s7670_s6 }
   0x8   :  { %7699 = sst [smem:[#allocation18_spill]] %s7671_s7 }
   0x9   :  { %s7700_s24 = sld [smem:[#allocation12_spill]]  ;;  %vm332_vm0 = vcmask 523264   ;;  %s7701_s27 = sld [smem:[#allocation11_spill]] }
   0xf   :  { %v5144_v0 = vld [vmem:[%s7700_s24] sm:$0xff]   ;;  %v5145_v1 = vld [vmem:[%s7700_s24 + $0x8] sm:$0xff]   ;;  %v5146_v2 = vld [vmem:[%s7700_s24 + $0x10] sm:$0xff]  }
  0x10   :  { %4661 = vmatprep.subr.bf16.mxu0 %v5144_v0  ;;  %v5148_v3 = vld [vmem:[%s7701_s27] sm:$0xff]   ;;  %v5147_v4 = vld [vmem:[%s7700_s24 + $0x18] sm:$0xff]   ;;  %v5149_v5 = vld [vmem:[%s7701_s27 + $0x8] sm:$0xff]  }
  0x11   :  { %4662 = vmatpush3.bf16.msra.mxu0 %v5144_v0  ;;  %4669 = vmatprep.mubr.msk.bf16.mxu0 %vm332_vm0, %v5148_v3  ;;  %v5150_v6 = vld [vmem:[%s7701_s27 + $0x10] sm:$0xff]   ;;  %v5151_v7 = vld [vmem:[%s7701_s27 + $0x18] sm:$0xff]   ;;  %v5152_v8 = vld [vmem:[%s7701_s27 + $0x20] sm:$0xff]  }
  0x12   :  { %4663 = vmatprep.subr.bf16.mxu0 %v5145_v1  ;;  %v5153_v9 = vld [vmem:[%s7701_s27 + $0x28] sm:$0xff]   ;;  %v5154_v10 = vld [vmem:[%s7701_s27 + $0x30] sm:$0xff]   ;;  %v5155_v11 = vld [vmem:[%s7701_s27 + $0x38] sm:$0xff]  }
  0x13   :  { %v5156_v12 = vld [vmem:[%s7701_s27 + $0x40] sm:$0xff]   ;;  %v5157_v13 = vld [vmem:[%s7701_s27 + $0x48] sm:$0xff]   ;;  %v5158_v14 = vld [vmem:[%s7701_s27 + $0x50] sm:$0xff]  }
  0x14   :  { %v5159_v15 = vld [vmem:[%s7701_s27 + $0x58] sm:$0xff]   ;;  %v5160_v16 = vld [vmem:[%s7701_s27 + $0x60] sm:$0xff]   ;;  %v5161_v17 = vld [vmem:[%s7701_s27 + $0x68] sm:$0xff]  }
  0x15   :  { %4664 = vmatpush3.bf16.msra.mxu0 %v5145_v1  ;;  %v5162_v18 = vld [vmem:[%s7701_s27 + $0x70] sm:$0xff]   ;;  %v5163_v19 = vld [vmem:[%s7701_s27 + $0x78] sm:$0xff]   ;;  %v5164_v20 = vld [vmem:[%s7701_s27 + $0x80] sm:$0xff]  }
  0x16   :  { %4665 = vmatprep.subr.bf16.mxu0 %v5146_v2  ;;  %v5165_v21 = vld [vmem:[%s7701_s27 + $0x88] sm:$0xff]  }
  0x19   :  { %4666 = vmatpush3.bf16.msra.mxu0 %v5146_v2 }
  0x1a   :  { %4667 = vmatprep.subr.bf16.mxu0 %v5147_v4 }
  0x1d   :  { %4668 = vmatpush3.bf16.msra.mxu0 %v5147_v4 }
  0x20   :  { %4670 = vmatmul.mubr.msk.bf16.vlgmr.msra.gmra.mrb[0].mxu0 %vm332_vm0, %v5149_v5 }
  0x21   :  { %4673 = vmatprep.mubr.msk.bf16.mxu0 %vm332_vm0, %v5150_v6 }
  0x28   :  { %4674 = vmatmul.mubr.msk.bf16.gmra.mrb[4].mxu0 %vm332_vm0, %v5151_v7 }
  0x29   :  { %4677 = vmatprep.mubr.msk.bf16.mxu0 %vm332_vm0, %v5152_v8 }
  0x30   :  { %4678 = vmatmul.mubr.msk.bf16.gmra.mrb[8].mxu0 %vm332_vm0, %v5153_v9 }
  0x31   :  { %4681 = vmatprep.mubr.msk.bf16.mxu0 %vm332_vm0, %v5154_v10 }
  0x38   :  { %4682 = vmatmul.mubr.msk.bf16.gmra.mrb[12].mxu0 %vm332_vm0, %v5155_v11 }
  0x39   :  { %4685 = vmatprep.mubr.msk.bf16.mxu0 %vm332_vm0, %v5156_v12 }
  0x40   :  { %4686 = vmatmul.mubr.msk.bf16.gmra.mrb[16].mxu0 %vm332_vm0, %v5157_v13 }
  0x41   :  { %4689 = vmatprep.mubr.msk.bf16.mxu0 %vm332_vm0, %v5158_v14 }
  0x48   :  { %4690 = vmatmul.mubr.msk.bf16.gmra.mrb[20].mxu0 %vm332_vm0, %v5159_v15 }
  0x49   :  { %4693 = vmatprep.mubr.msk.bf16.mxu0 %vm332_vm0, %v5160_v16 }
  0x50   :  { %4694 = vmatmul.mubr.msk.bf16.gmra.mrb[24].mxu0 %vm332_vm0, %v5161_v17 }
  0x51   :  { %4697 = vmatprep.mubr.msk.bf16.mxu0 %vm332_vm0, %v5162_v18 }
  0x58   :  { %4698 = vmatmul.mubr.msk.bf16.gmra.mrb[28].mxu0 %vm332_vm0, %v5163_v19 }
  0x59   :  { %4701 = vmatprep.mubr.msk.bf16.mxu0 %vm332_vm0, %v5164_v20 }
  0x5a   :  { %28 = vsyncpa [#allocation9], 0  ;;  %v5166_v22 = vld [vmem:[%s7701_s27 + $0x90] sm:$0xff]   ;;  %v5167_v23 = vld [vmem:[%s7701_s27 + $0x98] sm:$0xff]   ;;  %vm718_vm1 = vcmask 130048   ;;  %s7702_s5 = sld [smem:[#allocation13_spill]] }
  0x5b   :  { %v5168_v24 = vld [vmem:[%s7701_s27 + $0xa0] sm:$0xff]   ;;  %v5169_v25 = vld [vmem:[%s7701_s27 + $0xa8] sm:$0xff]   ;;  %v5170_v26 = vld [vmem:[%s7701_s27 + $0xb0] sm:$0xff]   ;;  %s7703_s2 = sld [smem:[#allocation15_spill]]  ;;  %s7704_s28 = sld [smem:[#allocation14_spill]]  ;;  %vm1870_vm7 = vcmask 261120  }
  0x5c   :  { %v5171_v27 = vld [vmem:[%s7701_s27 + $0xb8] sm:$0xff]   ;;  %v5172_v28 = vld [vmem:[%s7701_s27 + $0xc0] sm:$0xff]   ;;  %v5173_v29 = vld [vmem:[%s7701_s27 + $0xc8] sm:$0xff]   ;;  %s5284_s30 = smov 16   ;;  %s5285_s25 = smov 32   ;;  %vm1943_vm8 = vcmask 392192  }
  0x5d   :  { %v5174_v30 = vld [vmem:[%s7701_s27 + $0xd0] sm:$0xff]   ;;  %v5175_v31 = vld [vmem:[%s7701_s27 + $0xd8] sm:$0xff]   ;;  %v5176_v32 = vld [vmem:[%s7701_s27 + $0xe0] sm:$0xff]   ;;  %s7710_s24 = sld [smem:[#allocation16_spill]]  ;;  %s7711_s26 = sld [smem:[#allocation17_spill]]  ;;  %vm2797_vm13 = vcmask 785408  }
  0x5e   :  { %v5177_v33 = vld [vmem:[%s7701_s27 + $0xe8] sm:$0xff]   ;;  %v5178_v34 = vld [vmem:[%s7701_s27 + $0xf0] sm:$0xff]   ;;  %v5179_v35 = vld [vmem:[%s7701_s27 + $0xf8] sm:$0xff]  }
  0x60   :  { %4702 = vmatmul.mubr.msk.bf16.gmra.mrb[32].mxu0 %vm332_vm0, %v5165_v21 }
  0x61   :  { %4705 = vmatprep.mubr.msk.bf16.mxu0 %vm332_vm0, %v5166_v22 }
  0x68   :  { %4706 = vmatmul.mubr.msk.bf16.gmra.mrb[36].mxu0 %vm332_vm0, %v5167_v23 }
  0x69   :  { %4709 = vmatprep.mubr.msk.bf16.mxu0 %vm332_vm0, %v5168_v24 }
  0x70   :  { %4710 = vmatmul.mubr.msk.bf16.gmra.mrb[40].mxu0 %vm332_vm0, %v5169_v25 }
  0x71   :  { %4713 = vmatprep.mubr.msk.bf16.mxu0 %vm332_vm0, %v5170_v26 }
  0x78   :  { %4714 = vmatmul.mubr.msk.bf16.gmra.mrb[44].mxu0 %vm332_vm0, %v5171_v27 }
  0x79   :  { %4717 = vmatprep.mubr.msk.bf16.mxu0 %vm332_vm0, %v5172_v28 }
  0x80   :  { %4718 = vmatmul.mubr.msk.bf16.gmra.mrb[48].mxu0 %vm332_vm0, %v5173_v29 }
  0x81   :  { %4721 = vmatprep.mubr.msk.bf16.mxu0 %vm332_vm0, %v5174_v30 }
  0x88   :  { %4722 = vmatmul.mubr.msk.bf16.gmra.mrb[52].mxu0 %vm332_vm0, %v5175_v31 }
  0x89   :  { %4725 = vmatprep.mubr.msk.bf16.mxu0 %vm332_vm0, %v5176_v32 }
  0x90   :  { %4726 = vmatmul.mubr.msk.bf16.gmra.mrb[56].mxu0 %vm332_vm0, %v5177_v33 }
  0x91   :  { %4729 = vmatprep.mubr.msk.bf16.mxu0 %vm332_vm0, %v5178_v34 }
  0x98   :  { %4730 = vmatmul.mubr.msk.bf16.gmra.mrb[60].mxu0 %vm332_vm0, %v5179_v35 }
  0xf3   :  { %v4671_v36 = vpop.f32.mrb[0].mxu0 }
  0xf4   :  { %721 = vst.msk [vmem:[#allocation2 + $0x10] sm:$0xff] %vm718_vm1, %v4671_v36  ;;  %v463_v37 = vpop.f32.mrb[1].mxu0 }
  0xf5   :  { %719 = vst.msk [vmem:[#allocation2] sm:$0xff] %vm718_vm1, %v463_v37  ;;  %v4672_v38 = vpop.f32.mrb[2].mxu0 }
  0xf6   :  { %722 = vst.msk [vmem:[#allocation2 + $0x18] sm:$0xff] %vm718_vm1, %v4672_v38  ;;  %v466_v39 = vpop.f32.mrb[3].mxu0 }
  0xf7   :  { %720 = vst.msk [vmem:[#allocation2 + $0x8] sm:$0xff] %vm718_vm1, %v466_v39 }
  0xfb   :  { %v4675_v40 = vpop.f32.mrb[4].mxu0 }
  0xfc   :  { %725 = vst.msk [vmem:[#allocation2 + $0x30] sm:$0xff] %vm718_vm1, %v4675_v40  ;;  %v479_v41 = vpop.f32.mrb[5].mxu0 }
  0xfd   :  { %723 = vst.msk [vmem:[#allocation2 + $0x20] sm:$0xff] %vm718_vm1, %v479_v41  ;;  %v4676_v42 = vpop.f32.mrb[6].mxu0  ;;  %v785_v56 = vld [vmem:[#allocation2 + $0x10] ss:$2 sm:$0xff]  ;;  %v849_v59 = vld [vmem:[#allocation2 + $0x11] ss:$2 sm:$0xff] }
  0xfe   :  { %726 = vst.msk [vmem:[#allocation2 + $0x38] sm:$0xff] %vm718_vm1, %v4676_v42  ;;  %v482_v43 = vpop.f32.mrb[7].mxu0  ;;  %v783_v57 = vld [vmem:[#allocation2] ss:$2 sm:$0xff]  ;;  %v847_v58 = vld [vmem:[#allocation2 + $0x1] ss:$2 sm:$0xff]  ;;  %v911_v0 = vmax.f32 %v785_v56, %v849_v59 }
  0xff   :  { %724 = vst.msk [vmem:[#allocation2 + $0x28] sm:$0xff] %vm718_vm1, %v482_v43  ;;  %v910_v63 = vmax.f32 %v783_v57, %v847_v58 }
 0x100   :  { %v5577_v8 = vmax.f32 %v911_v0, 0.0 }
 0x101   :  { %v5575_v7 = vmax.f32 %v910_v63, 0.0 }
 0x102   :  { %v977_v16 = vsel %vm718_vm1, %v5577_v8, 0.0 }
 0x103   :  { %v4679_v44 = vpop.f32.mrb[8].mxu0  ;;  %v976_v15 = vsel %vm718_vm1, %v5575_v7, 0.0 }
 0x104   :  { %729 = vst.msk [vmem:[#allocation2 + $0x50] sm:$0xff] %vm718_vm1, %v4679_v44  ;;  %v495_v45 = vpop.f32.mrb[9].mxu0  ;;  %v978_v26 = vadd.f32 %v977_v16, %v976_v15 }
 0x105   :  { %727 = vst.msk [vmem:[#allocation2 + $0x40] sm:$0xff] %vm718_vm1, %v495_v45  ;;  %v4680_v46 = vpop.f32.mrb[10].mxu0  ;;  %v789_v5 = vld [vmem:[#allocation2 + $0x30] ss:$2 sm:$0xff]  ;;  %v853_v6 = vld [vmem:[#allocation2 + $0x31] ss:$2 sm:$0xff] }
 0x106   :  { %730 = vst.msk [vmem:[#allocation2 + $0x58] sm:$0xff] %vm718_vm1, %v4680_v46  ;;  %v498_v47 = vpop.f32.mrb[11].mxu0  ;;  %v787_v60 = vld [vmem:[#allocation2 + $0x20] ss:$2 sm:$0xff]  ;;  %v851_v61 = vld [vmem:[#allocation2 + $0x21] ss:$2 sm:$0xff]  ;;  %v913_v12 = vmax.f32 %v789_v5, %v853_v6 }
 0x107   :  { %728 = vst.msk [vmem:[#allocation2 + $0x48] sm:$0xff] %vm718_vm1, %v498_v47  ;;  %v912_v3 = vmax.f32 %v787_v60, %v851_v61 }
 0x108   :  { %v5590_v25 = vmax.f32 %v913_v12, 0.0 }
 0x109   :  { %v5579_v11 = vmax.f32 %v912_v3, 0.0 }
 0x10a   :  { %v981_v31 = vsel %vm718_vm1, %v5590_v25, 0.0 }
 0x10b   :  { %v4683_v48 = vpop.f32.mrb[12].mxu0  ;;  %v979_v21 = vsel %vm718_vm1, %v5579_v11, 0.0 }
 0x10c   :  { %733 = vst.msk [vmem:[#allocation2 + $0x70] sm:$0xff] %vm718_vm1, %v4683_v48  ;;  %v511_v49 = vpop.f32.mrb[13].mxu0  ;;  %v980_v28 = vadd.f32 %v979_v21, %v978_v26 }
 0x10d   :  { %731 = vst.msk [vmem:[#allocation2 + $0x60] sm:$0xff] %vm718_vm1, %v511_v49  ;;  %v4684_v50 = vpop.f32.mrb[14].mxu0  ;;  %v793_v19 = vld [vmem:[#allocation2 + $0x50] ss:$2 sm:$0xff]  ;;  %v857_v20 = vld [vmem:[#allocation2 + $0x51] ss:$2 sm:$0xff] }
 0x10e   :  { %734 = vst.msk [vmem:[#allocation2 + $0x78] sm:$0xff] %vm718_vm1, %v4684_v50  ;;  %v514_v51 = vpop.f32.mrb[15].mxu0  ;;  %v791_v9 = vld [vmem:[#allocation2 + $0x40] ss:$2 sm:$0xff]  ;;  %v855_v10 = vld [vmem:[#allocation2 + $0x41] ss:$2 sm:$0xff]  ;;  %v915_v29 = vmax.f32 %v793_v19, %v857_v20  ;;  %v982_v39 = vadd.f32 %v981_v31, %v980_v28 }
 0x10f   :  { %732 = vst.msk [vmem:[#allocation2 + $0x68] sm:$0xff] %vm718_vm1, %v514_v51  ;;  %v914_v14 = vmax.f32 %v791_v9, %v855_v10 }
 0x110   :  { %v5601_v41 = vmax.f32 %v915_v29, 0.0 }
 0x111   :  { %v5593_v27 = vmax.f32 %v914_v14, 0.0 }
 0x112   :  { %v985_v49 = vsel %vm718_vm1, %v5601_v41, 0.0 }
 0x113   :  { %v4687_v52 = vpop.f32.mrb[16].mxu0  ;;  %v983_v35 = vsel %vm718_vm1, %v5593_v27, 0.0 }
 0x114   :  { %737 = vst.msk [vmem:[#allocation2 + $0x90] sm:$0xff] %vm718_vm1, %v4687_v52  ;;  %v527_v53 = vpop.f32.mrb[17].mxu0  ;;  %v984_v44 = vadd.f32 %v983_v35, %v982_v39 }
 0x115   :  { %735 = vst.msk [vmem:[#allocation2 + $0x80] sm:$0xff] %vm718_vm1, %v527_v53  ;;  %v4688_v54 = vpop.f32.mrb[18].mxu0  ;;  %v797_v33 = vld [vmem:[#allocation2 + $0x70] ss:$2 sm:$0xff]  ;;  %v861_v34 = vld [vmem:[#allocation2 + $0x71] ss:$2 sm:$0xff] }
 0x116   :  { %738 = vst.msk [vmem:[#allocation2 + $0x98] sm:$0xff] %vm718_vm1, %v4688_v54  ;;  %v530_v55 = vpop.f32.mrb[19].mxu0  ;;  %v795_v23 = vld [vmem:[#allocation2 + $0x60] ss:$2 sm:$0xff]  ;;  %v859_v24 = vld [vmem:[#allocation2 + $0x61] ss:$2 sm:$0xff]  ;;  %v917_v45 = vmax.f32 %v797_v33, %v861_v34  ;;  %v986_v53 = vadd.f32 %v985_v49, %v984_v44 }
 0x117   :  { %736 = vst.msk [vmem:[#allocation2 + $0x88] sm:$0xff] %vm718_vm1, %v530_v55  ;;  %v916_v30 = vmax.f32 %v795_v23, %v859_v24 }
 0x118   :  { %v5611_v55 = vmax.f32 %v917_v45, 0.0 }
 0x119   :  { %v5603_v42 = vmax.f32 %v916_v30, 0.0 }
 0x11b   :  { %v4691_v62 = vpop.f32.mrb[20].mxu0  ;;  %v987_v50 = vsel %vm718_vm1, %v5603_v42, 0.0 }
 0x11c   :  { %741 = vst.msk [vmem:[#allocation2 + $0xb0] sm:$0xff] %vm718_vm1, %v4691_v62  ;;  %v543_v1 = vpop.f32.mrb[21].mxu0  ;;  %v988_v59 = vadd.f32 %v987_v50, %v986_v53 }
 0x11d   :  { %739 = vst.msk [vmem:[#allocation2 + $0xa0] sm:$0xff] %vm718_vm1, %v543_v1  ;;  %v4692_v2 = vpop.f32.mrb[22].mxu0  ;;  %v801_v47 = vld [vmem:[#allocation2 + $0x90] ss:$2 sm:$0xff]  ;;  %v865_v48 = vld [vmem:[#allocation2 + $0x91] ss:$2 sm:$0xff] }
 0x11e   :  { %742 = vst.msk [vmem:[#allocation2 + $0xb8] sm:$0xff] %vm718_vm1, %v4692_v2  ;;  %v546_v4 = vpop.f32.mrb[23].mxu0  ;;  %v799_v36 = vld [vmem:[#allocation2 + $0x80] ss:$2 sm:$0xff]  ;;  %v863_v37 = vld [vmem:[#allocation2 + $0x81] ss:$2 sm:$0xff]  ;;  %v919_v57 = vmax.f32 %v801_v47, %v865_v48 }
 0x11f   :  { %740 = vst.msk [vmem:[#allocation2 + $0xa8] sm:$0xff] %vm718_vm1, %v546_v4  ;;  %v918_v46 = vmax.f32 %v799_v36, %v863_v37  ;;  %v989_v1 = vsel %vm718_vm1, %v5611_v55, 0.0 }
 0x120   :  { %v5623_v5 = vmax.f32 %v919_v57, 0.0  ;;  %v990_v6 = vadd.f32 %v989_v1, %v988_v59 }
 0x121   :  { %v5613_v56 = vmax.f32 %v918_v46, 0.0 }
 0x122   :  { %v993_v16 = vsel %vm718_vm1, %v5623_v5, 0.0 }
 0x123   :  { %v4695_v13 = vpop.f32.mrb[24].mxu0  ;;  %v991_v2 = vsel %vm718_vm1, %v5613_v56, 0.0 }
 0x124   :  { %745 = vst.msk [vmem:[#allocation2 + $0xd0] sm:$0xff] %vm718_vm1, %v4695_v13  ;;  %v559_v17 = vpop.f32.mrb[25].mxu0  ;;  %v992_v12 = vadd.f32 %v991_v2, %v990_v6 }
 0x125   :  { %743 = vst.msk [vmem:[#allocation2 + $0xc0] sm:$0xff] %vm718_vm1, %v559_v17  ;;  %v4696_v18 = vpop.f32.mrb[26].mxu0  ;;  %v805_v63 = vld [vmem:[#allocation2 + $0xb0] ss:$2 sm:$0xff]  ;;  %v869_v0 = vld [vmem:[#allocation2 + $0xb1] ss:$2 sm:$0xff] }
 0x126   :  { %746 = vst.msk [vmem:[#allocation2 + $0xd8] sm:$0xff] %vm718_vm1, %v4696_v18  ;;  %v562_v22 = vpop.f32.mrb[27].mxu0  ;;  %v803_v51 = vld [vmem:[#allocation2 + $0xa0] ss:$2 sm:$0xff]  ;;  %v867_v52 = vld [vmem:[#allocation2 + $0xa1] ss:$2 sm:$0xff]  ;;  %v921_v10 = vmax.f32 %v805_v63, %v869_v0  ;;  %v994_v26 = vadd.f32 %v993_v16, %v992_v12 }
 0x127   :  { %744 = vst.msk [vmem:[#allocation2 + $0xc8] sm:$0xff] %vm718_vm1, %v562_v22  ;;  %v920_v60 = vmax.f32 %v803_v51, %v867_v52 }
 0x128   :  { %v5633_v21 = vmax.f32 %v921_v10, 0.0 }
 0x129   :  { %v5625_v9 = vmax.f32 %v920_v60, 0.0 }
 0x12b   :  { %v4699_v32 = vpop.f32.mrb[28].mxu0  ;;  %v995_v20 = vsel %vm718_vm1, %v5625_v9, 0.0 }
 0x12c   :  { %749 = vst.msk [vmem:[#allocation2 + $0xf0] sm:$0xff] %vm718_vm1, %v4699_v32  ;;  %v575_v38 = vpop.f32.mrb[29].mxu0  ;;  %v996_v29 = vadd.f32 %v995_v20, %v994_v26  ;;  %v997_v32 = vsel %vm718_vm1, %v5633_v21, 0.0 }
 0x12d   :  { %747 = vst.msk [vmem:[#allocation2 + $0xe0] sm:$0xff] %vm718_vm1, %v575_v38  ;;  %v4700_v40 = vpop.f32.mrb[30].mxu0  ;;  %v809_v17 = vld [vmem:[#allocation2 + $0xd0] ss:$2 sm:$0xff]  ;;  %v873_v18 = vld [vmem:[#allocation2 + $0xd1] ss:$2 sm:$0xff] }
 0x12e   :  { %750 = vst.msk [vmem:[#allocation2 + $0xf8] sm:$0xff] %vm718_vm1, %v4700_v40  ;;  %v578_v43 = vpop.f32.mrb[31].mxu0  ;;  %v807_v3 = vld [vmem:[#allocation2 + $0xc0] ss:$2 sm:$0xff]  ;;  %v871_v4 = vld [vmem:[#allocation2 + $0xc1] ss:$2 sm:$0xff]  ;;  %v923_v30 = vmax.f32 %v809_v17, %v873_v18  ;;  %v998_v40 = vadd.f32 %v997_v32, %v996_v29 }
 0x12f   :  { %748 = vst.msk [vmem:[#allocation2 + $0xe8] sm:$0xff] %vm718_vm1, %v578_v43  ;;  %v922_v13 = vmax.f32 %v807_v3, %v871_v4 }
 0x130   :  { %v5644_v43 = vmax.f32 %v923_v30, 0.0 }
 0x131   :  { %v5636_v28 = vmax.f32 %v922_v13, 0.0 }
 0x132   :  { %v1001_v52 = vsel %vm718_vm1, %v5644_v43, 0.0 }
 0x133   :  { %v4703_v54 = vpop.f32.mrb[32].mxu0  ;;  %v999_v33 = vsel %vm718_vm1, %v5636_v28, 0.0 }
 0x134   :  { %753 = vst.msk [vmem:[#allocation2 + $0x110] sm:$0xff] %vm718_vm1, %v4703_v54  ;;  %v591_v58 = vpop.f32.mrb[33].mxu0  ;;  %v1000_v47 = vadd.f32 %v999_v33, %v998_v40 }
 0x135   :  { %751 = vst.msk [vmem:[#allocation2 + $0x100] sm:$0xff] %vm718_vm1, %v591_v58  ;;  %v4704_v61 = vpop.f32.mrb[34].mxu0  ;;  %v813_v34 = vld [vmem:[#allocation2 + $0xf0] ss:$2 sm:$0xff]  ;;  %v877_v35 = vld [vmem:[#allocation2 + $0xf1] ss:$2 sm:$0xff] }
 0x136   :  { %754 = vst.msk [vmem:[#allocation2 + $0x118] sm:$0xff] %vm718_vm1, %v4704_v61  ;;  %v594_v62 = vpop.f32.mrb[35].mxu0  ;;  %v811_v22 = vld [vmem:[#allocation2 + $0xe0] ss:$2 sm:$0xff]  ;;  %v875_v23 = vld [vmem:[#allocation2 + $0xe1] ss:$2 sm:$0xff]  ;;  %v925_v48 = vmax.f32 %v813_v34, %v877_v35  ;;  %v1002_v58 = vadd.f32 %v1001_v52, %v1000_v47 }
 0x137   :  { %752 = vst.msk [vmem:[#allocation2 + $0x108] sm:$0xff] %vm718_vm1, %v594_v62  ;;  %v924_v31 = vmax.f32 %v811_v22, %v875_v23 }
 0x138   :  { %v5655_v59 = vmax.f32 %v925_v48, 0.0 }
 0x139   :  { %v5646_v44 = vmax.f32 %v924_v31, 0.0 }
 0x13a   :  { %v1005_v4 = vsel %vm718_vm1, %v5655_v59, 0.0 }
 0x13b   :  { %v4707_v14 = vpop.f32.mrb[36].mxu0  ;;  %v1003_v53 = vsel %vm718_vm1, %v5646_v44, 0.0 }
 0x13c   :  { %757 = vst.msk [vmem:[#allocation2 + $0x130] sm:$0xff] %vm718_vm1, %v4707_v14  ;;  %v607_v15 = vpop.f32.mrb[37].mxu0  ;;  %v1004_v0 = vadd.f32 %v1003_v53, %v1002_v58 }
 0x13d   :  { %755 = vst.msk [vmem:[#allocation2 + $0x120] sm:$0xff] %vm718_vm1, %v607_v15  ;;  %v4708_v19 = vpop.f32.mrb[38].mxu0  ;;  %v817_v50 = vld [vmem:[#allocation2 + $0x110] ss:$2 sm:$0xff]  ;;  %v881_v51 = vld [vmem:[#allocation2 + $0x111] ss:$2 sm:$0xff] }
 0x13e   :  { %758 = vst.msk [vmem:[#allocation2 + $0x138] sm:$0xff] %vm718_vm1, %v4708_v19  ;;  %v610_v24 = vpop.f32.mrb[39].mxu0  ;;  %v815_v37 = vld [vmem:[#allocation2 + $0x100] ss:$2 sm:$0xff]  ;;  %v879_v38 = vld [vmem:[#allocation2 + $0x101] ss:$2 sm:$0xff]  ;;  %v927_v60 = vmax.f32 %v817_v50, %v881_v51  ;;  %v1006_v16 = vadd.f32 %v1005_v4, %v1004_v0 }
 0x13f   :  { %756 = vst.msk [vmem:[#allocation2 + $0x128] sm:$0xff] %vm718_vm1, %v610_v24  ;;  %v926_v49 = vmax.f32 %v815_v37, %v879_v38 }
 0x140   :  { %v5664_v6 = vmax.f32 %v927_v60, 0.0 }
 0x141   :  { %v5657_v61 = vmax.f32 %v926_v49, 0.0 }
 0x142   :  { %v1009_v23 = vsel %vm718_vm1, %v5664_v6, 0.0 }
 0x143   :  { %v4711_v36 = vpop.f32.mrb[40].mxu0  ;;  %v1007_v10 = vsel %vm718_vm1, %v5657_v61, 0.0 }
 0x144   :  { %761 = vst.msk [vmem:[#allocation2 + $0x150] sm:$0xff] %vm718_vm1, %v4711_v36  ;;  %v623_v39 = vpop.f32.mrb[41].mxu0  ;;  %v1008_v18 = vadd.f32 %v1007_v10, %v1006_v16 }
 0x145   :  { %759 = vst.msk [vmem:[#allocation2 + $0x140] sm:$0xff] %vm718_vm1, %v623_v39  ;;  %v4712_v45 = vpop.f32.mrb[42].mxu0  ;;  %v821_v12 = vld [vmem:[#allocation2 + $0x130] ss:$2 sm:$0xff]  ;;  %v885_v13 = vld [vmem:[#allocation2 + $0x131] ss:$2 sm:$0xff] }
 0x146   :  { %762 = vst.msk [vmem:[#allocation2 + $0x158] sm:$0xff] %vm718_vm1, %v4712_v45  ;;  %v626_v46 = vpop.f32.mrb[43].mxu0  ;;  %v819_v54 = vld [vmem:[#allocation2 + $0x120] ss:$2 sm:$0xff]  ;;  %v883_v57 = vld [vmem:[#allocation2 + $0x121] ss:$2 sm:$0xff]  ;;  %v929_v19 = vmax.f32 %v821_v12, %v885_v13  ;;  %v1010_v35 = vadd.f32 %v1009_v23, %v1008_v18 }
 0x147   :  { %760 = vst.msk [vmem:[#allocation2 + $0x148] sm:$0xff] %vm718_vm1, %v626_v46  ;;  %v928_v1 = vmax.f32 %v819_v54, %v883_v57 }
 0x148   :  { %v5678_v36 = vmax.f32 %v929_v19, 0.0 }
 0x149   :  { %v5669_v17 = vmax.f32 %v928_v1, 0.0 }
 0x14a   :  { %v1013_v45 = vsel %vm718_vm1, %v5678_v36, 0.0 }
 0x14b   :  { %v4715_v62 = vpop.f32.mrb[44].mxu0  ;;  %v1011_v26 = vsel %vm718_vm1, %v5669_v17, 0.0 }
 0x14c   :  { %765 = vst.msk [vmem:[#allocation2 + $0x170] sm:$0xff] %vm718_vm1, %v4715_v62  ;;  %v639_v63 = vpop.f32.mrb[45].mxu0  ;;  %v1012_v38 = vadd.f32 %v1011_v26, %v1010_v35 }
 0x14d   :  { %763 = vst.msk [vmem:[#allocation2 + $0x160] sm:$0xff] %vm718_vm1, %v639_v63  ;;  %v4716_v2 = vpop.f32.mrb[46].mxu0  ;;  %v825_v29 = vld [vmem:[#allocation2 + $0x150] ss:$2 sm:$0xff]  ;;  %v889_v30 = vld [vmem:[#allocation2 + $0x151] ss:$2 sm:$0xff] }
 0x14e   :  { %766 = vst.msk [vmem:[#allocation2 + $0x178] sm:$0xff] %vm718_vm1, %v4716_v2  ;;  %v642_v3 = vpop.f32.mrb[47].mxu0  ;;  %v823_v14 = vld [vmem:[#allocation2 + $0x140] ss:$2 sm:$0xff]  ;;  %v887_v15 = vld [vmem:[#allocation2 + $0x141] ss:$2 sm:$0xff]  ;;  %v931_v39 = vmax.f32 %v825_v29, %v889_v30  ;;  %v1014_v51 = vadd.f32 %v1013_v45, %v1012_v38 }
 0x14f   :  { %764 = vst.msk [vmem:[#allocation2 + $0x168] sm:$0xff] %vm718_vm1, %v642_v3  ;;  %v930_v20 = vmax.f32 %v823_v14, %v887_v15 }
 0x150   :  { %v5688_v52 = vmax.f32 %v931_v39, 0.0 }
 0x151   :  { %v5680_v37 = vmax.f32 %v930_v20, 0.0 }
 0x152   :  { %v1017_v1 = vsel %vm718_vm1, %v5688_v52, 0.0 }
 0x153   :  { %v4719_v22 = vpop.f32.mrb[48].mxu0  ;;  %v1015_v46 = vsel %vm718_vm1, %v5680_v37, 0.0 }
 0x154   :  { %769 = vst.msk [vmem:[#allocation2 + $0x190] sm:$0xff] %vm718_vm1, %v4719_v22  ;;  %v655_v24 = vpop.f32.mrb[49].mxu0  ;;  %v1016_v62 = vadd.f32 %v1015_v46, %v1014_v51 }
 0x155   :  { %767 = vst.msk [vmem:[#allocation2 + $0x180] sm:$0xff] %vm718_vm1, %v655_v24  ;;  %v4720_v31 = vpop.f32.mrb[50].mxu0  ;;  %v829_v48 = vld [vmem:[#allocation2 + $0x170] ss:$2 sm:$0xff]  ;;  %v893_v49 = vld [vmem:[#allocation2 + $0x171] ss:$2 sm:$0xff] }
 0x156   :  { %v827_v32 = vld [vmem:[#allocation2 + $0x160] ss:$2 sm:$0xff]  ;;  %v891_v33 = vld [vmem:[#allocation2 + $0x161] ss:$2 sm:$0xff]  ;;  %770 = vst.msk [vmem:[#allocation2 + $0x198] sm:$0xff] %vm718_vm1, %v4720_v31  ;;  %v658_v34 = vpop.f32.mrb[51].mxu0  ;;  %v933_v63 = vmax.f32 %v829_v48, %v893_v49  ;;  %v1018_v10 = vadd.f32 %v1017_v1, %v1016_v62 }
 0x157   :  { %768 = vst.msk [vmem:[#allocation2 + $0x188] sm:$0xff] %vm718_vm1, %v658_v34  ;;  %v932_v40 = vmax.f32 %v827_v32, %v891_v33 }
 0x158   :  { %v5699_v12 = vmax.f32 %v933_v63, 0.0 }
 0x159   :  { %v5690_v53 = vmax.f32 %v932_v40, 0.0 }
 0x15a   :  { %v1021_v24 = vsel %vm718_vm1, %v5699_v12, 0.0 }
 0x15b   :  { %v4723_v47 = vpop.f32.mrb[52].mxu0  ;;  %v1019_v2 = vsel %vm718_vm1, %v5690_v53, 0.0 }
 0x15c   :  { %773 = vst.msk [vmem:[#allocation2 + $0x1b0] sm:$0xff] %vm718_vm1, %v4723_v47  ;;  %v671_v50 = vpop.f32.mrb[53].mxu0  ;;  %v1020_v18 = vadd.f32 %v1019_v2, %v1018_v10 }
 0x15d   :  { %771 = vst.msk [vmem:[#allocation2 + $0x1a0] sm:$0xff] %vm718_vm1, %v671_v50  ;;  %v4724_v54 = vpop.f32.mrb[54].mxu0  ;;  %v833_v3 = vld [vmem:[#allocation2 + $0x190] ss:$2 sm:$0xff]  ;;  %v897_v4 = vld [vmem:[#allocation2 + $0x191] ss:$2 sm:$0xff] }
 0x15e   :  { %v831_v57 = vld [vmem:[#allocation2 + $0x180] ss:$2 sm:$0xff]  ;;  %v895_v58 = vld [vmem:[#allocation2 + $0x181] ss:$2 sm:$0xff]  ;;  %774 = vst.msk [vmem:[#allocation2 + $0x1b8] sm:$0xff] %vm718_vm1, %v4724_v54  ;;  %v674_v60 = vpop.f32.mrb[55].mxu0  ;;  %v935_v15 = vmax.f32 %v833_v3, %v897_v4  ;;  %v1022_v33 = vadd.f32 %v1021_v24, %v1020_v18 }
 0x15f   :  { %v934_v0 = vmax.f32 %v831_v57, %v895_v58  ;;  %772 = vst.msk [vmem:[#allocation2 + $0x1a8] sm:$0xff] %vm718_vm1, %v674_v60 }
 0x160   :  { %v5711_v30 = vmax.f32 %v935_v15, 0.0 }
 0x161   :  { %v5701_v13 = vmax.f32 %v934_v0, 0.0 }
 0x162   :  { %v1025_v40 = vsel %vm718_vm1, %v5711_v30, 0.0 }
 0x163   :  { %v4727_v14 = vpop.f32.mrb[56].mxu0  ;;  %v1023_v26 = vsel %vm718_vm1, %v5701_v13, 0.0 }
 0x164   :  { %777 = vst.msk [vmem:[#allocation2 + $0x1d0] sm:$0xff] %vm718_vm1, %v4727_v14  ;;  %v687_v16 = vpop.f32.mrb[57].mxu0  ;;  %v1024_v35 = vadd.f32 %v1023_v26, %v1022_v33 }
 0x165   :  { %775 = vst.msk [vmem:[#allocation2 + $0x1c0] sm:$0xff] %vm718_vm1, %v687_v16  ;;  %v4728_v19 = vpop.f32.mrb[58].mxu0  ;;  %v837_v31 = vld [vmem:[#allocation2 + $0x1b0] ss:$2 sm:$0xff]  ;;  %v901_v32 = vld [vmem:[#allocation2 + $0x1b1] ss:$2 sm:$0xff] }
 0x166   :  { %v835_v20 = vld [vmem:[#allocation2 + $0x1a0] ss:$2 sm:$0xff]  ;;  %v899_v22 = vld [vmem:[#allocation2 + $0x1a1] ss:$2 sm:$0xff]  ;;  %778 = vst.msk [vmem:[#allocation2 + $0x1d8] sm:$0xff] %vm718_vm1, %v4728_v19  ;;  %v690_v23 = vpop.f32.mrb[59].mxu0  ;;  %v937_v38 = vmax.f32 %v837_v31, %v901_v32  ;;  %v1026_v57 = vadd.f32 %v1025_v40, %v1024_v35 }
 0x167   :  { %v936_v29 = vmax.f32 %v835_v20, %v899_v22  ;;  %776 = vst.msk [vmem:[#allocation2 + $0x1c8] sm:$0xff] %vm718_vm1, %v690_v23 }
 0x168   :  { %v5722_v58 = vmax.f32 %v937_v38, 0.0 }
 0x169   :  { %v5713_v34 = vmax.f32 %v936_v29, 0.0 }
 0x16a   :  { %v1029_v1 = vsel %vm718_vm1, %v5722_v58, 0.0 }
 0x16b   :  { %v4731_v39 = vpop.f32.mrb[60].mxu0  ;;  %v1027_v46 = vsel %vm718_vm1, %v5713_v34, 0.0 }
 0x16c   :  { %781 = vst.msk [vmem:[#allocation2 + $0x1f0] sm:$0xff] %vm718_vm1, %v4731_v39  ;;  %v703_v45 = vpop.f32.mrb[61].mxu0  ;;  %v1028_v62 = vadd.f32 %v1027_v46, %v1026_v57 }
 0x16d   :  { %v841_v47 = vld [vmem:[#allocation2 + $0x1d0] ss:$2 sm:$0xff]  ;;  %v905_v48 = vld [vmem:[#allocation2 + $0x1d1] ss:$2 sm:$0xff]  ;;  %779 = vst.msk [vmem:[#allocation2 + $0x1e0] sm:$0xff] %vm718_vm1, %v703_v45  ;;  %v4732_v49 = vpop.f32.mrb[62].mxu0 }
 0x16e   :  { %v839_v50 = vld [vmem:[#allocation2 + $0x1c0] ss:$2 sm:$0xff]  ;;  %v903_v51 = vld [vmem:[#allocation2 + $0x1c1] ss:$2 sm:$0xff]  ;;  %782 = vst.msk [vmem:[#allocation2 + $0x1f8] sm:$0xff] %vm718_vm1, %v4732_v49  ;;  %v706_v54 = vpop.f32.mrb[63].mxu0  ;;  %v939_v63 = vmax.f32 %v841_v47, %v905_v48  ;;  %v1030_v3 = vadd.f32 %v1029_v1, %v1028_v62 }
 0x16f   :  { %v938_v60 = vmax.f32 %v839_v50, %v903_v51  ;;  %780 = vst.msk [vmem:[#allocation2 + $0x1e8] sm:$0xff] %vm718_vm1, %v706_v54 }
 0x170   :  { %v5731_v4 = vmax.f32 %v939_v63, 0.0 }
 0x171   :  { %v5725_v0 = vmax.f32 %v938_v60, 0.0 }
 0x172   :  { %v1033_v22 = vsel %vm718_vm1, %v5731_v4, 0.0 }
 0x173   :  { %v1031_v2 = vsel %vm718_vm1, %v5725_v0, 0.0 }
 0x174   :  { %v1032_v19 = vadd.f32 %v1031_v2, %v1030_v3 }
 0x175   :  { %v845_v10 = vld [vmem:[#allocation2 + $0x1f0] ss:$2 sm:$0xff]  ;;  %v909_v14 = vld [vmem:[#allocation2 + $0x1f1] ss:$2 sm:$0xff] }
 0x176   :  { %v941_v15 = vmax.f32 %v845_v10, %v909_v14  ;;  %v843_v16 = vld [vmem:[#allocation2 + $0x1e0] ss:$2 sm:$0xff]  ;;  %v907_v18 = vld [vmem:[#allocation2 + $0x1e1] ss:$2 sm:$0xff]  ;;  %v1034_v26 = vadd.f32 %v1033_v22, %v1032_v19 }
 0x177   :  { %v940_v20 = vmax.f32 %v843_v16, %v907_v18 }
 0x178   :  { %v5735_v23 = vmax.f32 %v941_v15, 0.0 }
 0x179   :  { %v5737_v24 = vmax.f32 %v940_v20, 0.0 }
 0x17a   :  { %v1037_v32 = vsel %vm718_vm1, %v5735_v23, 0.0 }
 0x17b   :  { %v1035_v29 = vsel %vm718_vm1, %v5737_v24, 0.0 }
 0x17c   :  { %v1036_v31 = vadd.f32 %v1035_v29, %v1034_v26 }
 0x17e   :  { %v1038_v33 = vadd.f32 %v1037_v32, %v1036_v31 }
 0x180   :  { %v1039_v35 = vrot.slane %v1038_v33, 4 }
 0x182   :  { %v1040_v38 = vadd.f32 %v1039_v35, %v1038_v33 }
 0x184   :  { %v1041_v39 = vrot.slane %v1040_v38, 2 }
 0x186   :  { %v1042_v40 = vadd.f32 %v1041_v39, %v1040_v38 }
 0x188   :  { %v1043_v45 = vrot.slane %v1042_v40, 1 }
 0x18a   :  { %v1044_v46 = vadd.f32 %v1043_v45, %v1042_v40 }
 0x18c   :  { %v5743_v47 = vmul.f32 0.00390625, %v1044_v46 }
 0x18e   :  { %v5747_v48 = vsub.f32 %v5575_v7, %v5743_v47  ;;  %v5751_v49 = vsub.f32 %v5577_v8, %v5743_v47  ;;  %v5755_v50 = vsub.f32 %v5579_v11, %v5743_v47  ;;  %v5759_v51 = vsub.f32 %v5590_v25, %v5743_v47 }
 0x18f   :  { %v5767_v7 = vsub.f32 %v5593_v27, %v5743_v47  ;;  %v5773_v11 = vsub.f32 %v5601_v41, %v5743_v47  ;;  %v5781_v1 = vsub.f32 %v5603_v42, %v5743_v47  ;;  %v5788_v41 = vsub.f32 %v5611_v55, %v5743_v47 }
 0x190   :  { %v1078_v54 = vmul.f32 %v5747_v48, %v5747_v48  ;;  %v1079_v57 = vmul.f32 %v5751_v49, %v5751_v49  ;;  %v1080_v8 = vmul.f32 %v5755_v50, %v5755_v50  ;;  %v1081_v25 = vmul.f32 %v5759_v51, %v5759_v51 }
 0x191   :  { %v1082_v27 = vmul.f32 %v5767_v7, %v5767_v7  ;;  %v1083_v10 = vmul.f32 %v5773_v11, %v5773_v11  ;;  %v5795_v42 = vsub.f32 %v5613_v56, %v5743_v47  ;;  %v1084_v16 = vmul.f32 %v5781_v1, %v5781_v1 }
 0x192   :  { %v1110_v60 = vsel %vm718_vm1, %v1078_v54, 0.0  ;;  %v1111_v62 = vsel %vm718_vm1, %v1079_v57, 0.0  ;;  %v1113_v2 = vsel %vm718_vm1, %v1080_v8, 0.0  ;;  %v1115_v14 = vsel %vm718_vm1, %v1081_v25, 0.0 }
 0x193   :  { %v1112_v63 = vadd.f32 %v1111_v62, %v1110_v60  ;;  %v1117_v18 = vsel %vm718_vm1, %v1082_v27, 0.0  ;;  %v5802_v55 = vsub.f32 %v5623_v5, %v5743_v47  ;;  %v1085_v20 = vmul.f32 %v5788_v41, %v5788_v41 }
 0x194   :  { %v1119_v22 = vsel %vm718_vm1, %v1083_v10, 0.0  ;;  %v5809_v56 = vsub.f32 %v5625_v9, %v5743_v47  ;;  %v1086_v29 = vmul.f32 %v5795_v42, %v5795_v42  ;;  %v1121_v31 = vsel %vm718_vm1, %v1084_v16, 0.0 }
 0x195   :  { %v1114_v3 = vadd.f32 %v1113_v2, %v1112_v63  ;;  %v5816_v5 = vsub.f32 %v5633_v21, %v5743_v47  ;;  %v1087_v33 = vmul.f32 %v5802_v55, %v5802_v55  ;;  %v1123_v35 = vsel %vm718_vm1, %v1085_v20, 0.0 }
 0x196   :  { %v5823_v9 = vsub.f32 %v5636_v28, %v5743_v47  ;;  %v1088_v39 = vmul.f32 %v5809_v56, %v5809_v56  ;;  %v1125_v40 = vsel %vm718_vm1, %v1086_v29, 0.0  ;;  %v5830_v21 = vsub.f32 %v5644_v43, %v5743_v47 }
 0x197   :  { %v1116_v15 = vadd.f32 %v1115_v14, %v1114_v3  ;;  %v1089_v46 = vmul.f32 %v5816_v5, %v5816_v5  ;;  %v1127_v54 = vsel %vm718_vm1, %v1087_v33, 0.0  ;;  %v5837_v28 = vsub.f32 %v5646_v44, %v5743_v47 }
 0x198   :  { %v1090_v8 = vmul.f32 %v5823_v9, %v5823_v9  ;;  %v1129_v25 = vsel %vm718_vm1, %v1088_v39, 0.0  ;;  %v5844_v43 = vsub.f32 %v5655_v59, %v5743_v47  ;;  %v1091_v62 = vmul.f32 %v5830_v21, %v5830_v21 }
 0x199   :  { %v1118_v19 = vadd.f32 %v1117_v18, %v1116_v15  ;;  %v1131_v63 = vsel %vm718_vm1, %v1089_v46, 0.0  ;;  %v5851_v44 = vsub.f32 %v5657_v61, %v5743_v47  ;;  %v1092_v2 = vmul.f32 %v5837_v28, %v5837_v28 }
 0x19a   :  { %v1133_v3 = vsel %vm718_vm1, %v1090_v8, 0.0  ;;  %v5858_v59 = vsub.f32 %v5664_v6, %v5743_v47  ;;  %v1093_v14 = vmul.f32 %v5844_v43, %v5844_v43  ;;  %v1135_v15 = vsel %vm718_vm1, %v1091_v62, 0.0 }
 0x19b   :  { %v1120_v26 = vadd.f32 %v1119_v22, %v1118_v19  ;;  %v5865_v61 = vsub.f32 %v5669_v17, %v5743_v47  ;;  %v1094_v18 = vmul.f32 %v5851_v44, %v5851_v44  ;;  %v1137_v19 = vsel %vm718_vm1, %v1092_v2, 0.0 }
 0x19c   :  { %v5872_v6 = vsub.f32 %v5678_v36, %v5743_v47  ;;  %v1095_v22 = vmul.f32 %v5858_v59, %v5858_v59  ;;  %v5879_v17 = vsub.f32 %v5680_v37, %v5743_v47  ;;  %v5886_v36 = vsub.f32 %v5688_v52, %v5743_v47 }
 0x19d   :  { %v1122_v32 = vadd.f32 %v1121_v31, %v1120_v26  ;;  %v1139_v26 = vsel %vm718_vm1, %v1093_v14, 0.0  ;;  %v1096_v31 = vmul.f32 %v5865_v61, %v5865_v61  ;;  %v5893_v37 = vsub.f32 %v5690_v53, %v5743_v47 }
 0x19e   :  { %v5900_v52 = vsub.f32 %v5699_v12, %v5743_v47  ;;  %v5907_v53 = vsub.f32 %v5701_v13, %v5743_v47  ;;  %v5914_v12 = vsub.f32 %v5711_v30, %v5743_v47  ;;  %v5921_v13 = vsub.f32 %v5713_v34, %v5743_v47 }
 0x19f   :  { %v1124_v38 = vadd.f32 %v1123_v35, %v1122_v32  ;;  %v1141_v32 = vsel %vm718_vm1, %v1094_v18, 0.0  ;;  %v1097_v35 = vmul.f32 %v5872_v6, %v5872_v6  ;;  %v5928_v30 = vsub.f32 %v5722_v58, %v5743_v47 }
 0x1a0   :  { %v5935_v34 = vsub.f32 %v5725_v0, %v5743_v47  ;;  %v5942_v58 = vsub.f32 %v5731_v4, %v5743_v47  ;;  %v5949_v0 = vsub.f32 %v5737_v24, %v5743_v47  ;;  %v5956_v4 = vsub.f32 %v5735_v23, %v5743_v47 }
 0x1a1   :  { %v1126_v45 = vadd.f32 %v1125_v40, %v1124_v38  ;;  %v1143_v38 = vsel %vm718_vm1, %v1095_v22, 0.0  ;;  %v1098_v40 = vmul.f32 %v5879_v17, %v5879_v17 }
 0x1a2   :  { %v1108_v24 = vmul.f32 %v5949_v0, %v5949_v0 }
 0x1a3   :  { %v1128_v57 = vadd.f32 %v1127_v54, %v1126_v45  ;;  %v1145_v45 = vsel %vm718_vm1, %v1096_v31, 0.0  ;;  %v1099_v54 = vmul.f32 %v5886_v36, %v5886_v36 }
 0x1a4   :  { %v1169_v23 = vsel %vm718_vm1, %v1108_v24, 0.0 }
 0x1a5   :  { %v1130_v60 = vadd.f32 %v1129_v25, %v1128_v57  ;;  %v1147_v57 = vsel %vm718_vm1, %v1097_v35, 0.0  ;;  %v1100_v25 = vmul.f32 %v5893_v37, %v5893_v37 }
 0x1a7   :  { %v1132_v27 = vadd.f32 %v1131_v63, %v1130_v60  ;;  %v1149_v60 = vsel %vm718_vm1, %v1098_v40, 0.0  ;;  %v1101_v63 = vmul.f32 %v5900_v52, %v5900_v52 }
 0x1a9   :  { %v1134_v10 = vadd.f32 %v1133_v3, %v1132_v27  ;;  %v1151_v27 = vsel %vm718_vm1, %v1099_v54, 0.0  ;;  %v1102_v3 = vmul.f32 %v5907_v53, %v5907_v53  ;;  %v1109_v54 = vmul.f32 %v5956_v4, %v5956_v4 }
 0x1ab   :  { %v1136_v16 = vadd.f32 %v1135_v15, %v1134_v10  ;;  %v1153_v10 = vsel %vm718_vm1, %v1100_v25, 0.0  ;;  %v1103_v15 = vmul.f32 %v5914_v12, %v5914_v12  ;;  %v1171_v25 = vsel %vm718_vm1, %v1109_v54, 0.0 }
 0x1ad   :  { %v1138_v20 = vadd.f32 %v1137_v19, %v1136_v16  ;;  %v1155_v16 = vsel %vm718_vm1, %v1101_v63, 0.0  ;;  %v1104_v19 = vmul.f32 %v5921_v13, %v5921_v13 }
 0x1af   :  { %v1140_v29 = vadd.f32 %v1139_v26, %v1138_v20  ;;  %v1157_v20 = vsel %vm718_vm1, %v1102_v3, 0.0  ;;  %v1105_v26 = vmul.f32 %v5928_v30, %v5928_v30 }
 0x1b1   :  { %v1142_v33 = vadd.f32 %v1141_v32, %v1140_v29  ;;  %v1159_v29 = vsel %vm718_vm1, %v1103_v15, 0.0  ;;  %v1106_v32 = vmul.f32 %v5935_v34, %v5935_v34 }
 0x1b3   :  { %v1144_v39 = vadd.f32 %v1143_v38, %v1142_v33  ;;  %v1161_v33 = vsel %vm718_vm1, %v1104_v19, 0.0  ;;  %v1107_v38 = vmul.f32 %v5942_v58, %v5942_v58  ;;  %v942_v19 = vld [vmem:[%s7702_s5] sm:$0x1]  ;;  %s7709_s5 = sld [smem:[#allocation18_spill]] }
 0x1b5   :  { %v1146_v46 = vadd.f32 %v1145_v45, %v1144_v39  ;;  %v1163_v39 = vsel %vm718_vm1, %v1105_v26, 0.0  ;;  %v1165_v45 = vsel %vm718_vm1, %v1106_v32, 0.0  ;;  %v5986_v32 = vld [vmem:[%s7704_s28] ss:$0 sm:$0xff] }
 0x1b7   :  { %v1148_v8 = vadd.f32 %v1147_v57, %v1146_v46  ;;  %v1167_v57 = vsel %vm718_vm1, %v1107_v38, 0.0 }
 0x1b9   :  { %v1150_v62 = vadd.f32 %v1149_v60, %v1148_v8 }
 0x1bb   :  { %v1152_v2 = vadd.f32 %v1151_v27, %v1150_v62 }
 0x1bd   :  { %v1154_v14 = vadd.f32 %v1153_v10, %v1152_v2 }
 0x1bf   :  { %v1156_v18 = vadd.f32 %v1155_v16, %v1154_v14  ;;  %v1184_v16 = vlaneseq }
 0x1c1   :  { %v1158_v22 = vadd.f32 %v1157_v20, %v1156_v18  ;;  %v5969_v18 = vshrl.u32 %v1184_v16, 7  ;;  %v5180_v20 = vld [vmem:[%s7703_s2] sm:$0xff]  }
 0x1c2   :  { %4733 = vmatprep.subr.bf16.mxu1 %v5180_v20 }
 0x1c3   :  { %v1160_v31 = vadd.f32 %v1159_v29, %v1158_v22  ;;  %v5978_v22 = vsub.s32 0, %v5969_v18  ;;  %4734 = vmatpush3.bf16.msra.mxu1 %v5180_v20  ;;  %vm1517_vm2 = vcmp.lt.s32.totalorder %v5969_v18, 7  ;;  %vm1388_vm3 = vcmp.lt.s32.totalorder %v5969_v18, 1 }
 0x1c5   :  { %v1162_v35 = vadd.f32 %v1161_v33, %v1160_v31  ;;  %v5181_v33 = vld [vmem:[%s7703_s2 + $0x8] sm:$0xff]  }
 0x1c6   :  { %4735 = vmatprep.subr.bf16.mxu1 %v5181_v33 }
 0x1c7   :  { %v1164_v40 = vadd.f32 %v1163_v39, %v1162_v35  ;;  %4736 = vmatpush3.bf16.msra.mxu1 %v5181_v33 }
 0x1c9   :  { %v1166_v46 = vadd.f32 %v1165_v45, %v1164_v40 }
 0x1cb   :  { %v1168_v8 = vadd.f32 %v1167_v57, %v1166_v46 }
 0x1cd   :  { %v1170_v47 = vadd.f32 %v1169_v23, %v1168_v8  ;;  %v5182_v23 = vld [vmem:[%s7703_s2 + $0x10] sm:$0xff]   ;;  %s5286_s2 = smov 64  }
 0x1ce   :  { %4737 = vmatprep.subr.bf16.mxu1 %v5182_v23 }
 0x1cf   :  { %v1172_v60 = vadd.f32 %v1171_v25, %v1170_v47  ;;  %4738 = vmatpush3.bf16.msra.mxu1 %v5182_v23 }
 0x1d1   :  { %v1173_v62 = vrot.slane %v1172_v60, 4 }
 0x1d3   :  { %v1174_v63 = vadd.f32 %v1173_v62, %v1172_v60 }
 0x1d5   :  { %v1175_v27 = vrot.slane %v1174_v63, 2 }
 0x1d7   :  { %v1176_v2 = vadd.f32 %v1175_v27, %v1174_v63 }
 0x1d9   :  { %v1177_v3 = vrot.slane %v1176_v2, 1 }
 0x1db   :  { %v1178_v10 = vadd.f32 %v1177_v3, %v1176_v2 }
 0x1dd   :  { %v1179_v14 = vmul.f32 0.00390625, %v1178_v10 }
 0x1df   :  { %v1180_v15 = vadd.f32 1e-05, %v1179_v14 }
 0x1e1   :  { %5244 = vrsqrt.f32 %v1180_v15 }
 0x1eb   :  { %v5245_v26 = vpop.eup %5244 }
 0x1ec   :  { %v1182_v29 = vmul.f32 %v5245_v26, %v942_v19 }
 0x1ee   :  { %v5981_v31 = vrot.slane %v1182_v29, %v5978_v22 }
 0x1f0   :  { %v1189_v35 = vmul.f32 %v5981_v31, %v5747_v48  ;;  %v1190_v38 = vmul.f32 %v5981_v31, %v5751_v49  ;;  %v1191_v39 = vmul.f32 %v5981_v31, %v5755_v50  ;;  %v1192_v40 = vmul.f32 %v5981_v31, %v5759_v51 }
 0x1f1   :  { %v1193_v24 = vmul.f32 %v5981_v31, %v5767_v7  ;;  %v1194_v45 = vmul.f32 %v5981_v31, %v5773_v11  ;;  %v1195_v46 = vmul.f32 %v5981_v31, %v5781_v1  ;;  %v1196_v1 = vmul.f32 %v5981_v31, %v5788_v41 }
 0x1f2   :  { %v6006_v48 = vadd.f32 %v5986_v32, %v1189_v35  ;;  %v6009_v49 = vadd.f32 %v5986_v32, %v1190_v38  ;;  %v6012_v50 = vadd.f32 %v5986_v32, %v1191_v39  ;;  %v6015_v51 = vadd.f32 %v5986_v32, %v1192_v40 }
 0x1f3   :  { %v6018_v7 = vadd.f32 %v5986_v32, %v1193_v24  ;;  %v6021_v11 = vadd.f32 %v5986_v32, %v1194_v45  ;;  %v6030_v8 = vadd.f32 %v5986_v32, %v1195_v46  ;;  %v6047_v27 = vadd.f32 %v5986_v32, %v1196_v1 }
 0x1f4   :  { %v4869_v54 = vpack.i.bf16 %v6009_v49, %v6006_v48  ;;  %v1485_v57 = vrot.slane %v6006_v48, 1  ;;  %v1486_v47 = vrot.slane %v6009_v49, 1  ;;  %v1487_v25 = vrot.slane %v6012_v50, 1 }
 0x1f5   :  { %v1488_v41 = vrot.slane %v6015_v51, 1  ;;  %v1489_v60 = vrot.slane %v6018_v7, 1  ;;  %v1490_v2 = vrot.slane %v6021_v11, 1  ;;  %v4874_v10 = vpack.i.bf16 %v6015_v51, %v6012_v50 }
 0x1f6   :  { %4870 = vrot.lane.b32.xlu0 %v4869_v54, %s5284_s30  ;;  %v1547_v62 = vsel %vm1517_vm2, %v1486_v47, %v1487_v25  ;;  %v1548_v63 = vsel %vm1517_vm2, %v1485_v57, %v1486_v47  ;;  %v1491_v14 = vrot.slane %v6030_v8, 1  ;;  %v1197_v15 = vmul.f32 %v5981_v31, %v5795_v42 }
 0x1f7   :  { %v4884_v3 = vpack.i.bf16 %v1547_v62, %v1548_v63  ;;  %v1545_v16 = vsel %vm1517_vm2, %v1488_v41, %v1489_v60  ;;  %v1546_v19 = vsel %vm1517_vm2, %v1487_v25, %v1488_v41  ;;  %v1198_v20 = vmul.f32 %v5981_v31, %v5802_v55 }
 0x1f8   :  { %v4879_v26 = vpack.i.bf16 %v6021_v11, %v6018_v7  ;;  %v6066_v29 = vadd.f32 %v5986_v32, %v1197_v15  ;;  %v1199_v42 = vmul.f32 %v5981_v31, %v5809_v56  ;;  %v1544_v33 = vsel %vm1517_vm2, %v1489_v60, %v1490_v2 }
 0x1f9   :  { %4885 = vrot.lane.b32.xlu1 %v4884_v3, %s5285_s25  ;;  %v6073_v35 = vadd.f32 %v5986_v32, %v1198_v20  ;;  %v1200_v55 = vmul.f32 %v5981_v31, %v5816_v5  ;;  %v1201_v38 = vmul.f32 %v5981_v31, %v5823_v9  ;;  %v4889_v39 = vpack.i.bf16 %v1545_v16, %v1546_v19 }
 0x1fa   :  { %4875 = vrot.lane.b32.xlu0 %v4874_v10, %s5284_s30  ;;  %v1543_v40 = vsel %vm1517_vm2, %v1490_v2, %v1491_v14  ;;  %v1492_v24 = vrot.slane %v6047_v27, 1  ;;  %v6083_v56 = vadd.f32 %v5986_v32, %v1199_v42  ;;  %v1493_v45 = vrot.slane %v6066_v29, 1 }
 0x1fb   :  { %v6087_v46 = vadd.f32 %v5986_v32, %v1200_v55  ;;  %v1494_v1 = vrot.slane %v6073_v35, 1  ;;  %v1202_v5 = vmul.f32 %v5981_v31, %v5830_v21  ;;  %v6096_v54 = vadd.f32 %v5986_v32, %v1201_v38 }
 0x1fc   :  { %v1495_v9 = vrot.slane %v6083_v56, 1  ;;  %v1203_v23 = vmul.f32 %v5981_v31, %v5837_v28  ;;  %v1204_v47 = vmul.f32 %v5981_v31, %v5844_v43  ;;  %v6103_v25 = vadd.s32 120, %v5969_v18 }
 0x1fd   :  { %4890 = vrot.lane.b32.xlu1 %v4889_v39, %s5285_s25  ;;  %v4894_v21 = vpack.i.bf16 %v6047_v27, %v6030_v8  ;;  %v4899_v41 = vpack.i.bf16 %v1543_v40, %v1544_v33  ;;  %v1542_v60 = vsel %vm1517_vm2, %v1491_v14, %v1492_v24  ;;  %v1541_v62 = vsel %vm1517_vm2, %v1492_v24, %v1493_v45 }
 0x1fe   :  { %4880 = vrot.lane.b32.xlu0 %v4879_v26, %s5284_s30  ;;  %v1540_v63 = vsel %vm1517_vm2, %v1493_v45, %v1494_v1  ;;  %v1496_v28 = vrot.slane %v6087_v46, 1  ;;  %v6115_v43 = vadd.f32 %v5986_v32, %v1202_v5  ;;  %v1539_v2 = vsel %vm1517_vm2, %v1494_v1, %v1495_v9 }
 0x1ff   :  { %v1497_v3 = vrot.slane %v6096_v54, 1  ;;  %v6123_v10 = vadd.f32 %v5986_v32, %v1203_v23  ;;  %v1205_v14 = vmul.f32 %v5981_v31, %v5851_v44  ;;  %v6128_v15 = vadd.f32 %v5986_v32, %v1204_v47 }
 0x200   :  { %v1307_v16 = vand.u32 127, %v6103_v25  ;;  %v1206_v19 = vmul.f32 %v5981_v31, %v5858_v59  ;;  %v4909_v20 = vpack.i.bf16 %v1541_v62, %v1542_v60  ;;  %v4904_v26 = vpack.i.bf16 %v6073_v35, %v6066_v29 }
 0x201   :  { %4895 = vrot.lane.b32.xlu1 %v4894_v21, %s5284_s30  ;;  %v6136_v42 = vadd.f32 %v5986_v32, %v1205_v14  ;;  %v1207_v33 = vmul.f32 %v5981_v31, %v5865_v61  ;;  %v4914_v44 = vpack.i.bf16 %v6087_v46, %v6083_v56  ;;  %v4919_v55 = vpack.i.bf16 %v1539_v2, %v1540_v63 }
 0x202   :  { %4900 = vrot.lane.b32.xlu0 %v4899_v41, %s5285_s25  ;;  %v1208_v38 = vmul.f32 %v5981_v31, %v5872_v6  ;;  %v1209_v59 = vmul.f32 %v5981_v31, %v5879_v17  ;;  %v1537_v39 = vsel %vm1517_vm2, %v1496_v28, %v1497_v3  ;;  %v1538_v61 = vsel %vm1517_vm2, %v1495_v9, %v1496_v28 }
 0x203   :  { %v1498_v40 = vrot.slane %v6115_v43, 1  ;;  %v1499_v24 = vrot.slane %v6123_v10, 1  ;;  %v1500_v45 = vrot.slane %v6128_v15, 1  ;;  %v1501_v6 = vrot.slane %v6136_v42, 1 }
 0x204   :  { %v6157_v17 = vadd.f32 %v5986_v32, %v1206_v19  ;;  %v6160_v1 = vadd.f32 %v5986_v32, %v1207_v33  ;;  %v6163_v5 = vadd.f32 %v5986_v32, %v1208_v38  ;;  %v6166_v23 = vadd.f32 %v5986_v32, %v1209_v59 }
 0x205   :  { %4910 = vrot.lane.b32.xlu1 %v4909_v20, %s5285_s25  ;;  %v1210_v9 = vmul.f32 %v5981_v31, %v5886_v36  ;;  %v1211_v47 = vmul.f32 %v5981_v31, %v5893_v37  ;;  %v1212_v21 = vmul.f32 %v5981_v31, %v5900_v52  ;;  %v6175_v41 = vadd.s32 248, %v5969_v18 }
 0x206   :  { %4905 = vrot.lane.b32.xlu0 %v4904_v26, %s5284_s30  ;;  %v4929_v60 = vpack.i.bf16 %v1537_v39, %v1538_v61  ;;  %v4924_v62 = vpack.i.bf16 %v6115_v43, %v6096_v54  ;;  %v1536_v36 = vsel %vm1517_vm2, %v1497_v3, %v1498_v40  ;;  %vm6184_vm4 = vcmp.le.s32.totalorder %v1307_v16, 126 }
 0x207   :  { %v1535_v52 = vsel %vm1517_vm2, %v1498_v40, %v1499_v24  ;;  %v1533_v63 = vsel %vm1517_vm2, %v1500_v45, %v1501_v6  ;;  %v1502_v28 = vrot.slane %v6157_v17, 1  ;;  %v1503_v2 = vrot.slane %v6160_v1, 1 }
 0x208   :  { %v1504_v14 = vrot.slane %v6163_v5, 1  ;;  %v1505_v19 = vrot.slane %v6166_v23, 1  ;;  %v6197_v3 = vadd.f32 %v5986_v32, %v1210_v9  ;;  %v6200_v16 = vadd.f32 %v5986_v32, %v1211_v47 }
 0x209   :  { %4915 = vrot.lane.b32.xlu1 %v4914_v44, %s5284_s30  ;;  %v6203_v20 = vadd.f32 %v5986_v32, %v1212_v21  ;;  %v1213_v26 = vmul.f32 %v5981_v31, %v5907_v53  ;;  %v1214_v33 = vmul.f32 %v5981_v31, %v5914_v12  ;;  %v1215_v44 = vmul.f32 %v5981_v31, %v5921_v13 }
 0x20a   :  { %4920 = vrot.lane.b32.xlu0 %v4919_v55, %s5285_s25  ;;  %v4934_v55 = vpack.i.bf16 %v6128_v15, %v6123_v10  ;;  %v4939_v38 = vpack.i.bf16 %v1535_v52, %v1536_v36  ;;  %v1534_v59 = vsel %vm1517_vm2, %v1499_v24, %v1500_v45  ;;  %v1358_v39 = vrot.slane %v6012_v50, 7 }
 0x20b   :  { %v1532_v53 = vsel %vm1517_vm2, %v1501_v6, %v1502_v28  ;;  %v6221_v12 = vadd.f32 %v5986_v32, %v1213_v26  ;;  %v6224_v13 = vadd.f32 %v5986_v32, %v1214_v33  ;;  %v6227_v61 = vadd.f32 %v5986_v32, %v1215_v44 }
 0x20c   :  { %v1565_v40 = vsel %vm6184_vm4, %v1533_v63, 0.0  ;;  %v1531_v24 = vsel %vm1517_vm2, %v1502_v28, %v1503_v2  ;;  %v1529_v50 = vsel %vm1517_vm2, %v1504_v14, %v1505_v19  ;;  %v1359_v45 = vrot.slane %v6015_v51, 7 }
 0x20d   :  { %4930 = vrot.lane.b32.xlu1 %v4929_v60, %s5285_s25  ;;  %v1530_v6 = vsel %vm1517_vm2, %v1503_v2, %v1504_v14  ;;  %v1506_v9 = vrot.slane %v6197_v3, 1  ;;  %v1507_v47 = vrot.slane %v6200_v16, 1  ;;  %v1508_v21 = vrot.slane %v6203_v20, 1 }
 0x20e   :  { %4925 = vrot.lane.b32.xlu0 %v4924_v62, %s5284_s30  ;;  %v1357_v60 = vrot.slane %v6009_v49, 7  ;;  %v1356_v62 = vrot.slane %v6006_v48, 7  ;;  %v4944_v51 = vpack.i.bf16 %v6157_v17, %v6136_v42  ;;  %v1216_v36 = vmul.f32 %v5981_v31, %v5928_v30 }
 0x20f   :  { %v1509_v37 = vrot.slane %v6221_v12, 1  ;;  %v1510_v52 = vrot.slane %v6224_v13, 1  ;;  %v1511_v63 = vrot.slane %v6227_v61, 1  ;;  %v1217_v49 = vmul.f32 %v5981_v31, %v5935_v34 }
 0x210   :  { %v4949_v28 = vpack.i.bf16 %v1565_v40, %v1534_v59  ;;  %v4954_v2 = vpack.i.bf16 %v6163_v5, %v6160_v1  ;;  %v4959_v14 = vpack.i.bf16 %v1531_v24, %v1532_v53  ;;  %v4964_v26 = vpack.i.bf16 %v1529_v50, %v1530_v6 }
 0x211   :  { %4935 = vrot.lane.b32.xlu1 %v4934_v55, %s5284_s30  ;;  %v1527_v33 = vsel %vm1517_vm2, %v1506_v9, %v1507_v47  ;;  %v1528_v30 = vsel %vm1517_vm2, %v1505_v19, %v1506_v9  ;;  %v6262_v44 = vsel %vm1517_vm2, %v1507_v47, %v1508_v21  ;;  %v6266_v55 = vsel %vm1388_vm3, %v1358_v39, %v1359_v45 }
 0x212   :  { %4940 = vrot.lane.b32.xlu0 %v4939_v38, %s5285_s25  ;;  %v6271_v34 = vadd.f32 %v5986_v32, %v1216_v36  ;;  %v6275_v38 = vsel %vm1388_vm3, %v1357_v60, %v1358_v39  ;;  %v1360_v19 = vrot.slane %v6018_v7, 7  ;;  %v1361_v59 = vrot.slane %v6021_v11, 7 }
 0x213   :  { %v6281_v53 = vsel %vm1517_vm2, %v1508_v21, %v1509_v37  ;;  %v6287_v40 = vsel %vm1517_vm2, %v1510_v52, %v1511_v63  ;;  %v6290_v24 = vadd.f32 %v5986_v32, %v1217_v49  ;;  %v1218_v39 = vmul.f32 %v5981_v31, %v5942_v58 }
 0x214   :  { %v6296_v7 = vsel %vm1517_vm2, %v1509_v37, %v1510_v52  ;;  %v6300_v11 = vsel %vm1388_vm3, %v1360_v19, %v1361_v59  ;;  %v6304_v50 = vsel %vm1388_vm3, %v1359_v45, %v1360_v19  ;;  %v6310_v6 = vsel %vm1388_vm3, %v1356_v62, %v1357_v60 }
 0x215   :  { %4950 = vrot.lane.b32.xlu1 %v4949_v28, %s5285_s25  ;;  %v4969_v58 = vpack.i.bf16 %v6197_v3, %v6166_v23  ;;  %v4974_v9 = vpack.i.bf16 %v6203_v20, %v6200_v16  ;;  %v4979_v47 = vpack.i.bf16 %v1527_v33, %v1528_v30  ;;  %v1219_v21 = vmul.f32 %v5981_v31, %v5949_v0 }
 0x216   :  { %4945 = vrot.lane.b32.xlu0 %v4944_v51, %s5284_s30  ;;  %v4989_v45 = vpack.i.bf16 %v6224_v13, %v6221_v12  ;;  %v4994_v60 = vpack.i.bf16 %v6271_v34, %v6227_v61  ;;  %v1362_v51 = vrot.slane %v6030_v8, 7  ;;  %v1363_v36 = vrot.slane %v6047_v27, 7 }
 0x217   :  { %v4984_v37 = vpack.i.bf16 %v6281_v53, %v6262_v44  ;;  %v4999_v0 = vpack.i.bf16 %v6287_v40, %v6296_v7  ;;  %v1512_v52 = vrot.slane %v6271_v34, 1  ;;  %v1513_v49 = vrot.slane %v6290_v24, 1 }
 0x218   :  { %v6333_v28 = vadd.f32 %v5986_v32, %v1218_v39  ;;  %v6339_v8 = vsel %vm1388_vm3, %v1362_v51, %v1363_v36  ;;  %v6343_v27 = vsel %vm1388_vm3, %v1361_v59, %v1362_v51  ;;  %v1364_v33 = vrot.slane %v6066_v29, 7 }
 0x219   :  { %4955 = vrot.lane.b32.xlu1 %v4954_v2, %s5284_s30  ;;  %v1220_v2 = vmul.f32 %v5981_v31, %v5956_v4  ;;  %v1365_v30 = vrot.slane %v6073_v35, 7  ;;  %v1366_v44 = vrot.slane %v6083_v56, 7  ;;  %v1367_v4 = vrot.slane %v6087_v46, 7 }
 0x21a   :  { %4960 = vrot.lane.b32.xlu0 %v4959_v14, %s5285_s25  ;;  %v6346_v14 = vadd.f32 %v5986_v32, %v1219_v21  ;;  %v1368_v31 = vrot.slane %v6096_v54, 7  ;;  %v1369_v19 = vrot.slane %v6115_v43, 7  ;;  %v1370_v59 = vrot.slane %v6123_v10, 7 }
 0x21b   :  { %v6359_v53 = vsel %vm1388_vm3, %v1364_v33, %v1365_v30  ;;  %v6363_v29 = vsel %vm1388_vm3, %v1363_v36, %v1364_v33  ;;  %v6367_v35 = vsel %vm1388_vm3, %v1365_v30, %v1366_v44  ;;  %v1371_v56 = vrot.slane %v6128_v15, 7 }
 0x21c   :  { %v6372_v46 = vsel %vm1388_vm3, %v1366_v44, %v1367_v4  ;;  %v6376_v54 = vsel %vm1388_vm3, %v1368_v31, %v1369_v19  ;;  %v6380_v43 = vsel %vm1388_vm3, %v1367_v4, %v1368_v31  ;;  %v6384_v10 = vsel %vm1388_vm3, %v1369_v19, %v1370_v59 }
 0x21d   :  { %4965 = vrot.lane.b32.xlu1 %v4964_v26, %s5285_s25  ;;  %v6388_v26 = vsel %vm1388_vm3, %v1370_v59, %v1371_v56  ;;  %v1372_v15 = vrot.slane %v6136_v42, 7  ;;  %v1373_v39 = vrot.slane %v6157_v17, 7  ;;  %v1375_v21 = vrot.slane %v6163_v5, 7 }
 0x21e   :  { %4970 = vrot.lane.b32.xlu0 %v4969_v58, %s5284_s30  ;;  %v1374_v58 = vrot.slane %v6160_v1, 7  ;;  %v1376_v51 = vrot.slane %v6166_v23, 7  ;;  %v1377_v36 = vrot.slane %v6197_v3, 7  ;;  %v1378_v33 = vrot.slane %v6200_v16, 7 }
 0x21f   :  { %v6401_v30 = vsel %vm1388_vm3, %v1372_v15, %v1373_v39  ;;  %v6405_v42 = vsel %vm1388_vm3, %v1371_v56, %v1372_v15  ;;  %v1379_v1 = vrot.slane %v6203_v20, 7  ;;  %v6413_v5 = vadd.f32 %v5986_v32, %v1220_v2 }
 0x220   :  { %v6409_v17 = vsel %vm1388_vm3, %v1373_v39, %v1374_v58  ;;  %v6417_v23 = vsel %vm1388_vm3, %v1374_v58, %v1375_v21  ;;  %v6421_v3 = vsel %vm1388_vm3, %v1376_v51, %v1377_v36  ;;  %v6425_v16 = vsel %vm1388_vm3, %v1375_v21, %v1376_v51 }
 0x221   :  { %4975 = vrot.lane.b32.xlu1 %v4974_v9, %s5284_s30  ;;  %v6429_v9 = vsel %vm1388_vm3, %v1378_v33, %v1379_v1  ;;  %v6433_v32 = vsel %vm1388_vm3, %v1377_v36, %v1378_v33  ;;  %v1380_v20 = vrot.slane %v6221_v12, 7  ;;  %v1382_v2 = vrot.slane %v6227_v61, 7 }
 0x222   :  { %4980 = vrot.lane.b32.xlu0 %v4979_v47, %s5285_s25  ;;  %v1381_v47 = vrot.slane %v6224_v13, 7  ;;  %v1383_v44 = vrot.slane %v6271_v34, 7  ;;  %v1384_v4 = vrot.slane %v6290_v24, 7  ;;  %v1385_v31 = vrot.slane %v6333_v28, 7 }
 0x223   :  { %v1522_v19 = vsel %vm1517_vm2, %v1511_v63, %v1512_v52  ;;  %v6453_v13 = vsel %vm1388_vm3, %v1379_v1, %v1380_v20  ;;  %v1521_v15 = vsel %vm1517_vm2, %v1512_v52, %v1513_v49  ;;  %v1514_v39 = vrot.slane %v6333_v28, 1 }
 0x224   :  { %v6449_v12 = vsel %vm1388_vm3, %v1380_v20, %v1381_v47  ;;  %v6462_v59 = vsel %vm1388_vm3, %v1381_v47, %v1382_v2  ;;  %v6466_v63 = vsel %vm1388_vm3, %v1384_v4, %v1385_v31  ;;  %v6470_v56 = vsel %vm1388_vm3, %v1383_v44, %v1384_v4 }
 0x225   :  { %4985 = vrot.lane.b32.xlu1 %v4984_v37, %s5285_s25  ;;  %v6458_v37 = vsel %vm1388_vm3, %v1382_v2, %v1383_v44  ;;  %v1515_v58 = vrot.slane %v6346_v14, 1  ;;  %v1323_v52 = vand.u32 127, %v6175_v41  ;;  %v1516_v51 = vrot.slane %v6413_v5, 1 }
 0x226   :  { %4990 = vrot.lane.b32.xlu0 %v4989_v45, %s5284_s30  ;;  %v1386_v45 = vrot.slane %v6346_v14, 7  ;;  %v5004_v36 = vpack.i.bf16 %v1521_v15, %v1522_v19  ;;  %v5009_v33 = vpack.i.bf16 %v6333_v28, %v6290_v24  ;;  %v1520_v61 = vsel %vm1517_vm2, %v1513_v49, %v1514_v39 }
 0x227   :  { %v1519_v1 = vsel %vm1517_vm2, %v1514_v39, %v1515_v58  ;;  %vm1484_vm5 = vcmp.le.s32.totalorder %v1323_v52, 126  ;;  %v1549_v41 = vsel %vm1517_vm2, %v1516_v51, %v1485_v57  ;;  %v5014_v34 = vpack.i.bf16 %v6413_v5, %v6346_v14 }
 0x228   :  { %v6482_v21 = vsel %vm1388_vm3, %v1385_v31, %v1386_v45  ;;  %v5019_v40 = vpack.i.bf16 %v1519_v1, %v1520_v61  ;;  %v1518_v24 = vsel %vm1517_vm2, %v1515_v58, %v1516_v51  ;;  %v1581_v7 = vsel %vm1484_vm5, %v1549_v41, 0.0 }
 0x229   :  { %4995 = vrot.lane.b32.xlu1 %v4994_v60, %s5284_s30  ;;  %v5024_v60 = vpack.i.bf16 %v1581_v7, %v1518_v24  ;;  %v1387_v49 = vrot.slane %v6413_v5, 7 }
 0x22a   :  { %5000 = vrot.lane.b32.xlu0 %v4999_v0, %s5285_s25  ;;  %v1292_v0 = vand.u32 127, %v5969_v18 }
 0x22b   :  { %v1420_v47 = vsel %vm1388_vm3, %v1387_v49, %v1356_v62 }
 0x22c   :  { %vm1324_vm6 = vcmp.ge.s32.totalorder %v1292_v0, 1 }
 0x22d   :  { %5005 = vrot.lane.b32.xlu1 %v5004_v36, %s5285_s25  ;;  %v1421_v19 = vsel %vm1324_vm6, %v1420_v47, 0.0 }
 0x22e   :  { %5010 = vrot.lane.b32.xlu0 %v5009_v33, %s5284_s30 }
 0x231   :  { %5015 = vrot.lane.b32.xlu1 %v5014_v34, %s5284_s30 }
 0x232   :  { %5020 = vrot.lane.b32.xlu0 %v5019_v40, %s5285_s25 }
 0x235   :  { %5025 = vrot.lane.b32.xlu1 %v5024_v60, %s5285_s25 }
 0x268   :  { %v4871_v57 = vpop.permute.xlu0 %4870 }
 0x269   :  { %v4873_v28 = vunpack.i.h.bf16 %v4871_v57  ;;  %v4872_v20 = vunpack.i.l.bf16 %v4871_v57 }
 0x26b   :  { %v4886_v2 = vpop.permute.xlu1 %4885  ;;  %v1838_v58 = vsel %vm718_vm1, %v1421_v19, %v4872_v20  ;;  %v1839_v52 = vsel %vm718_vm1, %v6310_v6, %v4873_v28 }
 0x26c   :  { %v4876_v44 = vpop.permute.xlu0 %4875  ;;  %v4888_v4 = vunpack.i.h.bf16 %v4886_v2  ;;  %v4887_v31 = vunpack.i.l.bf16 %v4886_v2 }
 0x26d   :  { %v4878_v15 = vunpack.i.h.bf16 %v4876_v44  ;;  %v4877_v39 = vunpack.i.l.bf16 %v4876_v44 }
 0x26e   :  { %v1871_v48 = vsel %vm1870_vm7, %v1838_v58, %v4887_v31  ;;  %v1872_v51 = vsel %vm1870_vm7, %v1839_v52, %v4888_v4 }
 0x26f   :  { %v4891_v36 = vpop.permute.xlu1 %4890  ;;  %v1903_v33 = vpack.c.bf16 %v1872_v51, %v1871_v48  ;;  %v1841_v41 = vsel %vm718_vm1, %v6266_v55, %v4878_v15  ;;  %v1840_v34 = vsel %vm718_vm1, %v6275_v38, %v4877_v39 }
 0x270   :  { %v4881_v62 = vpop.permute.xlu0 %4880  ;;  %v4893_v1 = vunpack.i.h.bf16 %v4891_v36  ;;  %v4892_v61 = vunpack.i.l.bf16 %v4891_v36 }
 0x271   :  { %v4883_v40 = vunpack.i.h.bf16 %v4881_v62  ;;  %v4882_v24 = vunpack.i.l.bf16 %v4881_v62  ;;  %4739 = vmatprep.mubr.msk.bf16.mxu1 %vm1943_vm8, %v1903_v33 }
 0x272   :  { %v1874_v6 = vsel %vm1870_vm7, %v1841_v41, %v4893_v1  ;;  %v1873_v7 = vsel %vm1870_vm7, %v1840_v34, %v4892_v61 }
 0x273   :  { %v1904_v60 = vpack.c.bf16 %v1874_v6, %v1873_v7  ;;  %v4896_v0 = vpop.permute.xlu1 %4895  ;;  %v1843_v47 = vsel %vm718_vm1, %v6300_v11, %v4883_v40  ;;  %v1842_v55 = vsel %vm718_vm1, %v6304_v50, %v4882_v24 }
 0x274   :  { %v4901_v57 = vpop.permute.xlu0 %4900  ;;  %v4898_v38 = vunpack.i.h.bf16 %v4896_v0  ;;  %v4897_v2 = vunpack.i.l.bf16 %v4896_v0 }
 0x275   :  { %v4903_v28 = vunpack.i.h.bf16 %v4901_v57  ;;  %v4902_v20 = vunpack.i.l.bf16 %v4901_v57  ;;  %4740 = vmatmul.mubr.msk.bf16.vlgmr.msra.gmra.mrb[0].mxu1 %vm1943_vm8, %v1904_v60 }
 0x276   :  { %v1845_v52 = vsel %vm718_vm1, %v6339_v8, %v4898_v38  ;;  %v1844_v11 = vsel %vm718_vm1, %v6343_v27, %v4897_v2 }
 0x277   :  { %v1875_v44 = vsel %vm1870_vm7, %v1842_v55, %v4902_v20  ;;  %v1876_v4 = vsel %vm1870_vm7, %v1843_v47, %v4903_v28  ;;  %v4911_v19 = vpop.permute.xlu1 %4910  ;;  %v1276_v20 = vadd.s32 128, %v5969_v18 }
 0x278   :  { %v1905_v31 = vpack.c.bf16 %v1876_v4, %v1875_v44  ;;  %v4906_v15 = vpop.permute.xlu0 %4905  ;;  %v4913_v39 = vunpack.i.h.bf16 %v4911_v19  ;;  %v4912_v58 = vunpack.i.l.bf16 %v4911_v19 }
 0x279   :  { %v4908_v50 = vunpack.i.h.bf16 %v4906_v15  ;;  %v4907_v48 = vunpack.i.l.bf16 %v4906_v15 }
 0x27a   :  { %4743 = vmatprep.mubr.msk.bf16.mxu1 %vm1943_vm8, %v1905_v31  ;;  %v1877_v51 = vsel %vm1870_vm7, %v1844_v11, %v4912_v58  ;;  %v1878_v36 = vsel %vm1870_vm7, %v1845_v52, %v4913_v39  ;;  %v1308_v39 = vand.u32 127, %v1276_v20 }
 0x27b   :  { %v1906_v62 = vpack.c.bf16 %v1878_v36, %v1877_v51  ;;  %v4916_v33 = vpop.permute.xlu1 %4915  ;;  %v1847_v34 = vsel %vm718_vm1, %v6359_v53, %v4908_v50  ;;  %v1846_v8 = vsel %vm718_vm1, %v6363_v29, %v4907_v48 }
 0x27c   :  { %v4921_v1 = vpop.permute.xlu0 %4920  ;;  %v4918_v27 = vunpack.i.h.bf16 %v4916_v33  ;;  %v4917_v40 = vunpack.i.l.bf16 %v4916_v33  ;;  %vm6571_vm9 = vcmp.ge.s32.totalorder %v1308_v39, 1 }
 0x27d   :  { %v4923_v61 = vunpack.i.h.bf16 %v4921_v1  ;;  %v4922_v41 = vunpack.i.l.bf16 %v4921_v1  ;;  %4744 = vmatmul.mubr.msk.bf16.gmra.mrb[4].mxu1 %vm1943_vm8, %v1906_v62 }
 0x27e   :  { %v1849_v53 = vsel %vm718_vm1, %v6372_v46, %v4918_v27  ;;  %v1848_v29 = vsel %vm718_vm1, %v6367_v35, %v4917_v40 }
 0x27f   :  { %v1879_v24 = vsel %vm1870_vm7, %v1846_v8, %v4922_v41  ;;  %v1880_v6 = vsel %vm1870_vm7, %v1847_v34, %v4923_v61  ;;  %v4931_v60 = vpop.permute.xlu1 %4930 }
 0x280   :  { %v1907_v7 = vpack.c.bf16 %v1880_v6, %v1879_v24  ;;  %v4926_v0 = vpop.permute.xlu0 %4925  ;;  %v4933_v57 = vunpack.i.h.bf16 %v4931_v60  ;;  %v4932_v28 = vunpack.i.l.bf16 %v4931_v60  ;;  %v1437_v6 = vsel %vm6571_vm9, %v6405_v42, 0.0 }
 0x281   :  { %v4928_v47 = vunpack.i.h.bf16 %v4926_v0  ;;  %v4927_v55 = vunpack.i.l.bf16 %v4926_v0 }
 0x282   :  { %4747 = vmatprep.mubr.msk.bf16.mxu1 %vm1943_vm8, %v1907_v7  ;;  %v1881_v38 = vsel %vm1870_vm7, %v1848_v29, %v4932_v28  ;;  %v1882_v2 = vsel %vm1870_vm7, %v1849_v53, %v4933_v57 }
 0x283   :  { %v1908_v44 = vpack.c.bf16 %v1882_v2, %v1881_v38  ;;  %v4936_v4 = vpop.permute.xlu1 %4935  ;;  %v1851_v46 = vsel %vm718_vm1, %v6376_v54, %v4928_v47  ;;  %v1850_v35 = vsel %vm718_vm1, %v6380_v43, %v4927_v55 }
 0x284   :  { %v4941_v31 = vpop.permute.xlu0 %4940  ;;  %v4938_v58 = vunpack.i.h.bf16 %v4936_v4  ;;  %v4937_v52 = vunpack.i.l.bf16 %v4936_v4 }
 0x285   :  { %v4943_v19 = vunpack.i.h.bf16 %v4941_v31  ;;  %v4942_v15 = vunpack.i.l.bf16 %v4941_v31  ;;  %4748 = vmatmul.mubr.msk.bf16.gmra.mrb[8].mxu1 %vm1943_vm8, %v1908_v44 }
 0x286   :  { %v1853_v54 = vsel %vm718_vm1, %v6388_v26, %v4938_v58  ;;  %v1852_v43 = vsel %vm718_vm1, %v6384_v10, %v4937_v52 }
 0x287   :  { %v1883_v11 = vsel %vm1870_vm7, %v1850_v35, %v4942_v15  ;;  %v1884_v50 = vsel %vm1870_vm7, %v1851_v46, %v4943_v19  ;;  %v4951_v51 = vpop.permute.xlu1 %4950 }
 0x288   :  { %v1909_v48 = vpack.c.bf16 %v1884_v50, %v1883_v11  ;;  %v4946_v36 = vpop.permute.xlu0 %4945  ;;  %v4953_v62 = vunpack.i.h.bf16 %v4951_v51  ;;  %v4952_v33 = vunpack.i.l.bf16 %v4951_v51 }
 0x289   :  { %v4948_v61 = vunpack.i.h.bf16 %v4946_v36  ;;  %v4947_v41 = vunpack.i.l.bf16 %v4946_v36 }
 0x28a   :  { %4751 = vmatprep.mubr.msk.bf16.mxu1 %vm1943_vm8, %v1909_v48  ;;  %v1885_v34 = vsel %vm1870_vm7, %v1852_v43, %v4952_v33  ;;  %v1886_v8 = vsel %vm1870_vm7, %v1853_v54, %v4953_v62 }
 0x28b   :  { %v1910_v27 = vpack.c.bf16 %v1886_v8, %v1885_v34  ;;  %v4956_v40 = vpop.permute.xlu1 %4955  ;;  %v1855_v10 = vsel %vm718_vm1, %v6401_v30, %v4948_v61  ;;  %v1854_v60 = vsel %vm718_vm1, %v1437_v6, %v4947_v41 }
 0x28c   :  { %v4961_v24 = vpop.permute.xlu0 %4960  ;;  %v4958_v0 = vunpack.i.h.bf16 %v4956_v40  ;;  %v4957_v57 = vunpack.i.l.bf16 %v4956_v40 }
 0x28d   :  { %v4963_v7 = vunpack.i.h.bf16 %v4961_v24  ;;  %v4962_v26 = vunpack.i.l.bf16 %v4961_v24  ;;  %4752 = vmatmul.mubr.msk.bf16.gmra.mrb[12].mxu1 %vm1943_vm8, %v1910_v27 }
 0x28e   :  { %v1857_v38 = vsel %vm718_vm1, %v6417_v23, %v4958_v0  ;;  %v1856_v30 = vsel %vm718_vm1, %v6409_v17, %v4957_v57 }
 0x28f   :  { %v1887_v28 = vsel %vm1870_vm7, %v1854_v60, %v4962_v26  ;;  %v1888_v20 = vsel %vm1870_vm7, %v1855_v10, %v4963_v7  ;;  %v4966_v29 = vpop.permute.xlu1 %4965 }
 0x290   :  { %v1911_v53 = vpack.c.bf16 %v1888_v20, %v1887_v28  ;;  %v4971_v47 = vpop.permute.xlu0 %4970  ;;  %v4968_v55 = vunpack.i.h.bf16 %v4966_v29  ;;  %v4967_v42 = vunpack.i.l.bf16 %v4966_v29 }
 0x291   :  { %v4973_v2 = vunpack.i.h.bf16 %v4971_v47  ;;  %v4972_v44 = vunpack.i.l.bf16 %v4971_v47 }
 0x292   :  { %4755 = vmatprep.mubr.msk.bf16.mxu1 %vm1943_vm8, %v1911_v53  ;;  %v1889_v4 = vsel %vm1870_vm7, %v1856_v30, %v4967_v42  ;;  %v1890_v31 = vsel %vm1870_vm7, %v1857_v38, %v4968_v55 }
 0x293   :  { %v1912_v19 = vpack.c.bf16 %v1890_v31, %v1889_v4  ;;  %v4976_v15 = vpop.permute.xlu1 %4975  ;;  %v1859_v58 = vsel %vm718_vm1, %v6421_v3, %v4973_v2  ;;  %v1858_v23 = vsel %vm718_vm1, %v6425_v16, %v4972_v44 }
 0x294   :  { %v4981_v39 = vpop.permute.xlu0 %4980  ;;  %v4978_v17 = vunpack.i.h.bf16 %v4976_v15  ;;  %v4977_v52 = vunpack.i.l.bf16 %v4976_v15 }
 0x295   :  { %v4983_v46 = vunpack.i.h.bf16 %v4981_v39  ;;  %v4982_v35 = vunpack.i.l.bf16 %v4981_v39  ;;  %4756 = vmatmul.mubr.msk.bf16.gmra.mrb[16].mxu1 %vm1943_vm8, %v1912_v19 }
 0x296   :  { %v1861_v1 = vsel %vm718_vm1, %v6429_v9, %v4978_v17  ;;  %v1860_v3 = vsel %vm718_vm1, %v6433_v32, %v4977_v52 }
 0x297   :  { %v1891_v11 = vsel %vm1870_vm7, %v1858_v23, %v4982_v35  ;;  %v1892_v50 = vsel %vm1870_vm7, %v1859_v58, %v4983_v46  ;;  %v4986_v51 = vpop.permute.xlu1 %4985 }
 0x298   :  { %v1913_v48 = vpack.c.bf16 %v1892_v50, %v1891_v11  ;;  %v4991_v36 = vpop.permute.xlu0 %4990  ;;  %v4988_v62 = vunpack.i.h.bf16 %v4986_v51  ;;  %v4987_v33 = vunpack.i.l.bf16 %v4986_v51 }
 0x299   :  { %v4993_v16 = vunpack.i.h.bf16 %v4991_v36  ;;  %v4992_v54 = vunpack.i.l.bf16 %v4991_v36 }
 0x29a   :  { %4759 = vmatprep.mubr.msk.bf16.mxu1 %vm1943_vm8, %v1913_v48  ;;  %v1893_v43 = vsel %vm1870_vm7, %v1860_v3, %v4987_v33  ;;  %v1894_v61 = vsel %vm1870_vm7, %v1861_v1, %v4988_v62 }
 0x29b   :  { %v1914_v41 = vpack.c.bf16 %v1894_v61, %v1893_v43  ;;  %v4996_v34 = vpop.permute.xlu1 %4995  ;;  %v1863_v24 = vsel %vm718_vm1, %v6449_v12, %v4993_v16  ;;  %v1862_v9 = vsel %vm718_vm1, %v6453_v13, %v4992_v54 }
 0x29c   :  { %v5001_v8 = vpop.permute.xlu0 %5000  ;;  %v4998_v32 = vunpack.i.h.bf16 %v4996_v34  ;;  %v4997_v6 = vunpack.i.l.bf16 %v4996_v34 }
 0x29d   :  { %v5003_v27 = vunpack.i.h.bf16 %v5001_v8  ;;  %v5002_v40 = vunpack.i.l.bf16 %v5001_v8  ;;  %4760 = vmatmul.mubr.msk.bf16.gmra.mrb[20].mxu1 %vm1943_vm8, %v1914_v41 }
 0x29e   :  { %v1865_v20 = vsel %vm718_vm1, %v6458_v37, %v4998_v32  ;;  %v1864_v12 = vsel %vm718_vm1, %v6462_v59, %v4997_v6 }
 0x29f   :  { %v1895_v7 = vsel %vm1870_vm7, %v1862_v9, %v5002_v40  ;;  %v1896_v26 = vsel %vm1870_vm7, %v1863_v24, %v5003_v27  ;;  %v5006_v60 = vpop.permute.xlu1 %5005 }
 0x2a0   :  { %v1915_v10 = vpack.c.bf16 %v1896_v26, %v1895_v7  ;;  %v5011_v0 = vpop.permute.xlu0 %5010  ;;  %v5008_v57 = vunpack.i.h.bf16 %v5006_v60  ;;  %v5007_v28 = vunpack.i.l.bf16 %v5006_v60 }
 0x2a1   :  { %v5013_v13 = vunpack.i.h.bf16 %v5011_v0  ;;  %v5012_v53 = vunpack.i.l.bf16 %v5011_v0 }
 0x2a2   :  { %4763 = vmatprep.mubr.msk.bf16.mxu1 %vm1943_vm8, %v1915_v10  ;;  %v1897_v29 = vsel %vm1870_vm7, %v1864_v12, %v5007_v28  ;;  %v1898_v47 = vsel %vm1870_vm7, %v1865_v20, %v5008_v57 }
 0x2a3   :  { %v1916_v55 = vpack.c.bf16 %v1898_v47, %v1897_v29  ;;  %v5016_v42 = vpop.permute.xlu1 %5015  ;;  %v1867_v44 = vsel %vm718_vm1, %v6466_v63, %v5013_v13  ;;  %v1866_v37 = vsel %vm718_vm1, %v6470_v56, %v5012_v53  ;;  %v1389_v63 = vsel %vm1388_vm3, %v1386_v45, %v1387_v49 }
 0x2a4   :  { %v5021_v38 = vpop.permute.xlu0 %5020  ;;  %v5018_v59 = vunpack.i.h.bf16 %v5016_v42  ;;  %v5017_v4 = vunpack.i.l.bf16 %v5016_v42 }
 0x2a5   :  { %v5023_v30 = vunpack.i.h.bf16 %v5021_v38  ;;  %v5022_v2 = vunpack.i.l.bf16 %v5021_v38  ;;  %4764 = vmatmul.mubr.msk.bf16.gmra.mrb[24].mxu1 %vm1943_vm8, %v1916_v55 }
 0x2a6   :  { %v1869_v56 = vsel %vm718_vm1, %v1389_v63, %v5018_v59  ;;  %v1868_v58 = vsel %vm718_vm1, %v6482_v21, %v5017_v4 }
 0x2a7   :  { %v1899_v31 = vsel %vm1870_vm7, %v1866_v37, %v5022_v2  ;;  %v1900_v19 = vsel %vm1870_vm7, %v1867_v44, %v5023_v30  ;;  %v5026_v39 = vpop.permute.xlu1 %5025 }
 0x2a8   :  { %v1917_v15 = vpack.c.bf16 %v1900_v19, %v1899_v31  ;;  %v5028_v46 = vunpack.i.h.bf16 %v5026_v39  ;;  %v5027_v35 = vunpack.i.l.bf16 %v5026_v39 }
 0x2aa   :  { %4767 = vmatprep.mubr.msk.bf16.mxu1 %vm1943_vm8, %v1917_v15  ;;  %v1901_v23 = vsel %vm1870_vm7, %v1868_v58, %v5027_v35  ;;  %v1902_v17 = vsel %vm1870_vm7, %v1869_v56, %v5028_v46 }
 0x2ab   :  { %v1918_v52 = vpack.c.bf16 %v1902_v17, %v1901_v23 }
 0x2ad   :  { %4768 = vmatmul.mubr.msk.bf16.gmra.mrb[28].mxu1 %vm1943_vm8, %v1918_v52 }
 0x348   :  { %v4741_v14 = vpop.f32.mrb[0].mxu1 }
 0x349   :  { %2155 = vst.msk [vmem:[#allocation3 + $0x10] sm:$0xff] %vm1870_vm7, %v4741_v14  ;;  %v2026_v5 = vpop.f32.mrb[1].mxu1 }
 0x34a   :  { %2153 = vst.msk [vmem:[#allocation3] sm:$0xff] %vm1870_vm7, %v2026_v5  ;;  %v4742_v45 = vpop.f32.mrb[2].mxu1 }
 0x34b   :  { %2156 = vst.msk [vmem:[#allocation3 + $0x18] sm:$0xff] %vm1870_vm7, %v4742_v45  ;;  %v2029_v49 = vpop.f32.mrb[3].mxu1 }
 0x34c   :  { %2154 = vst.msk [vmem:[#allocation3 + $0x8] sm:$0xff] %vm1870_vm7, %v2029_v49 }
 0x350   :  { %v4745_v21 = vpop.f32.mrb[4].mxu1 }
 0x351   :  { %2159 = vst.msk [vmem:[#allocation3 + $0x30] sm:$0xff] %vm1870_vm7, %v4745_v21  ;;  %v2042_v11 = vpop.f32.mrb[5].mxu1 }
 0x352   :  { %2157 = vst.msk [vmem:[#allocation3 + $0x20] sm:$0xff] %vm1870_vm7, %v2042_v11  ;;  %v4746_v50 = vpop.f32.mrb[6].mxu1  ;;  %v2187_v1 = vld [vmem:[#allocation3 + $0x10] ss:$2 sm:$0xff]  ;;  %v2219_v54 = vld [vmem:[#allocation3 + $0x11] ss:$2 sm:$0xff] }
 0x353   :  { %2160 = vst.msk [vmem:[#allocation3 + $0x38] sm:$0xff] %vm1870_vm7, %v4746_v50  ;;  %v2045_v48 = vpop.f32.mrb[7].mxu1  ;;  %v2185_v3 = vld [vmem:[#allocation3] ss:$2 sm:$0xff]  ;;  %v2217_v16 = vld [vmem:[#allocation3 + $0x1] ss:$2 sm:$0xff]  ;;  %v2249_v8 = vmax.f32 %v2187_v1, %v2219_v54 }
 0x354   :  { %2158 = vst.msk [vmem:[#allocation3 + $0x28] sm:$0xff] %vm1870_vm7, %v2045_v48  ;;  %v2248_v34 = vmax.f32 %v2185_v3, %v2217_v16 }
 0x355   :  { %v6664_v7 = vmax.f32 %v2249_v8, 0.0 }
 0x356   :  { %v6662_v6 = vmax.f32 %v2248_v34, 0.0 }
 0x357   :  { %v2283_v13 = vsel %vm1870_vm7, %v6664_v7, 0.0 }
 0x358   :  { %v4749_v51 = vpop.f32.mrb[8].mxu1  ;;  %v2282_v12 = vsel %vm1870_vm7, %v6662_v6, 0.0 }
 0x359   :  { %2163 = vst.msk [vmem:[#allocation3 + $0x50] sm:$0xff] %vm1870_vm7, %v4749_v51  ;;  %v2058_v36 = vpop.f32.mrb[9].mxu1  ;;  %v2284_v44 = vadd.f32 %v2283_v13, %v2282_v12 }
 0x35a   :  { %2161 = vst.msk [vmem:[#allocation3 + $0x40] sm:$0xff] %vm1870_vm7, %v2058_v36  ;;  %v4750_v62 = vpop.f32.mrb[10].mxu1  ;;  %v2191_v32 = vld [vmem:[#allocation3 + $0x30] ss:$2 sm:$0xff]  ;;  %v2223_v10 = vld [vmem:[#allocation3 + $0x31] ss:$2 sm:$0xff] }
 0x35b   :  { %2164 = vst.msk [vmem:[#allocation3 + $0x58] sm:$0xff] %vm1870_vm7, %v4750_v62  ;;  %v2061_v33 = vpop.f32.mrb[11].mxu1  ;;  %v2189_v43 = vld [vmem:[#allocation3 + $0x20] ss:$2 sm:$0xff]  ;;  %v2221_v61 = vld [vmem:[#allocation3 + $0x21] ss:$2 sm:$0xff]  ;;  %v2251_v28 = vmax.f32 %v2191_v32, %v2223_v10 }
 0x35c   :  { %2162 = vst.msk [vmem:[#allocation3 + $0x48] sm:$0xff] %vm1870_vm7, %v2061_v33  ;;  %v2250_v24 = vmax.f32 %v2189_v43, %v2221_v61 }
 0x35d   :  { %v6678_v37 = vmax.f32 %v2251_v28, 0.0 }
 0x35e   :  { %v6666_v0 = vmax.f32 %v2250_v24, 0.0 }
 0x35f   :  { %v2287_v39 = vsel %vm1870_vm7, %v6678_v37, 0.0 }
 0x360   :  { %v4753_v41 = vpop.f32.mrb[12].mxu1  ;;  %v2285_v42 = vsel %vm1870_vm7, %v6666_v0, 0.0 }
 0x361   :  { %2167 = vst.msk [vmem:[#allocation3 + $0x70] sm:$0xff] %vm1870_vm7, %v4753_v41  ;;  %v2074_v27 = vpop.f32.mrb[13].mxu1  ;;  %v2286_v4 = vadd.f32 %v2285_v42, %v2284_v44 }
 0x362   :  { %2165 = vst.msk [vmem:[#allocation3 + $0x60] sm:$0xff] %vm1870_vm7, %v2074_v27  ;;  %v4754_v40 = vpop.f32.mrb[14].mxu1  ;;  %v2195_v47 = vld [vmem:[#allocation3 + $0x50] ss:$2 sm:$0xff]  ;;  %v2227_v55 = vld [vmem:[#allocation3 + $0x51] ss:$2 sm:$0xff] }
 0x363   :  { %2168 = vst.msk [vmem:[#allocation3 + $0x78] sm:$0xff] %vm1870_vm7, %v4754_v40  ;;  %v2077_v9 = vpop.f32.mrb[15].mxu1  ;;  %v2193_v26 = vld [vmem:[#allocation3 + $0x40] ss:$2 sm:$0xff]  ;;  %v2225_v60 = vld [vmem:[#allocation3 + $0x41] ss:$2 sm:$0xff]  ;;  %v2253_v31 = vmax.f32 %v2195_v47, %v2227_v55  ;;  %v2288_v58 = vadd.f32 %v2287_v39, %v2286_v4 }
 0x364   :  { %2166 = vst.msk [vmem:[#allocation3 + $0x68] sm:$0xff] %vm1870_vm7, %v2077_v9  ;;  %v2252_v20 = vmax.f32 %v2193_v26, %v2225_v60 }
 0x365   :  { %v6688_v17 = vmax.f32 %v2253_v31, 0.0 }
 0x366   :  { %v6680_v59 = vmax.f32 %v2252_v20, 0.0 }
 0x367   :  { %v2291_v51 = vsel %vm1870_vm7, %v6688_v17, 0.0 }
 0x368   :  { %v4757_v57 = vpop.f32.mrb[16].mxu1  ;;  %v2289_v63 = vsel %vm1870_vm7, %v6680_v59, 0.0 }
 0x369   :  { %2171 = vst.msk [vmem:[#allocation3 + $0x90] sm:$0xff] %vm1870_vm7, %v4757_v57  ;;  %v2090_v53 = vpop.f32.mrb[17].mxu1  ;;  %v2290_v49 = vadd.f32 %v2289_v63, %v2288_v58 }
 0x36a   :  { %2169 = vst.msk [vmem:[#allocation3 + $0x80] sm:$0xff] %vm1870_vm7, %v2090_v53  ;;  %v4758_v29 = vpop.f32.mrb[18].mxu1  ;;  %v2199_v35 = vld [vmem:[#allocation3 + $0x70] ss:$2 sm:$0xff]  ;;  %v2231_v56 = vld [vmem:[#allocation3 + $0x71] ss:$2 sm:$0xff] }
 0x36b   :  { %2172 = vst.msk [vmem:[#allocation3 + $0x98] sm:$0xff] %vm1870_vm7, %v4758_v29  ;;  %v2093_v38 = vpop.f32.mrb[19].mxu1  ;;  %v2197_v30 = vld [vmem:[#allocation3 + $0x60] ss:$2 sm:$0xff]  ;;  %v2229_v2 = vld [vmem:[#allocation3 + $0x61] ss:$2 sm:$0xff]  ;;  %v2255_v21 = vmax.f32 %v2199_v35, %v2231_v56  ;;  %v2292_v62 = vadd.f32 %v2291_v51, %v2290_v49 }
 0x36c   :  { %2170 = vst.msk [vmem:[#allocation3 + $0x88] sm:$0xff] %vm1870_vm7, %v2093_v38  ;;  %v2254_v19 = vmax.f32 %v2197_v30, %v2229_v2  ;;  %v5183_v49 = vld [vmem:[%s7709_s5] sm:$0xff]  }
 0x36d   :  { %v6698_v1 = vmax.f32 %v2255_v21, 0.0  ;;  %4771 = vmatprep.subr.bf16.mxu1 %v5183_v49 }
 0x36e   :  { %v6690_v52 = vmax.f32 %v2254_v19, 0.0  ;;  %4772 = vmatpush3.bf16.msra.mxu1 %v5183_v49 }
 0x36f   :  { %v2295_v40 = vsel %vm1870_vm7, %v6698_v1, 0.0 }
 0x370   :  { %v4761_v15 = vpop.f32.mrb[20].mxu1  ;;  %v2293_v36 = vsel %vm1870_vm7, %v6690_v52, 0.0 }
 0x371   :  { %2175 = vst.msk [vmem:[#allocation3 + $0xb0] sm:$0xff] %vm1870_vm7, %v4761_v15  ;;  %v2106_v46 = vpop.f32.mrb[21].mxu1  ;;  %v2294_v43 = vadd.f32 %v2293_v36, %v2292_v62  ;;  %v5185_v62 = vld [vmem:[%s7709_s5 + $0x10] sm:$0xff]  }
 0x372   :  { %2173 = vst.msk [vmem:[#allocation3 + $0xa0] sm:$0xff] %vm1870_vm7, %v2106_v46  ;;  %v4762_v23 = vpop.f32.mrb[22].mxu1  ;;  %v2203_v50 = vld [vmem:[#allocation3 + $0x90] ss:$2 sm:$0xff]  ;;  %v2235_v48 = vld [vmem:[#allocation3 + $0x91] ss:$2 sm:$0xff] }
 0x373   :  { %2176 = vst.msk [vmem:[#allocation3 + $0xb8] sm:$0xff] %vm1870_vm7, %v4762_v23  ;;  %v2109_v14 = vpop.f32.mrb[23].mxu1  ;;  %v2201_v5 = vld [vmem:[#allocation3 + $0x80] ss:$2 sm:$0xff]  ;;  %v2233_v45 = vld [vmem:[#allocation3 + $0x81] ss:$2 sm:$0xff]  ;;  %v2257_v54 = vmax.f32 %v2203_v50, %v2235_v48  ;;  %v2296_v10 = vadd.f32 %v2295_v40, %v2294_v43 }
 0x374   :  { %2174 = vst.msk [vmem:[#allocation3 + $0xa8] sm:$0xff] %vm1870_vm7, %v2109_v14  ;;  %v2256_v11 = vmax.f32 %v2201_v5, %v2233_v45 }
 0x375   :  { %v6710_v26 = vmax.f32 %v2257_v54, 0.0 }
 0x376   :  { %v6700_v3 = vmax.f32 %v2256_v11, 0.0  ;;  %v5184_v11 = vld [vmem:[%s7709_s5 + $0x8] sm:$0xff]  }
 0x377   :  { %v2299_v13 = vsel %vm1870_vm7, %v6710_v26, 0.0  ;;  %4773 = vmatprep.subr.bf16.mxu1 %v5184_v11 }
 0x378   :  { %v4765_v33 = vpop.f32.mrb[24].mxu1  ;;  %v2297_v24 = vsel %vm1870_vm7, %v6700_v3, 0.0  ;;  %4774 = vmatpush3.bf16.msra.mxu1 %v5184_v11 }
 0x379   :  { %2179 = vst.msk [vmem:[#allocation3 + $0xd0] sm:$0xff] %vm1870_vm7, %v4765_v33  ;;  %v2122_v16 = vpop.f32.mrb[25].mxu1  ;;  %v2298_v57 = vadd.f32 %v2297_v24, %v2296_v10  ;;  %4775 = vmatprep.subr.bf16.mxu1 %v5185_v62  ;;  %v5188_v24 = vld [vmem:[%s7709_s5 + $0x28] sm:$0xff]  }
 0x37a   :  { %2177 = vst.msk [vmem:[#allocation3 + $0xc0] sm:$0xff] %vm1870_vm7, %v2122_v16  ;;  %v4766_v61 = vpop.f32.mrb[26].mxu1  ;;  %v2207_v9 = vld [vmem:[#allocation3 + $0xb0] ss:$2 sm:$0xff]  ;;  %v2239_v32 = vld [vmem:[#allocation3 + $0xb1] ss:$2 sm:$0xff] }
 0x37b   :  { %v2205_v41 = vld [vmem:[#allocation3 + $0xa0] ss:$2 sm:$0xff]  ;;  %v2237_v34 = vld [vmem:[#allocation3 + $0xa1] ss:$2 sm:$0xff]  ;;  %2180 = vst.msk [vmem:[#allocation3 + $0xd8] sm:$0xff] %vm1870_vm7, %v4766_v61  ;;  %v2125_v8 = vpop.f32.mrb[27].mxu1  ;;  %v2259_v28 = vmax.f32 %v2207_v9, %v2239_v32  ;;  %v2300_v2 = vadd.f32 %v2299_v13, %v2298_v57 }
 0x37c   :  { %v2258_v27 = vmax.f32 %v2205_v41, %v2237_v34  ;;  %2178 = vst.msk [vmem:[#allocation3 + $0xc8] sm:$0xff] %vm1870_vm7, %v2125_v8  ;;  %v5186_v61 = vld [vmem:[%s7709_s5 + $0x18] sm:$0xff]   ;;  %4776 = vmatpush3.bf16.msra.mxu1 %v5185_v62  ;;  %v5187_v8 = vld [vmem:[%s7709_s5 + $0x20] sm:$0xff]  }
 0x37d   :  { %v6721_v44 = vmax.f32 %v2259_v28, 0.0  ;;  %4777 = vmatprep.subr.bf16.mxu1 %v5186_v61 }
 0x37e   :  { %v6712_v60 = vmax.f32 %v2258_v27, 0.0 }
 0x37f   :  { %v2303_v63 = vsel %vm1870_vm7, %v6721_v44, 0.0 }
 0x380   :  { %v4769_v20 = vpop.f32.mrb[28].mxu1  ;;  %v2301_v55 = vsel %vm1870_vm7, %v6712_v60, 0.0  ;;  %4778 = vmatpush3.bf16.msra.mxu1 %v5186_v61 }
 0x381   :  { %2183 = vst.msk [vmem:[#allocation3 + $0xf0] sm:$0xff] %vm1870_vm7, %v4769_v20  ;;  %v2138_v12 = vpop.f32.mrb[29].mxu1  ;;  %v2302_v31 = vadd.f32 %v2301_v55, %v2300_v2  ;;  %4779 = vmatprep.subr.bf16.mxu1 %v5187_v8 }
 0x382   :  { %v2211_v53 = vld [vmem:[#allocation3 + $0xd0] ss:$2 sm:$0xff]  ;;  %v2243_v29 = vld [vmem:[#allocation3 + $0xd1] ss:$2 sm:$0xff]  ;;  %2181 = vst.msk [vmem:[#allocation3 + $0xe0] sm:$0xff] %vm1870_vm7, %v2138_v12  ;;  %v4770_v47 = vpop.f32.mrb[30].mxu1 }
 0x383   :  { %v2209_v42 = vld [vmem:[#allocation3 + $0xc0] ss:$2 sm:$0xff]  ;;  %v2241_v38 = vld [vmem:[#allocation3 + $0xc1] ss:$2 sm:$0xff]  ;;  %2184 = vst.msk [vmem:[#allocation3 + $0xf8] sm:$0xff] %vm1870_vm7, %v4770_v47  ;;  %v2141_v30 = vpop.f32.mrb[31].mxu1  ;;  %v2261_v19 = vmax.f32 %v2211_v53, %v2243_v29  ;;  %v2304_v46 = vadd.f32 %v2303_v63, %v2302_v31 }
 0x384   :  { %v2260_v4 = vmax.f32 %v2209_v42, %v2241_v38  ;;  %2182 = vst.msk [vmem:[#allocation3 + $0xe8] sm:$0xff] %vm1870_vm7, %v2141_v30  ;;  %4780 = vmatpush3.bf16.msra.mxu1 %v5187_v8 }
 0x385   :  { %v6730_v35 = vmax.f32 %v2261_v19, 0.0  ;;  %4781 = vmatprep.subr.bf16.mxu1 %v5188_v24 }
 0x386   :  { %v6724_v15 = vmax.f32 %v2260_v4, 0.0 }
 0x387   :  { %v2307_v50 = vsel %vm1870_vm7, %v6730_v35, 0.0 }
 0x388   :  { %v2305_v39 = vsel %vm1870_vm7, %v6724_v15, 0.0  ;;  %4782 = vmatpush3.bf16.msra.mxu1 %v5188_v24 }
 0x389   :  { %v2306_v45 = vadd.f32 %v2305_v39, %v2304_v46 }
 0x38a   :  { %v2215_v56 = vld [vmem:[#allocation3 + $0xf0] ss:$2 sm:$0xff]  ;;  %v2247_v58 = vld [vmem:[#allocation3 + $0xf1] ss:$2 sm:$0xff] }
 0x38b   :  { %v2263_v23 = vmax.f32 %v2215_v56, %v2247_v58  ;;  %v2213_v14 = vld [vmem:[#allocation3 + $0xe0] ss:$2 sm:$0xff]  ;;  %v2245_v5 = vld [vmem:[#allocation3 + $0xe1] ss:$2 sm:$0xff]  ;;  %v2308_v36 = vadd.f32 %v2307_v50, %v2306_v45 }
 0x38c   :  { %v2262_v21 = vmax.f32 %v2213_v14, %v2245_v5 }
 0x38d   :  { %v6740_v48 = vmax.f32 %v2263_v23, 0.0 }
 0x38e   :  { %v6742_v51 = vmax.f32 %v2262_v21, 0.0 }
 0x38f   :  { %v2311_v54 = vsel %vm1870_vm7, %v6740_v48, 0.0 }
 0x390   :  { %v2309_v33 = vsel %vm1870_vm7, %v6742_v51, 0.0 }
 0x391   :  { %v2310_v16 = vadd.f32 %v2309_v33, %v2308_v36 }
 0x393   :  { %v2312_v43 = vadd.f32 %v2311_v54, %v2310_v16 }
 0x395   :  { %v2313_v41 = vrot.slane %v2312_v43, 4 }
 0x397   :  { %v2314_v34 = vadd.f32 %v2313_v41, %v2312_v43 }
 0x399   :  { %v2315_v27 = vrot.slane %v2314_v34, 2 }
 0x39b   :  { %v2316_v40 = vadd.f32 %v2315_v27, %v2314_v34 }
 0x39d   :  { %v2317_v9 = vrot.slane %v2316_v40, 1 }
 0x39f   :  { %v2318_v32 = vadd.f32 %v2317_v9, %v2316_v40 }
 0x3a1   :  { %v2319_v10 = vmul.f32 0.0078125, %v2318_v32 }
 0x3a3   :  { %v6761_v57 = vsub.f32 %v6662_v6, %v2319_v10  ;;  %v6764_v28 = vsub.f32 %v6664_v7, %v2319_v10  ;;  %v6767_v20 = vsub.f32 %v6666_v0, %v2319_v10  ;;  %v6770_v12 = vsub.f32 %v6678_v37, %v2319_v10 }
 0x3a4   :  { %v6777_v29 = vsub.f32 %v6680_v59, %v2319_v10  ;;  %v6782_v7 = vsub.f32 %v6688_v17, %v2319_v10  ;;  %v6789_v42 = vsub.f32 %v6690_v52, %v2319_v10  ;;  %v6795_v17 = vsub.f32 %v6698_v1, %v2319_v10 }
 0x3a5   :  { %v2336_v13 = vmul.f32 %v6761_v57, %v6761_v57  ;;  %v2337_v53 = vmul.f32 %v6764_v28, %v6764_v28  ;;  %v2338_v6 = vmul.f32 %v6767_v20, %v6767_v20  ;;  %v2339_v0 = vmul.f32 %v6770_v12, %v6770_v12 }
 0x3a6   :  { %v2340_v59 = vmul.f32 %v6777_v29, %v6777_v29  ;;  %v2341_v2 = vmul.f32 %v6782_v7, %v6782_v7  ;;  %v6801_v19 = vsub.f32 %v6700_v3, %v2319_v10  ;;  %v2342_v52 = vmul.f32 %v6789_v42, %v6789_v42 }
 0x3a7   :  { %v2352_v37 = vsel %vm1870_vm7, %v2336_v13, 0.0  ;;  %v2353_v47 = vsel %vm1870_vm7, %v2337_v53, 0.0  ;;  %v2355_v38 = vsel %vm1870_vm7, %v2338_v6, 0.0  ;;  %v2357_v4 = vsel %vm1870_vm7, %v2339_v0, 0.0 }
 0x3a8   :  { %v2354_v55 = vadd.f32 %v2353_v47, %v2352_v37  ;;  %v2359_v39 = vsel %vm1870_vm7, %v2340_v59, 0.0  ;;  %v6807_v46 = vsub.f32 %v6710_v26, %v2319_v10  ;;  %v2343_v1 = vmul.f32 %v6795_v17, %v6795_v17 }
 0x3a9   :  { %v2361_v56 = vsel %vm1870_vm7, %v2341_v2, 0.0  ;;  %v6813_v23 = vsub.f32 %v6712_v60, %v2319_v10  ;;  %v2344_v3 = vmul.f32 %v6801_v19, %v6801_v19  ;;  %v2363_v14 = vsel %vm1870_vm7, %v2342_v52, 0.0  ;;  %v2264_v2 = vld [vmem:[%s7710_s24] sm:$0x1] }
 0x3aa   :  { %v2356_v30 = vadd.f32 %v2355_v38, %v2354_v55  ;;  %v6819_v45 = vsub.f32 %v6721_v44, %v2319_v10  ;;  %v2345_v26 = vmul.f32 %v6807_v46, %v6807_v46  ;;  %v2365_v49 = vsel %vm1870_vm7, %v2343_v1, 0.0 }
 0x3ab   :  { %v6825_v11 = vsub.f32 %v6724_v15, %v2319_v10  ;;  %v2346_v60 = vmul.f32 %v6813_v23, %v6813_v23  ;;  %v2367_v50 = vsel %vm1870_vm7, %v2344_v3, 0.0  ;;  %v6831_v62 = vsub.f32 %v6730_v35, %v2319_v10 }
 0x3ac   :  { %v2358_v31 = vadd.f32 %v2357_v4, %v2356_v30  ;;  %v2347_v44 = vmul.f32 %v6819_v45, %v6819_v45  ;;  %v2369_v33 = vsel %vm1870_vm7, %v2345_v26, 0.0  ;;  %v6837_v54 = vsub.f32 %v6742_v51, %v2319_v10 }
 0x3ad   :  { %v2348_v15 = vmul.f32 %v6825_v11, %v6825_v11  ;;  %v2371_v43 = vsel %vm1870_vm7, %v2346_v60, 0.0  ;;  %v6843_v41 = vsub.f32 %v6740_v48, %v2319_v10  ;;  %v2349_v35 = vmul.f32 %v6831_v62, %v6831_v62 }
 0x3ae   :  { %v2360_v63 = vadd.f32 %v2359_v39, %v2358_v31  ;;  %v2373_v34 = vsel %vm1870_vm7, %v2347_v44, 0.0  ;;  %v2350_v27 = vmul.f32 %v6837_v54, %v6837_v54  ;;  %v6865_v39 = vld [vmem:[%s7711_s26] ss:$0 sm:$0xff] }
 0x3af   :  { %v2375_v51 = vsel %vm1870_vm7, %v2348_v15, 0.0  ;;  %v2351_v24 = vmul.f32 %v6843_v41, %v6843_v41  ;;  %v2377_v9 = vsel %vm1870_vm7, %v2349_v35, 0.0 }
 0x3b0   :  { %v2362_v58 = vadd.f32 %v2361_v56, %v2360_v63  ;;  %v2379_v48 = vsel %vm1870_vm7, %v2350_v27, 0.0  ;;  %v6868_v63 = vadd.s32 56, %v5969_v18 }
 0x3b1   :  { %v2381_v13 = vsel %vm1870_vm7, %v2351_v24, 0.0 }
 0x3b2   :  { %v2364_v5 = vadd.f32 %v2363_v14, %v2362_v58 }
 0x3b4   :  { %v2366_v21 = vadd.f32 %v2365_v49, %v2364_v5  ;;  %v2444_v49 = vand.u32 63, %v6868_v63 }
 0x3b6   :  { %v2368_v36 = vadd.f32 %v2367_v50, %v2366_v21  ;;  %vm6939_vm10 = vcmp.le.s32.totalorder %v2444_v49, 62 }
 0x3b8   :  { %v2370_v16 = vadd.f32 %v2369_v33, %v2368_v36 }
 0x3ba   :  { %v2372_v61 = vadd.f32 %v2371_v43, %v2370_v16 }
 0x3bc   :  { %v2374_v8 = vadd.f32 %v2373_v34, %v2372_v61 }
 0x3be   :  { %v2376_v40 = vadd.f32 %v2375_v51, %v2374_v8 }
 0x3c0   :  { %v2378_v32 = vadd.f32 %v2377_v9, %v2376_v40 }
 0x3c2   :  { %v2380_v10 = vadd.f32 %v2379_v48, %v2378_v32 }
 0x3c4   :  { %v2382_v53 = vadd.f32 %v2381_v13, %v2380_v10 }
 0x3c6   :  { %v2383_v6 = vrot.slane %v2382_v53, 4 }
 0x3c8   :  { %v2384_v0 = vadd.f32 %v2383_v6, %v2382_v53 }
 0x3ca   :  { %v2385_v37 = vrot.slane %v2384_v0, 2 }
 0x3cc   :  { %v2386_v47 = vadd.f32 %v2385_v37, %v2384_v0 }
 0x3ce   :  { %v2387_v55 = vrot.slane %v2386_v47, 1 }
 0x3d0   :  { %v2388_v59 = vadd.f32 %v2387_v55, %v2386_v47 }
 0x3d2   :  { %v2389_v38 = vmul.f32 0.0078125, %v2388_v59 }
 0x3d4   :  { %v2390_v30 = vadd.f32 1e-05, %v2389_v38 }
 0x3d6   :  { %5246 = vrsqrt.f32 %v2390_v30 }
 0x3e0   :  { %v5247_v4 = vpop.eup %5246 }
 0x3e1   :  { %v2392_v31 = vmul.f32 %v5247_v4, %v2264_v2 }
 0x3e3   :  { %v6860_v52 = vrot.slane %v2392_v31, %v5978_v22 }
 0x3e5   :  { %v2401_v1 = vmul.f32 %v6860_v52, %v6767_v20  ;;  %v2402_v56 = vmul.f32 %v6860_v52, %v6770_v12  ;;  %v2399_v58 = vmul.f32 %v6860_v52, %v6761_v57  ;;  %v2400_v3 = vmul.f32 %v6860_v52, %v6764_v28 }
 0x3e6   :  { %v2403_v14 = vmul.f32 %v6860_v52, %v6777_v29  ;;  %v2405_v5 = vmul.f32 %v6860_v52, %v6789_v42  ;;  %v2406_v26 = vmul.f32 %v6860_v52, %v6795_v17  ;;  %v2404_v20 = vmul.f32 %v6860_v52, %v6782_v7 }
 0x3e7   :  { %v6887_v12 = vadd.f32 %v6865_v39, %v2401_v1  ;;  %v6890_v57 = vadd.f32 %v6865_v39, %v2402_v56  ;;  %v6893_v28 = vadd.f32 %v6865_v39, %v2399_v58  ;;  %v6896_v29 = vadd.f32 %v6865_v39, %v2400_v3 }
 0x3e8   :  { %v6899_v42 = vadd.f32 %v6865_v39, %v2403_v14  ;;  %v6902_v17 = vadd.f32 %v6865_v39, %v2405_v5  ;;  %v6905_v7 = vadd.f32 %v6865_v39, %v2406_v26  ;;  %v6918_v15 = vadd.f32 %v6865_v39, %v2404_v20 }
 0x3e9   :  { %v5034_v21 = vpack.i.bf16 %v6890_v57, %v6887_v12  ;;  %v5029_v60 = vpack.i.bf16 %v6896_v29, %v6893_v28  ;;  %v2535_v50 = vrot.slane %v6887_v12, 1  ;;  %v2536_v36 = vrot.slane %v6890_v57, 1 }
 0x3ea   :  { %v2537_v44 = vrot.slane %v6899_v42, 1  ;;  %v2533_v33 = vrot.slane %v6893_v28, 1  ;;  %v2534_v16 = vrot.slane %v6896_v29, 1  ;;  %v2407_v61 = vmul.f32 %v6860_v52, %v6801_v19 }
 0x3eb   :  { %5035 = vrot.lane.b32.xlu1 %v5034_v21, %s5285_s25  ;;  %5030 = vrot.lane.b32.xlu0 %v5029_v60, %s5285_s25  ;;  %v2561_v43 = vsel %vm1517_vm2, %v2535_v50, %v2536_v36  ;;  %v2539_v35 = vrot.slane %v6902_v17, 1  ;;  %v2540_v51 = vrot.slane %v6905_v7, 1  ;;  %v2538_v32 = vrot.slane %v6918_v15, 1 }
 0x3ec   :  { %v2560_v34 = vsel %vm1517_vm2, %v2536_v36, %v2537_v44  ;;  %v2562_v8 = vsel %vm1517_vm2, %v2534_v16, %v2535_v50  ;;  %v2563_v27 = vsel %vm1517_vm2, %v2533_v33, %v2534_v16  ;;  %v6937_v9 = vadd.f32 %v6865_v39, %v2407_v61 }
 0x3ed   :  { %v5049_v40 = vpack.i.bf16 %v2560_v34, %v2561_v43  ;;  %v5039_v24 = vpack.i.bf16 %v2562_v8, %v2563_v27  ;;  %v2409_v48 = vmul.f32 %v6860_v52, %v6813_v23  ;;  %v2410_v10 = vmul.f32 %v6860_v52, %v6819_v45 }
 0x3ee   :  { %v2408_v13 = vmul.f32 %v6860_v52, %v6807_v46  ;;  %v5054_v53 = vpack.i.bf16 %v6905_v7, %v6902_v17  ;;  %v5044_v6 = vpack.i.bf16 %v6918_v15, %v6899_v42  ;;  %v2541_v0 = vrot.slane %v6937_v9, 1 }
 0x3ef   :  { %5050 = vrot.lane.b32.xlu1 %v5049_v40, %s5286_s2  ;;  %5040 = vrot.lane.b32.xlu0 %v5039_v24, %s5286_s2  ;;  %v2411_v23 = vmul.f32 %v6860_v52, %v6825_v11  ;;  %v2557_v45 = vsel %vm1517_vm2, %v2539_v35, %v2540_v51  ;;  %v6962_v46 = vadd.f32 %v6865_v39, %v2409_v48  ;;  %v2452_v26 = vand.u32 63, %v6103_v25 }
 0x3f0   :  { %v6965_v37 = vadd.f32 %v6865_v39, %v2410_v10  ;;  %v6968_v47 = vadd.f32 %v6865_v39, %v2408_v13  ;;  %v2556_v55 = vsel %vm1517_vm2, %v2540_v51, %v2541_v0  ;;  %v2413_v11 = vmul.f32 %v6860_v52, %v6837_v54 }
 0x3f1   :  { %v6973_v59 = vadd.f32 %v6865_v39, %v2411_v23  ;;  %v2414_v38 = vmul.f32 %v6860_v52, %v6843_v41  ;;  %v2572_v30 = vsel %vm6939_vm10, %v2556_v55, 0.0  ;;  %v2558_v2 = vsel %vm1517_vm2, %v2538_v32, %v2539_v35 }
 0x3f2   :  { %v2559_v4 = vsel %vm1517_vm2, %v2537_v44, %v2538_v32  ;;  %v2543_v31 = vrot.slane %v6962_v46, 1  ;;  %v2544_v54 = vrot.slane %v6965_v37, 1  ;;  %v2542_v41 = vrot.slane %v6968_v47, 1 }
 0x3f3   :  { %5055 = vrot.lane.b32.xlu1 %v5054_v53, %s5285_s25  ;;  %5045 = vrot.lane.b32.xlu0 %v5044_v6, %s5285_s25  ;;  %v2545_v1 = vrot.slane %v6973_v59, 1  ;;  %v6992_v56 = vadd.f32 %v6865_v39, %v2414_v38  ;;  %v2412_v58 = vmul.f32 %v6860_v52, %v6831_v62  ;;  %v5069_v3 = vpack.i.bf16 %v2572_v30, %v2557_v45 }
 0x3f4   :  { %v5059_v14 = vpack.i.bf16 %v2558_v2, %v2559_v4  ;;  %v2435_v5 = vadd.f32 %v6865_v39, %v2413_v11  ;;  %v2553_v49 = vsel %vm1517_vm2, %v2543_v31, %v2544_v54  ;;  %v2554_v21 = vsel %vm1517_vm2, %v2542_v41, %v2543_v31 }
 0x3f5   :  { %v2552_v20 = vsel %vm1517_vm2, %v2544_v54, %v2545_v1  ;;  %v2472_v60 = vrot.slane %v6890_v57, 7  ;;  %v2555_v25 = vsel %vm1517_vm2, %v2541_v0, %v2542_v41  ;;  %v2484_v62 = vrot.slane %v6992_v56, 7 }
 0x3f6   :  { %v2434_v52 = vadd.f32 %v6865_v39, %v2412_v58  ;;  %v2470_v50 = vrot.slane %v6896_v29, 7  ;;  %v2471_v36 = vrot.slane %v6887_v12, 7  ;;  %v2469_v44 = vrot.slane %v6893_v28, 7 }
 0x3f7   :  { %5070 = vrot.lane.b32.xlu1 %v5069_v3, %s5286_s2  ;;  %5060 = vrot.lane.b32.xlu0 %v5059_v14, %s5286_s2  ;;  %v2474_v16 = vrot.slane %v6918_v15, 7  ;;  %v2475_v57 = vrot.slane %v6902_v17, 7  ;;  %v5074_v43 = vpack.i.bf16 %v6965_v37, %v6962_v46  ;;  %v5064_v61 = vpack.i.bf16 %v6968_v47, %v6937_v9 }
 0x3f8   :  { %vm7022_vm11 = vcmp.le.s32.totalorder %v2452_v26, 62  ;;  %v2548_v39 = vrot.slane %v6992_v56, 1  ;;  %v5084_v29 = vpack.i.bf16 %v2552_v20, %v2553_v49  ;;  %v7029_v12 = vsel %vm1388_vm3, %v2471_v36, %v2472_v60 }
 0x3f9   :  { %v2498_v17 = vsel %vm1388_vm3, %v2470_v50, %v2471_v36  ;;  %v7035_v15 = vsel %vm1388_vm3, %v2469_v44, %v2470_v50  ;;  %v5079_v34 = vpack.i.bf16 %v2554_v21, %v2555_v25  ;;  %v5094_v8 = vpack.i.bf16 %v6992_v56, %v2435_v5 }
 0x3fa   :  { %v2547_v27 = vrot.slane %v2435_v5, 1  ;;  %v2476_v51 = vrot.slane %v6905_v7, 7  ;;  %v5089_v40 = vpack.i.bf16 %v2434_v52, %v6973_v59  ;;  %v2500_v24 = vsel %vm1388_vm3, %v2484_v62, %v2469_v44 }
 0x3fb   :  { %5075 = vrot.lane.b32.xlu1 %v5074_v43, %s5285_s25  ;;  %5065 = vrot.lane.b32.xlu0 %v5064_v61, %s5285_s25  ;;  %v7046_v19 = vsel %vm1388_vm3, %v2474_v16, %v2475_v57  ;;  %v2473_v32 = vrot.slane %v6899_v42, 7  ;;  %v2564_v48 = vsel %vm1517_vm2, %v2548_v39, %v2533_v33  ;;  %v2546_v10 = vrot.slane %v2434_v52, 1 }
 0x3fc   :  { %v7055_v7 = vsel %vm1388_vm3, %v2475_v57, %v2476_v51  ;;  %v2478_v13 = vrot.slane %v6968_v47, 7  ;;  %v2479_v28 = vrot.slane %v6962_v46, 7  ;;  %v2480_v42 = vrot.slane %v6965_v37, 7 }
 0x3fd   :  { %v7060_v53 = vsel %vm1388_vm3, %v2473_v32, %v2474_v16  ;;  %v7064_v6 = vsel %vm1388_vm3, %v2472_v60, %v2473_v32  ;;  %v2477_v33 = vrot.slane %v6937_v9, 7  ;;  %v2482_v0 = vrot.slane %v2434_v52, 7 }
 0x3fe   :  { %v2483_v23 = vrot.slane %v2435_v5, 7  ;;  %v2481_v45 = vrot.slane %v6973_v59, 7  ;;  %v2549_v47 = vsel %vm1517_vm2, %v2547_v27, %v2548_v39  ;;  %v2580_v55 = vsel %vm7022_vm11, %v2564_v48, 0.0 }
 0x3ff   :  { %5085 = vrot.lane.b32.xlu1 %v5084_v29, %s5286_s2  ;;  %5080 = vrot.lane.b32.xlu0 %v5079_v34, %s5286_s2  ;;  %v7078_v46 = vsel %vm1388_vm3, %v2479_v28, %v2480_v42  ;;  %v7082_v37 = vsel %vm1388_vm3, %v2478_v13, %v2479_v28  ;;  %v7086_v9 = vsel %vm1388_vm3, %v2477_v33, %v2478_v13  ;;  %v2437_v59 = vand.u32 63, %v5969_v18 }
 0x400   :  { %v7090_v11 = vsel %vm1388_vm3, %v2476_v51, %v2477_v33  ;;  %v7094_v38 = vsel %vm1388_vm3, %v2483_v23, %v2484_v62  ;;  %v7098_v30 = vsel %vm1388_vm3, %v2482_v0, %v2483_v23  ;;  %v2550_v2 = vsel %vm1517_vm2, %v2546_v10, %v2547_v27 }
 0x401   :  { %v2551_v4 = vsel %vm1517_vm2, %v2545_v1, %v2546_v10  ;;  %v7108_v31 = vsel %vm1388_vm3, %v2481_v45, %v2482_v0  ;;  %v7112_v54 = vsel %vm1388_vm3, %v2480_v42, %v2481_v45  ;;  %v5104_v41 = vpack.i.bf16 %v2580_v55, %v2549_v47 }
 0x402   :  { %v5099_v56 = vpack.i.bf16 %v2550_v2, %v2551_v4  ;;  %vm7119_vm12 = vcmp.ge.s32.totalorder %v2437_v59, 1  ;;  %v1268_v27 = vadd.s32 64, %v5969_v18  ;;  %vm3745_vm11 = vcmp.lt.s32.totalorder %v5969_v18, 6 }
 0x403   :  { %5095 = vrot.lane.b32.xlu1 %v5094_v8, %s5285_s25  ;;  %5090 = vrot.lane.b32.xlu0 %v5089_v40, %s5285_s25  ;;  %v2501_v49 = vsel %vm7119_vm12, %v2500_v24, 0.0 }
 0x404   :  { %v2445_v48 = vand.u32 63, %v1268_v27 }
 0x406   :  { %vm7150_vm14 = vcmp.ge.s32.totalorder %v2445_v48, 1 }
 0x407   :  { %5105 = vrot.lane.b32.xlu1 %v5104_v41, %s5286_s2  ;;  %5100 = vrot.lane.b32.xlu0 %v5099_v56, %s5286_s2  ;;  %v2509_v3 = vsel %vm7150_vm14, %v7090_v11, 0.0  ;;  %vm3921_vm14 = vcmask 517120  }
 0x45d   :  { %v5036_v1 = vpop.permute.xlu1 %5035  ;;  %v5031_v58 = vpop.permute.xlu0 %5030 }
 0x45e   :  { %v5038_v14 = vunpack.i.h.bf16 %v5036_v1  ;;  %v5037_v5 = vunpack.i.l.bf16 %v5036_v1  ;;  %v5033_v26 = vunpack.i.h.bf16 %v5031_v58  ;;  %v5032_v20 = vunpack.i.l.bf16 %v5031_v58 }
 0x460   :  { %v2711_v36 = vsel %vm1870_vm7, %v2498_v17, %v5037_v5  ;;  %v2712_v44 = vsel %vm1870_vm7, %v7029_v12, %v5038_v14  ;;  %v2709_v16 = vsel %vm1870_vm7, %v2501_v49, %v5032_v20  ;;  %v2710_v57 = vsel %vm1870_vm7, %v7035_v15, %v5033_v26 }
 0x461   :  { %v5051_v21 = vpop.permute.xlu1 %5050  ;;  %v5041_v60 = vpop.permute.xlu0 %5040 }
 0x462   :  { %v5053_v25 = vunpack.i.h.bf16 %v5051_v21  ;;  %v5052_v62 = vunpack.i.l.bf16 %v5051_v21  ;;  %v5043_v52 = vunpack.i.h.bf16 %v5041_v60  ;;  %v5042_v50 = vunpack.i.l.bf16 %v5041_v60 }
 0x464   :  { %v2727_v43 = vsel %vm332_vm0, %v2711_v36, %v5052_v62  ;;  %v2728_v61 = vsel %vm332_vm0, %v2712_v44, %v5053_v25  ;;  %v2725_v35 = vsel %vm332_vm0, %v2709_v16, %v5042_v50  ;;  %v2726_v39 = vsel %vm332_vm0, %v2710_v57, %v5043_v52 }
 0x465   :  { %v2742_v29 = vpack.c.bf16 %v2728_v61, %v2727_v43  ;;  %v2741_v34 = vpack.c.bf16 %v2726_v39, %v2725_v35  ;;  %v5056_v8 = vpop.permute.xlu1 %5055  ;;  %v5046_v17 = vpop.permute.xlu0 %5045 }
 0x466   :  { %v5058_v12 = vunpack.i.h.bf16 %v5056_v8  ;;  %v5057_v51 = vunpack.i.l.bf16 %v5056_v8  ;;  %v5048_v40 = vunpack.i.h.bf16 %v5046_v17  ;;  %v5047_v24 = vunpack.i.l.bf16 %v5046_v17 }
 0x467   :  { %4783 = vmatprep.mubr.msk.bf16.mxu1 %vm2797_vm13, %v2741_v34 }
 0x468   :  { %4784 = vmatmul.mubr.msk.bf16.vlgmr.msra.gmra.mrb[32].mxu1 %vm2797_vm13, %v2742_v29  ;;  %v2716_v33 = vsel %vm1870_vm7, %v7055_v7, %v5058_v12  ;;  %v2715_v0 = vsel %vm1870_vm7, %v7046_v19, %v5057_v51  ;;  %v2714_v23 = vsel %vm1870_vm7, %v7060_v53, %v5048_v40  ;;  %v2713_v45 = vsel %vm1870_vm7, %v7064_v6, %v5047_v24 }
 0x469   :  { %v5071_v15 = vpop.permute.xlu1 %5070  ;;  %v5061_v32 = vpop.permute.xlu0 %5060 }
 0x46a   :  { %v5073_v10 = vunpack.i.h.bf16 %v5071_v15  ;;  %v5072_v13 = vunpack.i.l.bf16 %v5071_v15  ;;  %v5063_v28 = vunpack.i.h.bf16 %v5061_v32  ;;  %v5062_v42 = vunpack.i.l.bf16 %v5061_v32 }
 0x46c   :  { %v2731_v47 = vsel %vm332_vm0, %v2715_v0, %v5072_v13  ;;  %v2732_v55 = vsel %vm332_vm0, %v2716_v33, %v5073_v10  ;;  %v2729_v2 = vsel %vm332_vm0, %v2713_v45, %v5062_v42  ;;  %v2730_v4 = vsel %vm332_vm0, %v2714_v23, %v5063_v28  ;;  %v5192_v23 = vld [vmem:[%s7674_s10 + $0x18] sm:$0xff]  }
 0x46d   :  { %v2744_v41 = vpack.c.bf16 %v2732_v55, %v2731_v47  ;;  %v2743_v56 = vpack.c.bf16 %v2730_v4, %v2729_v2  ;;  %v5076_v7 = vpop.permute.xlu1 %5075  ;;  %v5066_v59 = vpop.permute.xlu0 %5065  ;;  %v5193_v47 = vld [vmem:[%s7674_s10 + $0x20] sm:$0xff]  }
 0x46e   :  { %v5078_v53 = vunpack.i.h.bf16 %v5076_v7  ;;  %v5077_v1 = vunpack.i.l.bf16 %v5076_v7  ;;  %v5068_v58 = vunpack.i.h.bf16 %v5066_v59  ;;  %v5067_v6 = vunpack.i.l.bf16 %v5066_v59 }
 0x46f   :  { %4787 = vmatprep.mubr.msk.bf16.mxu1 %vm2797_vm13, %v2743_v56 }
 0x470   :  { %4788 = vmatmul.mubr.msk.bf16.gmra.mrb[36].mxu1 %vm2797_vm13, %v2744_v41  ;;  %v2720_v60 = vsel %vm1870_vm7, %v7078_v46, %v5078_v53  ;;  %v2719_v25 = vsel %vm1870_vm7, %v7082_v37, %v5077_v1  ;;  %v2718_v62 = vsel %vm1870_vm7, %v7086_v9, %v5068_v58  ;;  %v2717_v52 = vsel %vm1870_vm7, %v2509_v3, %v5067_v6  ;;  %v5194_v41 = vld [vmem:[%s7674_s10 + $0x28] sm:$0xff]   ;;  %v5195_v1 = vld [vmem:[%s7674_s10 + $0x30] sm:$0xff]  }
 0x471   :  { %v5086_v14 = vpop.permute.xlu1 %5085  ;;  %v5081_v5 = vpop.permute.xlu0 %5080 }
 0x472   :  { %v5088_v26 = vunpack.i.h.bf16 %v5086_v14  ;;  %v5087_v20 = vunpack.i.l.bf16 %v5086_v14  ;;  %v5083_v49 = vunpack.i.h.bf16 %v5081_v5  ;;  %v5082_v21 = vunpack.i.l.bf16 %v5081_v5 }
 0x474   :  { %v2735_v50 = vsel %vm332_vm0, %v2719_v25, %v5087_v20  ;;  %v2736_v11 = vsel %vm332_vm0, %v2720_v60, %v5088_v26  ;;  %v2733_v36 = vsel %vm332_vm0, %v2717_v52, %v5082_v21  ;;  %v2734_v44 = vsel %vm332_vm0, %v2718_v62, %v5083_v49  ;;  %v5196_v26 = vld [vmem:[%s7674_s10 + $0x38] sm:$0xff]  }
 0x475   :  { %v2746_v16 = vpack.c.bf16 %v2736_v11, %v2735_v50  ;;  %v2745_v57 = vpack.c.bf16 %v2734_v44, %v2733_v36  ;;  %v5096_v43 = vpop.permute.xlu1 %5095  ;;  %v5091_v46 = vpop.permute.xlu0 %5090  ;;  %v5197_v36 = vld [vmem:[%s7674_s10 + $0x40] sm:$0xff]  }
 0x476   :  { %v5098_v61 = vunpack.i.h.bf16 %v5096_v43  ;;  %v5097_v35 = vunpack.i.l.bf16 %v5096_v43  ;;  %v5093_v37 = vunpack.i.h.bf16 %v5091_v46  ;;  %v5092_v39 = vunpack.i.l.bf16 %v5091_v46 }
 0x477   :  { %4791 = vmatprep.mubr.msk.bf16.mxu1 %vm2797_vm13, %v2745_v57 }
 0x478   :  { %4792 = vmatmul.mubr.msk.bf16.gmra.mrb[40].mxu1 %vm2797_vm13, %v2746_v16  ;;  %v2724_v12 = vsel %vm1870_vm7, %v7094_v38, %v5098_v61  ;;  %v2723_v51 = vsel %vm1870_vm7, %v7098_v30, %v5097_v35  ;;  %v2722_v40 = vsel %vm1870_vm7, %v7108_v31, %v5093_v37  ;;  %v2721_v24 = vsel %vm1870_vm7, %v7112_v54, %v5092_v39  ;;  %v5189_v38 = vld [vmem:[%s7674_s10] sm:$0xff]   ;;  %v5190_v31 = vld [vmem:[%s7674_s10 + $0x8] sm:$0xff]   ;;  %v5191_v54 = vld [vmem:[%s7674_s10 + $0x10] sm:$0xff]  }
 0x479   :  { %v5106_v9 = vpop.permute.xlu1 %5105  ;;  %v5101_v29 = vpop.permute.xlu0 %5100  ;;  %v5287_v30 = vmov 0   ;;  %v5198_v61 = vld [vmem:[%s7674_s10 + $0x48] sm:$0xff]  }
 0x47a   :  { %v5108_v34 = vunpack.i.h.bf16 %v5106_v9  ;;  %v5107_v8 = vunpack.i.l.bf16 %v5106_v9  ;;  %v5103_v17 = vunpack.i.h.bf16 %v5101_v29  ;;  %v5102_v27 = vunpack.i.l.bf16 %v5101_v29  ;;  %3303 = vmatprep.subr.bf16.mxu1 %v5287_v30  ;;  %3622 = vmatprep.subr.bf16.mxu0 %v5287_v30 }
 0x47b   :  { %3304 = vmatpush1.bf16.msra.mxu1 %v5189_v38 }
 0x47c   :  { %v2740_v15 = vsel %vm332_vm0, %v2724_v12, %v5108_v34  ;;  %v2739_v32 = vsel %vm332_vm0, %v2723_v51, %v5107_v8  ;;  %v2737_v48 = vsel %vm332_vm0, %v2721_v24, %v5102_v27  ;;  %v2738_v10 = vsel %vm332_vm0, %v2722_v40, %v5103_v17  ;;  %3305 = vmatprep.subr.bf16.mxu1 %v5287_v30 }
 0x47d   :  { %v2748_v13 = vpack.c.bf16 %v2740_v15, %v2739_v32  ;;  %v2747_v28 = vpack.c.bf16 %v2738_v10, %v2737_v48  ;;  %v5199_v15 = vld [vmem:[%s7674_s10 + $0x50] sm:$0xff]  }
 0x47f   :  { %4795 = vmatprep.mubr.msk.bf16.mxu1 %vm2797_vm13, %v2747_v28  ;;  %3306 = vmatpush1.bf16.msra.mxu1 %v5190_v31 }
 0x480   :  { %4796 = vmatmul.mubr.msk.bf16.gmra.mrb[44].mxu1 %vm2797_vm13, %v2748_v13  ;;  %3307 = vmatprep.subr.bf16.mxu1 %v5287_v30 }
 0x483   :  { %3308 = vmatpush1.bf16.msra.mxu1 %v5191_v54 }
 0x484   :  { %3309 = vmatprep.subr.bf16.mxu1 %v5287_v30 }
 0x487   :  { %3310 = vmatpush1.bf16.msra.mxu1 %v5192_v23 }
 0x488   :  { %3311 = vmatprep.subr.bf16.mxu1 %v5287_v30 }
 0x48b   :  { %3312 = vmatpush1.bf16.msra.mxu1 %v5193_v47 }
 0x48c   :  { %3313 = vmatprep.subr.bf16.mxu1 %v5287_v30 }
 0x48f   :  { %3314 = vmatpush1.bf16.msra.mxu1 %v5194_v41 }
 0x490   :  { %3315 = vmatprep.subr.bf16.mxu1 %v5287_v30 }
 0x493   :  { %3316 = vmatpush1.bf16.msra.mxu1 %v5195_v1 }
 0x494   :  { %3317 = vmatprep.subr.bf16.mxu1 %v5287_v30 }
 0x497   :  { %3318 = vmatpush1.bf16.msra.mxu1 %v5196_v26 }
 0x498   :  { %3319 = vmatprep.subr.bf16.mxu1 %v5287_v30 }
 0x49b   :  { %3320 = vmatpush1.bf16.msra.mxu1 %v5197_v36 }
 0x49c   :  { %3321 = vmatprep.subr.bf16.mxu1 %v5287_v30 }
 0x49f   :  { %3322 = vmatpush1.bf16.msra.mxu1 %v5198_v61 }
 0x4a0   :  { %3323 = vmatprep.subr.bf16.mxu1 %v5287_v30 }
 0x4a3   :  { %3324 = vmatpush1.bf16.msra.mxu1 %v5199_v15 }
 0x4a4   :  { %3325 = vmatprep.subr.bf16.mxu1 %v5287_v30 }
 0x53b   :  { %v4785_v42 = vpop.f32.mrb[32].mxu1 }
 0x53c   :  { %2921 = vst.msk [vmem:[#allocation4 + $0x10] sm:$0xff] %vm332_vm0, %v4785_v42  ;;  %v2856_v33 = vpop.f32.mrb[33].mxu1 }
 0x53d   :  { %2919 = vst.msk [vmem:[#allocation4] sm:$0xff] %vm332_vm0, %v2856_v33  ;;  %v4786_v0 = vpop.f32.mrb[34].mxu1 }
 0x53e   :  { %2922 = vst.msk [vmem:[#allocation4 + $0x18] sm:$0xff] %vm332_vm0, %v4786_v0  ;;  %v2859_v45 = vpop.f32.mrb[35].mxu1 }
 0x53f   :  { %2920 = vst.msk [vmem:[#allocation4 + $0x8] sm:$0xff] %vm332_vm0, %v2859_v45 }
 0x543   :  { %v4789_v55 = vpop.f32.mrb[36].mxu1 }
 0x544   :  { %2925 = vst.msk [vmem:[#allocation4 + $0x30] sm:$0xff] %vm332_vm0, %v4789_v55  ;;  %v2872_v2 = vpop.f32.mrb[37].mxu1 }
 0x545   :  { %2923 = vst.msk [vmem:[#allocation4 + $0x20] sm:$0xff] %vm332_vm0, %v2872_v2  ;;  %v4790_v4 = vpop.f32.mrb[38].mxu1  ;;  %v2937_v7 = vld [vmem:[#allocation4 + $0x10] ss:$2 sm:$0xff]  ;;  %v2953_v53 = vld [vmem:[#allocation4 + $0x11] ss:$2 sm:$0xff] }
 0x546   :  { %2926 = vst.msk [vmem:[#allocation4 + $0x38] sm:$0xff] %vm332_vm0, %v4790_v4  ;;  %v2875_v56 = vpop.f32.mrb[39].mxu1  ;;  %v2935_v59 = vld [vmem:[#allocation4] ss:$2 sm:$0xff]  ;;  %v2951_v19 = vld [vmem:[#allocation4 + $0x1] ss:$2 sm:$0xff]  ;;  %v2967_v3 = vmax.f32 %v2937_v7, %v2953_v53 }
 0x547   :  { %2924 = vst.msk [vmem:[#allocation4 + $0x28] sm:$0xff] %vm332_vm0, %v2875_v56  ;;  %v2966_v6 = vmax.f32 %v2935_v59, %v2951_v19 }
 0x548   :  { %v7233_v62 = vmax.f32 %v2967_v3, 0.0 }
 0x549   :  { %v7231_v25 = vmax.f32 %v2966_v6, 0.0 }
 0x54a   :  { %v2985_v43 = vsel %vm332_vm0, %v7233_v62, 0.0 }
 0x54b   :  { %v4793_v58 = vpop.f32.mrb[40].mxu1  ;;  %v2984_v57 = vsel %vm332_vm0, %v7231_v25, 0.0 }
 0x54c   :  { %2929 = vst.msk [vmem:[#allocation4 + $0x50] sm:$0xff] %vm332_vm0, %v4793_v58  ;;  %v2888_v14 = vpop.f32.mrb[41].mxu1  ;;  %v2986_v17 = vadd.f32 %v2985_v43, %v2984_v57 }
 0x54d   :  { %2927 = vst.msk [vmem:[#allocation4 + $0x40] sm:$0xff] %vm332_vm0, %v2888_v14  ;;  %v4794_v5 = vpop.f32.mrb[42].mxu1  ;;  %v2941_v52 = vld [vmem:[#allocation4 + $0x30] ss:$2 sm:$0xff]  ;;  %v2957_v50 = vld [vmem:[#allocation4 + $0x31] ss:$2 sm:$0xff] }
 0x54e   :  { %2930 = vst.msk [vmem:[#allocation4 + $0x58] sm:$0xff] %vm332_vm0, %v4794_v5  ;;  %v2891_v20 = vpop.f32.mrb[43].mxu1  ;;  %v2939_v49 = vld [vmem:[#allocation4 + $0x20] ss:$2 sm:$0xff]  ;;  %v2955_v21 = vld [vmem:[#allocation4 + $0x21] ss:$2 sm:$0xff]  ;;  %v2969_v16 = vmax.f32 %v2941_v52, %v2957_v50 }
 0x54f   :  { %2928 = vst.msk [vmem:[#allocation4 + $0x48] sm:$0xff] %vm332_vm0, %v2891_v20  ;;  %v2968_v60 = vmax.f32 %v2939_v49, %v2955_v21 }
 0x550   :  { %v2979_v12 = vmax.f32 %v2969_v16, 0.0 }
 0x551   :  { %v2978_v11 = vmax.f32 %v2968_v60, 0.0 }
 0x552   :  { %v2989_v32 = vsel %vm332_vm0, %v2979_v12, 0.0 }
 0x553   :  { %v4797_v44 = vpop.f32.mrb[44].mxu1  ;;  %v2987_v9 = vsel %vm332_vm0, %v2978_v11, 0.0 }
 0x554   :  { %2933 = vst.msk [vmem:[#allocation4 + $0x70] sm:$0xff] %vm332_vm0, %v4797_v44  ;;  %v2904_v46 = vpop.f32.mrb[45].mxu1  ;;  %v2988_v51 = vadd.f32 %v2987_v9, %v2986_v17 }
 0x555   :  { %2931 = vst.msk [vmem:[#allocation4 + $0x60] sm:$0xff] %vm332_vm0, %v2904_v46  ;;  %v4798_v35 = vpop.f32.mrb[46].mxu1  ;;  %v2945_v37 = vld [vmem:[#allocation4 + $0x50] ss:$2 sm:$0xff]  ;;  %v2961_v39 = vld [vmem:[#allocation4 + $0x51] ss:$2 sm:$0xff] }
 0x556   :  { %2934 = vst.msk [vmem:[#allocation4 + $0x78] sm:$0xff] %vm332_vm0, %v4798_v35  ;;  %v2907_v29 = vpop.f32.mrb[47].mxu1  ;;  %v2943_v34 = vld [vmem:[#allocation4 + $0x40] ss:$2 sm:$0xff]  ;;  %v2959_v8 = vld [vmem:[#allocation4 + $0x41] ss:$2 sm:$0xff]  ;;  %v2971_v40 = vmax.f32 %v2945_v37, %v2961_v39  ;;  %v2990_v10 = vadd.f32 %v2989_v32, %v2988_v51 }
 0x557   :  { %2932 = vst.msk [vmem:[#allocation4 + $0x68] sm:$0xff] %vm332_vm0, %v2907_v29  ;;  %v2970_v27 = vmax.f32 %v2943_v34, %v2959_v8 }
 0x558   :  { %v2981_v38 = vmax.f32 %v2971_v40, 0.0 }
 0x559   :  { %v2980_v24 = vmax.f32 %v2970_v27, 0.0 }
 0x55a   :  { %v2993_v47 = vsel %vm332_vm0, %v2981_v38, 0.0 }
 0x55b   :  { %v2991_v48 = vsel %vm332_vm0, %v2980_v24, 0.0 }
 0x55c   :  { %v2992_v33 = vadd.f32 %v2991_v48, %v2990_v10 }
 0x55d   :  { %v2949_v13 = vld [vmem:[#allocation4 + $0x70] ss:$2 sm:$0xff]  ;;  %v2965_v28 = vld [vmem:[#allocation4 + $0x71] ss:$2 sm:$0xff] }
 0x55e   :  { %v2947_v31 = vld [vmem:[#allocation4 + $0x60] ss:$2 sm:$0xff]  ;;  %v2963_v54 = vld [vmem:[#allocation4 + $0x61] ss:$2 sm:$0xff]  ;;  %v2973_v42 = vmax.f32 %v2949_v13, %v2965_v28  ;;  %v2994_v55 = vadd.f32 %v2993_v47, %v2992_v33  ;;  %v5200_v33 = vld [vmem:[%s7674_s10 + $0x58] sm:$0xff]   ;;  %v3082_v47 = vand.u32 31, %v6868_v63 }
 0x55f   :  { %v2972_v0 = vmax.f32 %v2947_v31, %v2963_v54  ;;  %v7276_v54 = vadd.s32 24, %v5969_v18  ;;  %3326 = vmatpush1.bf16.msra.mxu1 %v5200_v33 }
 0x560   :  { %v2983_v45 = vmax.f32 %v2973_v42, 0.0  ;;  %3861 = vmatprep.subr.bf16.mxu1 %v5287_v30  ;;  %vm3122_vm1 = vcmp.le.s32.totalorder %v3082_v47, 30  ;;  %v3075_v47 = vand.u32 31, %v5969_v18 }
 0x561   :  { %v2982_v23 = vmax.f32 %v2972_v0, 0.0 }
 0x562   :  { %v2997_v41 = vsel %vm332_vm0, %v2983_v45, 0.0  ;;  %vm3083_vm4 = vcmp.ge.s32.totalorder %v3075_v47, 1 }
 0x563   :  { %v2995_v2 = vsel %vm332_vm0, %v2982_v23, 0.0 }
 0x564   :  { %v2996_v4 = vadd.f32 %v2995_v2, %v2994_v55 }
 0x566   :  { %v2998_v56 = vadd.f32 %v2997_v41, %v2996_v4 }
 0x568   :  { %v2999_v7 = vrot.slane %v2998_v56, 4 }
 0x56a   :  { %v3000_v59 = vadd.f32 %v2999_v7, %v2998_v56 }
 0x56c   :  { %v3001_v19 = vrot.slane %v3000_v59, 2 }
 0x56e   :  { %v3002_v53 = vadd.f32 %v3001_v19, %v3000_v59 }
 0x570   :  { %v3003_v1 = vrot.slane %v3002_v53, 1 }
 0x572   :  { %v3004_v58 = vadd.f32 %v3003_v1, %v3002_v53 }
 0x574   :  { %v3005_v6 = vmul.f32 0.015625, %v3004_v58 }
 0x576   :  { %v3006_v3 = vsub.f32 %v7231_v25, %v3005_v6  ;;  %v3007_v14 = vsub.f32 %v7233_v62, %v3005_v6  ;;  %v3008_v5 = vsub.f32 %v2978_v11, %v3005_v6  ;;  %v3009_v26 = vsub.f32 %v2979_v12, %v3005_v6 }
 0x577   :  { %v3010_v20 = vsub.f32 %v2980_v24, %v3005_v6  ;;  %v3011_v52 = vsub.f32 %v2981_v38, %v3005_v6  ;;  %v3012_v57 = vsub.f32 %v2982_v23, %v3005_v6  ;;  %v3013_v61 = vsub.f32 %v2983_v45, %v3005_v6  ;;  %v2974_v38 = vld [vmem:[%s7672_s8] sm:$0x1] }
 0x578   :  { %v3014_v49 = vmul.f32 %v3006_v3, %v3006_v3  ;;  %v3015_v21 = vmul.f32 %v3007_v14, %v3007_v14  ;;  %v3016_v60 = vmul.f32 %v3008_v5, %v3008_v5  ;;  %v3017_v50 = vmul.f32 %v3009_v26, %v3009_v26  ;;  %v4481_v23 = vld [vmem:[%s7673_s9] ss:$0 sm:$0xff] }
 0x579   :  { %v3018_v43 = vmul.f32 %v3010_v20, %v3010_v20  ;;  %v3019_v62 = vmul.f32 %v3011_v52, %v3011_v52  ;;  %v3020_v37 = vmul.f32 %v3012_v57, %v3012_v57  ;;  %v3021_v29 = vmul.f32 %v3013_v61, %v3013_v61 }
 0x57a   :  { %v3022_v36 = vsel %vm332_vm0, %v3014_v49, 0.0  ;;  %v3023_v44 = vsel %vm332_vm0, %v3015_v21, 0.0  ;;  %v3025_v46 = vsel %vm332_vm0, %v3016_v60, 0.0  ;;  %v3027_v11 = vsel %vm332_vm0, %v3017_v50, 0.0 }
 0x57b   :  { %v3024_v16 = vadd.f32 %v3023_v44, %v3022_v36  ;;  %v3029_v39 = vsel %vm332_vm0, %v3018_v43, 0.0  ;;  %v3031_v34 = vsel %vm332_vm0, %v3019_v62, 0.0  ;;  %v3033_v17 = vsel %vm332_vm0, %v3020_v37, 0.0 }
 0x57c   :  { %v3035_v12 = vsel %vm332_vm0, %v3021_v29, 0.0  ;;  %v3078_v45 = vand.u32 31, %v7276_v54 }
 0x57d   :  { %v3026_v25 = vadd.f32 %v3025_v46, %v3024_v16 }
 0x57e   :  { %vm7288_vm15 = vcmp.le.s32.totalorder %v3078_v45, 30 }
 0x57f   :  { %v3028_v35 = vadd.f32 %v3027_v11, %v3026_v25 }
 0x581   :  { %v3030_v9 = vadd.f32 %v3029_v39, %v3028_v35 }
 0x583   :  { %v3032_v8 = vadd.f32 %v3031_v34, %v3030_v9 }
 0x585   :  { %v3034_v27 = vadd.f32 %v3033_v17, %v3032_v8 }
 0x587   :  { %v3036_v51 = vadd.f32 %v3035_v12, %v3034_v27 }
 0x589   :  { %v3037_v40 = vrot.slane %v3036_v51, 4 }
 0x58b   :  { %v3038_v24 = vadd.f32 %v3037_v40, %v3036_v51 }
 0x58d   :  { %v3039_v15 = vrot.slane %v3038_v24, 2 }
 0x58f   :  { %v3040_v32 = vadd.f32 %v3039_v15, %v3038_v24 }
 0x591   :  { %v3041_v48 = vrot.slane %v3040_v32, 1 }
 0x593   :  { %v3042_v10 = vadd.f32 %v3041_v48, %v3040_v32 }
 0x595   :  { %v3043_v13 = vmul.f32 0.015625, %v3042_v10 }
 0x597   :  { %v3044_v28 = vadd.f32 1e-05, %v3043_v13 }
 0x599   :  { %5248 = vrsqrt.f32 %v3044_v28 }
 0x5a3   :  { %v5249_v31 = vpop.eup %5248 }
 0x5a4   :  { %v3046_v42 = vmul.f32 %v5249_v31, %v2974_v38 }
 0x5a6   :  { %v3051_v0 = vrot.slane %v3046_v42, %v5978_v22 }
 0x5a8   :  { %v3055_v55 = vmul.f32 %v3051_v0, %v3008_v5  ;;  %v3056_v2 = vmul.f32 %v3051_v0, %v3009_v26  ;;  %v3053_v4 = vmul.f32 %v3051_v0, %v3006_v3  ;;  %v3054_v41 = vmul.f32 %v3051_v0, %v3007_v14 }
 0x5a9   :  { %v3059_v56 = vmul.f32 %v3051_v0, %v3012_v57  ;;  %v3060_v7 = vmul.f32 %v3051_v0, %v3013_v61  ;;  %v3057_v59 = vmul.f32 %v3051_v0, %v3010_v20  ;;  %v3058_v19 = vmul.f32 %v3051_v0, %v3011_v52 }
 0x5aa   :  { %v3069_v53 = vadd.f32 %v4481_v23, %v3055_v55  ;;  %v3070_v1 = vadd.f32 %v4481_v23, %v3056_v2  ;;  %v3067_v58 = vadd.f32 %v4481_v23, %v3053_v4  ;;  %v3068_v6 = vadd.f32 %v4481_v23, %v3054_v41 }
 0x5ab   :  { %v3073_v49 = vadd.f32 %v4481_v23, %v3059_v56  ;;  %v3074_v21 = vadd.f32 %v4481_v23, %v3060_v7  ;;  %v3071_v60 = vadd.f32 %v4481_v23, %v3057_v59  ;;  %v3072_v50 = vadd.f32 %v4481_v23, %v3058_v19 }
 0x5ac   :  { %v5114_v36 = vpack.i.bf16 %v3070_v1, %v3069_v53  ;;  %v5109_v63 = vpack.i.bf16 %v3068_v6, %v3067_v58  ;;  %v3123_v44 = vrot.slane %v3067_v58, 1  ;;  %v3124_v16 = vrot.slane %v3068_v6, 1 }
 0x5ad   :  { %v3125_v5 = vrot.slane %v3069_v53, 1  ;;  %v3098_v26 = vrot.slane %v3074_v21, 7  ;;  %v5124_v3 = vpack.i.bf16 %v3074_v21, %v3073_v49  ;;  %v3127_v52 = vrot.slane %v3071_v60, 1 }
 0x5ae   :  { %5115 = vrot.lane.b32.xlu1 %v5114_v36, %s5286_s2  ;;  %5110 = vrot.lane.b32.xlu0 %v5109_v63, %s5286_s2  ;;  %v3137_v20 = vsel %vm1517_vm2, %v3123_v44, %v3124_v16  ;;  %v3092_v57 = vrot.slane %v3068_v6, 7  ;;  %v3091_v43 = vrot.slane %v3067_v58, 7  ;;  %v3126_v25 = vrot.slane %v3070_v1, 1 }
 0x5af   :  { %v3136_v46 = vsel %vm1517_vm2, %v3124_v16, %v3125_v5  ;;  %v3093_v61 = vrot.slane %v3069_v53, 7  ;;  %v3094_v62 = vrot.slane %v3070_v1, 7  ;;  %v3128_v39 = vrot.slane %v3072_v50, 1 }
 0x5b0   :  { %v3188_v11 = vpack.c.bf16 %v3136_v46, %v3137_v20  ;;  %v3105_v35 = vsel %vm1388_vm3, %v3091_v43, %v3092_v57  ;;  %v3106_v37 = vsel %vm1388_vm3, %v3098_v26, %v3091_v43  ;;  %v5119_v9 = vpack.i.bf16 %v3072_v50, %v3071_v60  ;;  %v5201_v46 = vld [vmem:[%s7677_s13] sm:$0xff]  }
 0x5b1   :  { %v3134_v29 = vsel %vm1517_vm2, %v3126_v25, %v3127_v52  ;;  %v3135_v34 = vsel %vm1517_vm2, %v3125_v5, %v3126_v25  ;;  %v3103_v8 = vsel %vm1388_vm3, %v3093_v61, %v3094_v62  ;;  %v3104_v27 = vsel %vm1388_vm3, %v3092_v57, %v3093_v61  ;;  %3623 = vmatpush1.bf16.msra.mxu0 %v5201_v46  ;;  %v5202_v25 = vld [vmem:[%s7677_s13 + $0x8] sm:$0xff]   ;;  %v5203_v61 = vld [vmem:[%s7677_s13 + $0x10] sm:$0xff]  }
 0x5b2   :  { %4494 = vmatprep.mubr.msk.bf16.mxu1 %vm332_vm0, %v3188_v11  ;;  %5125 = vrot.lane.b32.xlu1 %v5124_v3, %s5286_s2  ;;  %v3142_v17 = vsel %vm7288_vm15, %v3134_v29, 0.0  ;;  %v3129_v12 = vrot.slane %v3073_v49, 1  ;;  %v3133_v51 = vsel %vm1517_vm2, %v3127_v52, %v3128_v39  ;;  %v3095_v24 = vrot.slane %v3071_v60, 7  ;;  %v5205_v11 = vld [vmem:[%s7677_s13 + $0x20] sm:$0xff]  }
 0x5b3   :  { %5120 = vrot.lane.b32.xlu0 %v5119_v9, %s5286_s2  ;;  %v3190_v40 = vpack.c.bf16 %v3142_v17, %v3135_v34  ;;  %v3096_v15 = vrot.slane %v3072_v50, 7  ;;  %v3130_v32 = vrot.slane %v3074_v21, 1  ;;  %v3097_v10 = vrot.slane %v3073_v49, 7  ;;  %3624 = vmatprep.subr.bf16.mxu0 %v5287_v30  ;;  %v5209_v17 = vld [vmem:[%s7677_s13 + $0x40] sm:$0xff]  }
 0x5b4   :  { %v3132_v48 = vsel %vm1517_vm2, %v3128_v39, %v3129_v12  ;;  %v3102_v38 = vsel %vm1388_vm3, %v3094_v62, %v3095_v24  ;;  %v1264_v55 = vadd.s32 32, %v5969_v18  ;;  %v3107_v53 = vsel %vm3083_vm4, %v3106_v37, 0.0  ;;  %v5204_v62 = vld [vmem:[%s7677_s13 + $0x18] sm:$0xff]   ;;  %v5207_v37 = vld [vmem:[%s7677_s13 + $0x30] sm:$0xff]  }
 0x5b5   :  { %v3192_v13 = vpack.c.bf16 %v3132_v48, %v3133_v51  ;;  %v3101_v28 = vsel %vm1388_vm3, %v3095_v24, %v3096_v15  ;;  %v3131_v31 = vsel %vm1517_vm2, %v3129_v12, %v3130_v32  ;;  %v3138_v42 = vsel %vm1517_vm2, %v3130_v32, %v3123_v44  ;;  %3625 = vmatpush1.bf16.msra.mxu0 %v5202_v25  ;;  %v5208_v39 = vld [vmem:[%s7677_s13 + $0x38] sm:$0xff]  }
 0x5b6   :  { %v3099_v33 = vsel %vm1388_vm3, %v3097_v10, %v3098_v26  ;;  %v3100_v0 = vsel %vm1388_vm3, %v3096_v15, %v3097_v10  ;;  %v3146_v23 = vsel %vm3122_vm1, %v3138_v42, 0.0  ;;  %v3079_v41 = vand.u32 31, %v1264_v55  ;;  %3626 = vmatprep.subr.bf16.mxu0 %v5287_v30  ;;  %v5211_v15 = vld [vmem:[%s7677_s13 + $0x50] sm:$0xff]   ;;  %v5212_v32 = vld [vmem:[%s7677_s13 + $0x58] sm:$0xff]  }
 0x5b7   :  { %v3194_v45 = vpack.c.bf16 %v3146_v23, %v3131_v31  ;;  %vm4306_vm15 = vcmask 1041408   ;;  %vm4350_vm1 = vcmask 9216  }
 0x5b8   :  { %vm3087_vm5 = vcmp.ge.s32.totalorder %v3079_v41, 1 }
 0x5b9   :  { %v3111_v26 = vsel %vm3087_vm5, %v3102_v38, 0.0  ;;  %3627 = vmatpush1.bf16.msra.mxu0 %v5203_v61 }
 0x5ba   :  { %3628 = vmatprep.subr.bf16.mxu0 %v5287_v30 }
 0x5bd   :  { %3629 = vmatpush1.bf16.msra.mxu0 %v5204_v62 }
 0x5be   :  { %3630 = vmatprep.subr.bf16.mxu0 %v5287_v30 }
 0x5c1   :  { %3631 = vmatpush1.bf16.msra.mxu0 %v5205_v11 }
 0x5c2   :  { %3632 = vmatprep.subr.bf16.mxu0 %v5287_v30 }
 0x620   :  { %v5116_v2 = vpop.permute.xlu1 %5115  ;;  %v5111_v4 = vpop.permute.xlu0 %5110 }
 0x621   :  { %v5118_v56 = vunpack.i.h.bf16 %v5116_v2  ;;  %v5117_v7 = vunpack.i.l.bf16 %v5116_v2  ;;  %v5113_v59 = vunpack.i.h.bf16 %v5111_v4  ;;  %v5112_v19 = vunpack.i.l.bf16 %v5111_v4 }
 0x623   :  { %v3179_v1 = vsel %vm332_vm0, %v3107_v53, %v5112_v19  ;;  %v3180_v58 = vsel %vm332_vm0, %v3105_v35, %v5113_v59  ;;  %v3181_v6 = vsel %vm332_vm0, %v3104_v27, %v5117_v7  ;;  %v3182_v49 = vsel %vm332_vm0, %v3103_v8, %v5118_v56  ;;  %v5206_v35 = vld [vmem:[%s7677_s13 + $0x28] sm:$0xff]  }
 0x624   :  { %v3187_v21 = vpack.c.bf16 %v3180_v58, %v3179_v1  ;;  %v5126_v60 = vpop.permute.xlu1 %5125  ;;  %v3189_v50 = vpack.c.bf16 %v3182_v49, %v3181_v6  ;;  %3633 = vmatpush1.bf16.msra.mxu0 %v5206_v35  ;;  %v5210_v27 = vld [vmem:[%s7677_s13 + $0x48] sm:$0xff]  }
 0x625   :  { %v5128_v36 = vunpack.i.h.bf16 %v5126_v60  ;;  %v5127_v63 = vunpack.i.l.bf16 %v5126_v60  ;;  %v5121_v44 = vpop.permute.xlu0 %5120  ;;  %3634 = vmatprep.subr.bf16.mxu0 %v5287_v30 }
 0x626   :  { %v5123_v16 = vunpack.i.h.bf16 %v5121_v44  ;;  %v5122_v5 = vunpack.i.l.bf16 %v5121_v44  ;;  %3336 = vmatmul.mubr.bf16.vlgmr.msra.gmra.mrb[48].mxu1 %v3187_v21 }
 0x627   :  { %4495 = vmatprep.mubr.msk.bf16.mxu1 %vm332_vm0, %v3190_v40  ;;  %v3185_v3 = vsel %vm332_vm0, %v3100_v0, %v5127_v63  ;;  %v3186_v14 = vsel %vm332_vm0, %v3099_v33, %v5128_v36 }
 0x628   :  { %v3183_v20 = vsel %vm332_vm0, %v3111_v26, %v5122_v5  ;;  %v3184_v52 = vsel %vm332_vm0, %v3101_v28, %v5123_v16  ;;  %v3193_v57 = vpack.c.bf16 %v3186_v14, %v3185_v3  ;;  %3635 = vmatpush1.bf16.msra.mxu0 %v5207_v37 }
 0x629   :  { %v3191_v43 = vpack.c.bf16 %v3184_v52, %v3183_v20  ;;  %3636 = vmatprep.subr.bf16.mxu0 %v5287_v30 }
 0x62c   :  { %3637 = vmatpush1.bf16.msra.mxu0 %v5208_v39 }
 0x62d   :  { %3638 = vmatprep.subr.bf16.mxu0 %v5287_v30 }
 0x62e   :  { %3344 = vmatmul.mubr.bf16.gmra.mrb[52].mxu1 %v3189_v50 }
 0x62f   :  { %4496 = vmatprep.mubr.msk.bf16.mxu1 %vm332_vm0, %v3192_v13 }
 0x630   :  { %3639 = vmatpush1.bf16.msra.mxu0 %v5209_v17 }
 0x631   :  { %3640 = vmatprep.subr.bf16.mxu0 %v5287_v30 }
 0x634   :  { %3641 = vmatpush1.bf16.msra.mxu0 %v5210_v27 }
 0x635   :  { %3642 = vmatprep.subr.bf16.mxu0 %v5287_v30 }
 0x636   :  { %3352 = vmatmul.mubr.bf16.gmra.mrb[56].mxu1 %v3191_v43 }
 0x637   :  { %4497 = vmatprep.mubr.msk.bf16.mxu1 %vm332_vm0, %v3194_v45 }
 0x638   :  { %3643 = vmatpush1.bf16.msra.mxu0 %v5211_v15 }
 0x639   :  { %3644 = vmatprep.subr.bf16.mxu0 %v5287_v30 }
 0x63c   :  { %3645 = vmatpush1.bf16.msra.mxu0 %v5212_v32 }
 0x63e   :  { %3360 = vmatmul.mubr.bf16.gmra.mrb[60].mxu1 %v3193_v57 }
 0x6f9   :  { %v3337_v9 = vpop.f32.mrb[48].mxu1 }
 0x6fa   :  { %3368 = vst.msk [vmem:[#allocation5] sm:$0xff] %vm332_vm0, %v3337_v9  ;;  %v3339_v29 = vpop.f32.mrb[49].mxu1 }
 0x6fb   :  { %v3340_v34 = vpop.f32.mrb[50].mxu1 }
 0x6fc   :  { %3369 = vst.msk [vmem:[#allocation5 + $0x8] sm:$0xff] %vm332_vm0, %v3340_v34  ;;  %v3342_v8 = vpop.f32.mrb[51].mxu1 }
 0x701   :  { %v3345_v12 = vpop.f32.mrb[52].mxu1 }
 0x702   :  { %3370 = vst.msk [vmem:[#allocation5 + $0x10] sm:$0xff] %vm332_vm0, %v3345_v12  ;;  %v3347_v51 = vpop.f32.mrb[53].mxu1 }
 0x703   :  { %v3348_v40 = vpop.f32.mrb[54].mxu1  ;;  %v3376_v33 = vld [vmem:[#allocation5] ss:$2 sm:$0xff]  ;;  %v3384_v0 = vld [vmem:[#allocation5 + $0x1] ss:$2 sm:$0xff] }
 0x704   :  { %3371 = vst.msk [vmem:[#allocation5 + $0x18] sm:$0xff] %vm332_vm0, %v3348_v40  ;;  %v3350_v24 = vpop.f32.mrb[55].mxu1  ;;  %v3391_v41 = vmax.f32 %v3376_v33, %v3384_v0 }
 0x706   :  { %v3397_v59 = vmax.f32 %v3391_v41, 0.0 }
 0x708   :  { %v3401_v49 = vsel %vm332_vm0, %v3397_v59, 0.0 }
 0x709   :  { %v3353_v48 = vpop.f32.mrb[56].mxu1 }
 0x70a   :  { %3372 = vst.msk [vmem:[#allocation5 + $0x20] sm:$0xff] %vm332_vm0, %v3353_v48  ;;  %v3355_v10 = vpop.f32.mrb[57].mxu1 }
 0x70b   :  { %v3356_v13 = vpop.f32.mrb[58].mxu1  ;;  %v3378_v38 = vld [vmem:[#allocation5 + $0x10] ss:$2 sm:$0xff]  ;;  %v3386_v31 = vld [vmem:[#allocation5 + $0x11] ss:$2 sm:$0xff] }
 0x70c   :  { %3373 = vst.msk [vmem:[#allocation5 + $0x28] sm:$0xff] %vm332_vm0, %v3356_v13  ;;  %v3358_v28 = vpop.f32.mrb[59].mxu1  ;;  %v3392_v45 = vmax.f32 %v3378_v38, %v3386_v31  ;;  %v3395_v10 = vld [vmem:[%s7675_s11] sm:$0x1] }
 0x70d   :  { %v7411_v28 = vadd.s32 8, %v5969_v18 }
 0x70e   :  { %v3398_v7 = vmax.f32 %v3392_v45, 0.0 }
 0x70f   :  { %v3461_v33 = vand.u32 15, %v7411_v28 }
 0x710   :  { %v3402_v53 = vsel %vm332_vm0, %v3398_v7, 0.0 }
 0x711   :  { %v3361_v42 = vpop.f32.mrb[60].mxu1  ;;  %v3403_v60 = vadd.f32 %v3402_v53, %v3401_v49  ;;  %vm7419_vm6 = vcmp.le.s32.totalorder %v3461_v33, 14  ;;  %v5223_v33 = vld [vmem:[%s7680_s16 + $0x50] sm:$0xff]  }
 0x712   :  { %3374 = vst.msk [vmem:[#allocation5 + $0x30] sm:$0xff] %vm332_vm0, %v3361_v42  ;;  %v3363_v23 = vpop.f32.mrb[61].mxu1  ;;  %v4498_v42 = vld [vmem:[%s7676_s12] ss:$0 sm:$0xff] }
 0x713   :  { %v3364_v47 = vpop.f32.mrb[62].mxu1  ;;  %v3380_v55 = vld [vmem:[#allocation5 + $0x20] ss:$2 sm:$0xff]  ;;  %v3388_v2 = vld [vmem:[#allocation5 + $0x21] ss:$2 sm:$0xff] }
 0x714   :  { %3375 = vst.msk [vmem:[#allocation5 + $0x38] sm:$0xff] %vm332_vm0, %v3364_v47  ;;  %v3366_v4 = vpop.f32.mrb[63].mxu1  ;;  %v3393_v56 = vmax.f32 %v3380_v55, %v3388_v2  ;;  %v3463_v55 = vand.u32 15, %v7276_v54 }
 0x716   :  { %v3399_v19 = vmax.f32 %v3393_v56, 0.0  ;;  %vm3483_vm7 = vcmp.le.s32.totalorder %v3463_v55, 14 }
 0x718   :  { %v3404_v21 = vsel %vm332_vm0, %v3399_v19, 0.0 }
 0x719   :  { %v3405_v36 = vadd.f32 %v3404_v21, %v3403_v60 }
 0x71b   :  { %v3382_v1 = vld [vmem:[#allocation5 + $0x30] ss:$2 sm:$0xff]  ;;  %v3390_v58 = vld [vmem:[#allocation5 + $0x31] ss:$2 sm:$0xff] }
 0x71c   :  { %v3394_v6 = vmax.f32 %v3382_v1, %v3390_v58 }
 0x71e   :  { %v3400_v50 = vmax.f32 %v3394_v6, 0.0 }
 0x720   :  { %v3406_v63 = vsel %vm332_vm0, %v3400_v50, 0.0 }
 0x721   :  { %v3407_v44 = vadd.f32 %v3406_v63, %v3405_v36 }
 0x723   :  { %v3408_v16 = vrot.slane %v3407_v44, 4 }
 0x725   :  { %v3409_v5 = vadd.f32 %v3408_v16, %v3407_v44 }
 0x727   :  { %v3410_v26 = vrot.slane %v3409_v5, 2 }
 0x729   :  { %v3411_v3 = vadd.f32 %v3410_v26, %v3409_v5 }
 0x72b   :  { %v3412_v14 = vrot.slane %v3411_v3, 1 }
 0x72d   :  { %v3413_v20 = vadd.f32 %v3412_v14, %v3411_v3 }
 0x72f   :  { %v3414_v52 = vmul.f32 0.03125, %v3413_v20 }
 0x731   :  { %v3415_v57 = vsub.f32 %v3397_v59, %v3414_v52  ;;  %v3416_v43 = vsub.f32 %v3398_v7, %v3414_v52  ;;  %v3417_v46 = vsub.f32 %v3399_v19, %v3414_v52  ;;  %v3418_v25 = vsub.f32 %v3400_v50, %v3414_v52 }
 0x733   :  { %v3419_v61 = vmul.f32 %v3415_v57, %v3415_v57  ;;  %v3420_v62 = vmul.f32 %v3416_v43, %v3416_v43  ;;  %v3421_v11 = vmul.f32 %v3417_v46, %v3417_v46  ;;  %v3422_v35 = vmul.f32 %v3418_v25, %v3418_v25 }
 0x735   :  { %v3423_v37 = vsel %vm332_vm0, %v3419_v61, 0.0  ;;  %v3424_v39 = vsel %vm332_vm0, %v3420_v62, 0.0  ;;  %v3426_v29 = vsel %vm332_vm0, %v3421_v11, 0.0  ;;  %v3428_v8 = vsel %vm332_vm0, %v3422_v35, 0.0 }
 0x736   :  { %v3425_v9 = vadd.f32 %v3424_v39, %v3423_v37 }
 0x738   :  { %v3427_v34 = vadd.f32 %v3426_v29, %v3425_v9 }
 0x73a   :  { %v3429_v17 = vadd.f32 %v3428_v8, %v3427_v34 }
 0x73c   :  { %v3430_v27 = vrot.slane %v3429_v17, 4 }
 0x73e   :  { %v3431_v12 = vadd.f32 %v3430_v27, %v3429_v17 }
 0x740   :  { %v3432_v51 = vrot.slane %v3431_v12, 2 }
 0x742   :  { %v3433_v40 = vadd.f32 %v3432_v51, %v3431_v12 }
 0x744   :  { %v3434_v24 = vrot.slane %v3433_v40, 1 }
 0x746   :  { %v3435_v15 = vadd.f32 %v3434_v24, %v3433_v40  ;;  %v5213_v40 = vld [vmem:[%s7680_s16] sm:$0xff]   ;;  %v5214_v24 = vld [vmem:[%s7680_s16 + $0x8] sm:$0xff]  }
 0x747   :  { %3862 = vmatpush1.bf16.msra.mxu1 %v5213_v40  ;;  %v5224_v40 = vld [vmem:[%s7680_s16 + $0x58] sm:$0xff]  }
 0x748   :  { %v3436_v32 = vmul.f32 0.03125, %v3435_v15  ;;  %3863 = vmatprep.subr.bf16.mxu1 %v5287_v30  ;;  %v5215_v15 = vld [vmem:[%s7680_s16 + $0x10] sm:$0xff]  }
 0x74a   :  { %v3437_v48 = vadd.f32 1e-05, %v3436_v32  ;;  %v5216_v32 = vld [vmem:[%s7680_s16 + $0x18] sm:$0xff]  }
 0x74b   :  { %3864 = vmatpush1.bf16.msra.mxu1 %v5214_v24 }
 0x74c   :  { %5250 = vrsqrt.f32 %v3437_v48  ;;  %3865 = vmatprep.subr.bf16.mxu1 %v5287_v30  ;;  %v5217_v48 = vld [vmem:[%s7680_s16 + $0x20] sm:$0xff]  }
 0x74f   :  { %3866 = vmatpush1.bf16.msra.mxu1 %v5215_v15 }
 0x750   :  { %3867 = vmatprep.subr.bf16.mxu1 %v5287_v30 }
 0x753   :  { %3868 = vmatpush1.bf16.msra.mxu1 %v5216_v32 }
 0x754   :  { %3869 = vmatprep.subr.bf16.mxu1 %v5287_v30 }
 0x756   :  { %v5251_v13 = vpop.eup %5250 }
 0x757   :  { %v3439_v38 = vmul.f32 %v5251_v13, %v3395_v10  ;;  %3870 = vmatpush1.bf16.msra.mxu1 %v5217_v48  ;;  %v5218_v10 = vld [vmem:[%s7680_s16 + $0x28] sm:$0xff]   ;;  %v5219_v13 = vld [vmem:[%s7680_s16 + $0x30] sm:$0xff]  }
 0x758   :  { %3871 = vmatprep.subr.bf16.mxu1 %v5287_v30 }
 0x759   :  { %v3444_v31 = vrot.slane %v3439_v38, %v5978_v22  ;;  %v5220_v38 = vld [vmem:[%s7680_s16 + $0x38] sm:$0xff]  }
 0x75b   :  { %v3448_v0 = vmul.f32 %v3444_v31, %v3417_v46  ;;  %v3449_v23 = vmul.f32 %v3444_v31, %v3418_v25  ;;  %v3446_v45 = vmul.f32 %v3444_v31, %v3415_v57  ;;  %v3447_v47 = vmul.f32 %v3444_v31, %v3416_v43  ;;  %3872 = vmatpush1.bf16.msra.mxu1 %v5218_v10  ;;  %v5221_v31 = vld [vmem:[%s7680_s16 + $0x40] sm:$0xff]  }
 0x75c   :  { %v1262_v43 = vadd.s32 16, %v5969_v18  ;;  %v3460_v46 = vand.u32 15, %v5969_v18  ;;  %3873 = vmatprep.subr.bf16.mxu1 %v5287_v30 }
 0x75d   :  { %v3458_v2 = vadd.f32 %v4498_v42, %v3448_v0  ;;  %v3459_v4 = vadd.f32 %v4498_v42, %v3449_v23  ;;  %v3456_v41 = vadd.f32 %v4498_v42, %v3446_v45  ;;  %v3457_v56 = vadd.f32 %v4498_v42, %v3447_v47  ;;  %v5222_v42 = vld [vmem:[%s7680_s16 + $0x48] sm:$0xff]  }
 0x75e   :  { %v3462_v25 = vand.u32 15, %v1262_v43  ;;  %vm3464_vm8 = vcmp.ge.s32.totalorder %v3460_v46, 1 }
 0x75f   :  { %v3471_v59 = vrot.slane %v3459_v4, 7  ;;  %v5134_v19 = vpack.i.bf16 %v3459_v4, %v3458_v2  ;;  %v3486_v53 = vrot.slane %v3458_v2, 1  ;;  %v5129_v1 = vpack.i.bf16 %v3457_v56, %v3456_v41  ;;  %3874 = vmatpush1.bf16.msra.mxu1 %v5219_v13 }
 0x760   :  { %v3484_v58 = vrot.slane %v3456_v41, 1  ;;  %v3485_v6 = vrot.slane %v3457_v56, 1  ;;  %v3469_v49 = vrot.slane %v3457_v56, 7  ;;  %v3468_v21 = vrot.slane %v3456_v41, 7  ;;  %3875 = vmatprep.subr.bf16.mxu1 %v5287_v30 }
 0x761   :  { %5135 = vrot.lane.b32.xlu1 %v5134_v19, %s5286_s2  ;;  %5130 = vrot.lane.b32.xlu0 %v5129_v1, %s5286_s2  ;;  %v3487_v54 = vrot.slane %v3459_v4, 1  ;;  %v3470_v60 = vrot.slane %v3458_v2, 7  ;;  %vm3466_vm9 = vcmp.ge.s32.totalorder %v3462_v25, 1 }
 0x762   :  { %v3489_v50 = vsel %vm1517_vm2, %v3485_v6, %v3486_v53  ;;  %v3490_v36 = vsel %vm1517_vm2, %v3484_v58, %v3485_v6  ;;  %v3474_v63 = vsel %vm1388_vm3, %v3468_v21, %v3469_v49  ;;  %v3475_v44 = vsel %vm1388_vm3, %v3471_v59, %v3468_v21 }
 0x763   :  { %v3493_v16 = vsel %vm7419_vm6, %v3489_v50, 0.0  ;;  %v3488_v5 = vsel %vm1517_vm2, %v3486_v53, %v3487_v54  ;;  %v3491_v26 = vsel %vm1517_vm2, %v3487_v54, %v3484_v58  ;;  %v3472_v20 = vsel %vm1388_vm3, %v3470_v60, %v3471_v59  ;;  %3876 = vmatpush1.bf16.msra.mxu1 %v5220_v38 }
 0x764   :  { %v3517_v3 = vpack.c.bf16 %v3493_v16, %v3490_v36  ;;  %v3495_v14 = vsel %vm3483_vm7, %v3491_v26, 0.0  ;;  %v3473_v52 = vsel %vm1388_vm3, %v3469_v49, %v3470_v60  ;;  %v3476_v9 = vsel %vm3464_vm8, %v3475_v44, 0.0  ;;  %3877 = vmatprep.subr.bf16.mxu1 %v5287_v30 }
 0x765   :  { %v3519_v57 = vpack.c.bf16 %v3495_v14, %v3488_v5  ;;  %v3478_v29 = vsel %vm3466_vm9, %v3473_v52, 0.0 }
 0x766   :  { %4511 = vmatprep.mubr.msk.bf16.mxu0 %vm332_vm0, %v3517_v3 }
 0x767   :  { %3878 = vmatpush1.bf16.msra.mxu1 %v5221_v31 }
 0x768   :  { %3879 = vmatprep.subr.bf16.mxu1 %v5287_v30 }
 0x76b   :  { %3880 = vmatpush1.bf16.msra.mxu1 %v5222_v42 }
 0x76c   :  { %3881 = vmatprep.subr.bf16.mxu1 %v5287_v30 }
 0x76f   :  { %3882 = vmatpush1.bf16.msra.mxu1 %v5223_v33 }
 0x770   :  { %3883 = vmatprep.subr.bf16.mxu1 %v5287_v30 }
 0x773   :  { %3884 = vmatpush1.bf16.msra.mxu1 %v5224_v40 }
 0x7d3   :  { %v5136_v61 = vpop.permute.xlu1 %5135  ;;  %v5131_v62 = vpop.permute.xlu0 %5130 }
 0x7d4   :  { %v5138_v11 = vunpack.i.h.bf16 %v5136_v61  ;;  %v5137_v35 = vunpack.i.l.bf16 %v5136_v61  ;;  %v5133_v37 = vunpack.i.h.bf16 %v5131_v62  ;;  %v5132_v39 = vunpack.i.l.bf16 %v5131_v62 }
 0x7d6   :  { %v3512_v34 = vsel %vm332_vm0, %v3476_v9, %v5132_v39  ;;  %v3513_v8 = vsel %vm332_vm0, %v3474_v63, %v5133_v37  ;;  %v3514_v17 = vsel %vm332_vm0, %v3478_v29, %v5137_v35  ;;  %v3515_v27 = vsel %vm332_vm0, %v3472_v20, %v5138_v11  ;;  %v3684_v39 = vld [vmem:[%s7678_s14] sm:$0x1] }
 0x7d7   :  { %v3516_v12 = vpack.c.bf16 %v3513_v8, %v3512_v34  ;;  %v3518_v51 = vpack.c.bf16 %v3515_v27, %v3514_v17  ;;  %v3731_v8 = vand.u32 7, %v5969_v18  ;;  %v4513_v17 = vld [vmem:[%s7679_s15] ss:$0 sm:$0xff]  ;;  %v3732_v27 = vand.u32 7, %v7411_v28 }
 0x7d9   :  { %3655 = vmatmul.mubr.bf16.vlgmr.msra.gmra.mrb[64].mxu0 %v3516_v12  ;;  %vm7515_vm3 = vcmp.le.s32.totalorder %v3731_v8, 5  ;;  %vm7519_vm10 = vcmp.le.s32.totalorder %v3732_v27, 5  ;;  %vm3733_vm12 = vcmp.le.s32.totalorder %v3731_v8, 6  ;;  %vm3734_vm13 = vcmp.le.s32.totalorder %v3732_v27, 6 }
 0x7da   :  { %4512 = vmatprep.mubr.msk.bf16.mxu0 %vm332_vm0, %v3519_v57 }
 0x7e1   :  { %3663 = vmatmul.mubr.bf16.gmra.mrb[68].mxu0 %v3518_v51 }
 0x8ac   :  { %v3656_v0 = vpop.f32.mrb[64].mxu0 }
 0x8ad   :  { %3671 = vst.msk [vmem:[#allocation6] sm:$0xff] %vm332_vm0, %v3656_v0  ;;  %v3658_v23 = vpop.f32.mrb[65].mxu0 }
 0x8ae   :  { %v3659_v45 = vpop.f32.mrb[66].mxu0 }
 0x8af   :  { %3672 = vst.msk [vmem:[#allocation6 + $0x8] sm:$0xff] %vm332_vm0, %v3659_v45  ;;  %v3661_v47 = vpop.f32.mrb[67].mxu0 }
 0x8b4   :  { %v3664_v55 = vpop.f32.mrb[68].mxu0 }
 0x8b5   :  { %3673 = vst.msk [vmem:[#allocation6 + $0x10] sm:$0xff] %vm332_vm0, %v3664_v55  ;;  %v3666_v2 = vpop.f32.mrb[69].mxu0 }
 0x8b6   :  { %v3667_v4 = vpop.f32.mrb[70].mxu0  ;;  %v3675_v56 = vld [vmem:[#allocation6] ss:$2 sm:$0xff]  ;;  %v3679_v7 = vld [vmem:[#allocation6 + $0x1] ss:$2 sm:$0xff] }
 0x8b7   :  { %3674 = vst.msk [vmem:[#allocation6 + $0x18] sm:$0xff] %vm332_vm0, %v3667_v4  ;;  %v3669_v41 = vpop.f32.mrb[71].mxu0  ;;  %v3682_v59 = vmax.f32 %v3675_v56, %v3679_v7 }
 0x8b9   :  { %v3686_v58 = vmax.f32 %v3682_v59, 0.0 }
 0x8bb   :  { %v3688_v49 = vsel %vm332_vm0, %v3686_v58, 0.0 }
 0x8be   :  { %v3677_v19 = vld [vmem:[#allocation6 + $0x10] ss:$2 sm:$0xff]  ;;  %v3681_v53 = vld [vmem:[#allocation6 + $0x11] ss:$2 sm:$0xff] }
 0x8bf   :  { %v3683_v1 = vmax.f32 %v3677_v19, %v3681_v53  ;;  %v5225_v53 = vld [vmem:[%s7683_s19] sm:$0xff]  }
 0x8c1   :  { %v3687_v6 = vmax.f32 %v3683_v1, 0.0  ;;  %v5288_v1 = vmov 0.0  }
 0x8c2   :  { %4799 = vmatprep.subr.bf16.mxu0 %v5288_v1  ;;  %4835 = vmatprep.subr.bf16.mxu1 %v5288_v1 }
 0x8c3   :  { %v3689_v30 = vsel %vm332_vm0, %v3687_v6, 0.0  ;;  %4800 = vmatpush3.bf16.msra.mxu0 %v5225_v53 }
 0x8c4   :  { %v3690_v21 = vadd.f32 %v3689_v30, %v3688_v49  ;;  %4801 = vmatprep.subr.bf16.mxu0 %v5288_v1  ;;  %v5228_v49 = vld [vmem:[%s7683_s19 + $0x18] sm:$0xff]   ;;  %v5237_v30 = vld [vmem:[%s7685_s21] sm:$0xff]  }
 0x8c6   :  { %v3691_v54 = vrot.slane %v3690_v21, 4 }
 0x8c8   :  { %v3692_v60 = vadd.f32 %v3691_v54, %v3690_v21  ;;  %v5238_v21 = vld [vmem:[%s7685_s21 + $0x8] sm:$0xff]   ;;  %v5239_v54 = vld [vmem:[%s7685_s21 + $0x10] sm:$0xff]  }
 0x8ca   :  { %v3693_v50 = vrot.slane %v3692_v60, 2 }
 0x8cc   :  { %v3694_v36 = vadd.f32 %v3693_v50, %v3692_v60  ;;  %v5240_v60 = vld [vmem:[%s7685_s21 + $0x18] sm:$0xff]  }
 0x8ce   :  { %v3695_v63 = vrot.slane %v3694_v36, 1 }
 0x8d0   :  { %v3696_v44 = vadd.f32 %v3695_v63, %v3694_v36  ;;  %v5241_v36 = vld [vmem:[%s7685_s21 + $0x20] sm:$0xff]  }
 0x8d2   :  { %v3697_v16 = vmul.f32 0.0625, %v3696_v44 }
 0x8d4   :  { %v3698_v5 = vsub.f32 %v3686_v58, %v3697_v16  ;;  %v3699_v26 = vsub.f32 %v3687_v6, %v3697_v16  ;;  %v5226_v58 = vld [vmem:[%s7683_s19 + $0x8] sm:$0xff]   ;;  %v5227_v6 = vld [vmem:[%s7683_s19 + $0x10] sm:$0xff]  }
 0x8d5   :  { %4802 = vmatpush3.bf16.msra.mxu0 %v5226_v58 }
 0x8d6   :  { %v3700_v3 = vmul.f32 %v3698_v5, %v3698_v5  ;;  %v3701_v14 = vmul.f32 %v3699_v26, %v3699_v26  ;;  %4803 = vmatprep.subr.bf16.mxu0 %v5288_v1 }
 0x8d8   :  { %v3702_v20 = vsel %vm332_vm0, %v3700_v3, 0.0  ;;  %v3703_v52 = vsel %vm332_vm0, %v3701_v14, 0.0 }
 0x8d9   :  { %v3704_v57 = vadd.f32 %v3703_v52, %v3702_v20  ;;  %4804 = vmatpush3.bf16.msra.mxu0 %v5227_v6 }
 0x8da   :  { %4805 = vmatprep.subr.bf16.mxu0 %v5288_v1 }
 0x8db   :  { %v3705_v43 = vrot.slane %v3704_v57, 4 }
 0x8dd   :  { %v3706_v46 = vadd.f32 %v3705_v43, %v3704_v57  ;;  %4806 = vmatpush3.bf16.msra.mxu0 %v5228_v49 }
 0x8de   :  { %4811 = vmatprep.subr.bf16.mxu0 %v5288_v1 }
 0x8df   :  { %v3707_v25 = vrot.slane %v3706_v46, 2 }
 0x8e1   :  { %v3708_v61 = vadd.f32 %v3707_v25, %v3706_v46 }
 0x8e3   :  { %v3709_v62 = vrot.slane %v3708_v61, 1 }
 0x8e5   :  { %v3710_v11 = vadd.f32 %v3709_v62, %v3708_v61 }
 0x8e7   :  { %v3711_v35 = vmul.f32 0.0625, %v3710_v11 }
 0x8e9   :  { %v3712_v37 = vadd.f32 1e-05, %v3711_v35 }
 0x8eb   :  { %5252 = vrsqrt.f32 %v3712_v37 }
 0x8f5   :  { %v5253_v9 = vpop.eup %5252 }
 0x8f6   :  { %v3714_v29 = vmul.f32 %v5253_v9, %v3684_v39 }
 0x8f8   :  { %v3719_v34 = vrot.slane %v3714_v29, %v5978_v22 }
 0x8fa   :  { %v3721_v12 = vmul.f32 %v3719_v34, %v3698_v5  ;;  %v3722_v51 = vmul.f32 %v3719_v34, %v3699_v26 }
 0x8fc   :  { %v3729_v24 = vadd.f32 %v4513_v17, %v3721_v12  ;;  %v3730_v15 = vadd.f32 %v4513_v17, %v3722_v51 }
 0x8fe   :  { %v3743_v28 = vrot.slane %v3729_v24, 2  ;;  %v3744_v10 = vrot.slane %v3730_v15, 2  ;;  %v3735_v13 = vrot.slane %v3729_v24, 1  ;;  %v3736_v38 = vrot.slane %v3730_v15, 1 }
 0x900   :  { %v3746_v31 = vsel %vm3745_vm11, %v3743_v28, %v3744_v10  ;;  %v3747_v42 = vsel %vm3745_vm11, %v3744_v10, %v3743_v28  ;;  %v3737_v33 = vsel %vm1517_vm2, %v3735_v13, %v3736_v38  ;;  %v3738_v0 = vsel %vm1517_vm2, %v3736_v38, %v3735_v13 }
 0x901   :  { %v3748_v23 = vsel %vm7515_vm3, %v3746_v31, 0.0  ;;  %v3749_v45 = vsel %vm7519_vm10, %v3747_v42, 0.0  ;;  %v3739_v47 = vsel %vm3733_vm12, %v3737_v33, 0.0  ;;  %v3740_v55 = vsel %vm3734_vm13, %v3738_v0, 0.0 }
 0x902   :  { %v3761_v2 = vpack.c.bf16 %v3749_v45, %v3748_v23  ;;  %v5139_v4 = vpack.i.bf16 %v3740_v55, %v3739_v47  ;;  %vm5289_vm2 = vmmov 0  }
 0x903   :  { %4807 = vmatprep.mubr.msk.bf16.mxu0 %vm5289_vm2, %v5288_v1 }
 0x904   :  { %4526 = vmatprep.mubr.msk.bf16.mxu1 %vm332_vm0, %v3761_v2  ;;  %5140 = vrot.lane.b32.xlu0 %v5139_v4, %s5286_s2 }
 0x976   :  { %v5141_v41 = vpop.permute.xlu0 %5140 }
 0x977   :  { %v5143_v56 = vunpack.i.h.bf16 %v5141_v41  ;;  %v5142_v7 = vunpack.i.l.bf16 %v5141_v41 }
 0x979   :  { %v3759_v18 = vsel %vm332_vm0, %v3730_v15, %v5143_v56  ;;  %v3758_v59 = vsel %vm332_vm0, %v3729_v24, %v5142_v7 }
 0x97a   :  { %v3760_v19 = vpack.c.bf16 %v3759_v18, %v3758_v59 }
 0x97c   :  { %3894 = vmatmul.mubr.bf16.vlgmr.msra.gmra.mrb[64].mxu1 %v3760_v19 }
 0x97d   :  { %4849 = vmatprep.mubr.msk.bf16.mxu1 %vm5289_vm2, %v5288_v1  ;;  %4836 = vmatpush3.bf16.msra.mxu1 %v5237_v30 }
 0x97e   :  { %4837 = vmatprep.subr.bf16.mxu1 %v5288_v1 }
 0x981   :  { %4838 = vmatpush3.bf16.msra.mxu1 %v5238_v21 }
 0x982   :  { %4839 = vmatprep.subr.bf16.mxu1 %v5288_v1 }
 0x985   :  { %4840 = vmatpush3.bf16.msra.mxu1 %v5239_v54 }
 0x986   :  { %4841 = vmatprep.subr.bf16.mxu1 %v5288_v1 }
 0x989   :  { %4842 = vmatpush3.bf16.msra.mxu1 %v5240_v60 }
 0x98a   :  { %4843 = vmatprep.subr.bf16.mxu1 %v5288_v1 }
 0x98d   :  { %4844 = vmatpush3.bf16.msra.mxu1 %v5241_v36 }
 0x98e   :  { %4845 = vmatprep.subr.bf16.mxu1 %v5288_v1 }
 0xa4f   :  { %v3895_v50 = vpop.f32.mrb[64].mxu1 }
 0xa50   :  { %3902 = vst.msk [vmem:[#allocation7] sm:$0xff] %vm332_vm0, %v3895_v50  ;;  %v3897_v63 = vpop.f32.mrb[65].mxu1 }
 0xa51   :  { %v3898_v44 = vpop.f32.mrb[66].mxu1 }
 0xa52   :  { %3903 = vst.msk [vmem:[#allocation7 + $0x8] sm:$0xff] %vm332_vm0, %v3898_v44  ;;  %v3900_v16 = vpop.f32.mrb[67].mxu1 }
 0xa59   :  { %v3910_v5 = vld [vmem:[#allocation7 + $0x2] ss:$8 sm:$0x3]  ;;  %v3912_v26 = vld [vmem:[#allocation7 + $0x3] ss:$8 sm:$0x3] }
 0xa5a   :  { %v3916_v3 = vld [vmem:[#allocation7 + $0x4] ss:$8 sm:$0x3]  ;;  %v3918_v14 = vld [vmem:[#allocation7 + $0x5] ss:$8 sm:$0x3]  ;;  %v3913_v20 = vmax.f32 %v3910_v5, %v3912_v26 }
 0xa5b   :  { %v3904_v52 = vld [vmem:[#allocation7] ss:$8 sm:$0x3]  ;;  %v3906_v57 = vld [vmem:[#allocation7 + $0x1] ss:$8 sm:$0x3]  ;;  %v3919_v43 = vmax.f32 %v3916_v3, %v3918_v14 }
 0xa5c   :  { %v3907_v46 = vmax.f32 %v3904_v52, %v3906_v57  ;;  %v3914_v25 = vmax.f32 %v3913_v20, 0.0  ;;  %v3978_v52 = vld [vmem:[%s7681_s17] sm:$0x1] }
 0xa5d   :  { %v3920_v61 = vmax.f32 %v3919_v43, 0.0 }
 0xa5e   :  { %v3908_v62 = vmax.f32 %v3907_v46, 0.0  ;;  %v3930_v11 = vsel %vm3921_vm14, %v3914_v25, 0.0 }
 0xa5f   :  { %v3931_v35 = vrot.slane %v3930_v11, 4  ;;  %v3938_v37 = vsel %vm3921_vm14, %v3920_v61, 0.0 }
 0xa60   :  { %v3922_v39 = vsel %vm3921_vm14, %v3908_v62, 0.0  ;;  %v3939_v9 = vrot.slane %v3938_v37, 4 }
 0xa61   :  { %v3923_v29 = vrot.slane %v3922_v39, 4  ;;  %v3932_v34 = vadd.f32 %v3931_v35, %v3930_v11  ;;  %v5229_v11 = vld [vmem:[%s7683_s19 + $0x20] sm:$0xff]  }
 0xa62   :  { %v3940_v8 = vadd.f32 %v3939_v9, %v3938_v37  ;;  %v5230_v37 = vld [vmem:[%s7683_s19 + $0x28] sm:$0xff]   ;;  %v5232_v9 = vld [vmem:[%s7683_s19 + $0x38] sm:$0xff]  }
 0xa63   :  { %v3924_v17 = vadd.f32 %v3923_v29, %v3922_v39  ;;  %v3933_v27 = vrot.slane %v3932_v34, 2 }
 0xa64   :  { %v3941_v12 = vrot.slane %v3940_v8, 2 }
 0xa65   :  { %v3925_v51 = vrot.slane %v3924_v17, 2  ;;  %v3934_v40 = vadd.f32 %v3933_v27, %v3932_v34  ;;  %v5233_v34 = vld [vmem:[%s7683_s19 + $0x40] sm:$0xff]   ;;  %v5235_v27 = vld [vmem:[%s7683_s19 + $0x50] sm:$0xff]  }
 0xa66   :  { %v3942_v24 = vadd.f32 %v3941_v12, %v3940_v8 }
 0xa67   :  { %v3926_v15 = vadd.f32 %v3925_v51, %v3924_v17  ;;  %v3935_v32 = vrot.slane %v3934_v40, 1  ;;  %v5234_v17 = vld [vmem:[%s7683_s19 + $0x48] sm:$0xff]   ;;  %v5236_v51 = vld [vmem:[%s7683_s19 + $0x58] sm:$0xff]  }
 0xa68   :  { %v3943_v10 = vrot.slane %v3942_v24, 1 }
 0xa69   :  { %v3927_v48 = vrot.slane %v3926_v15, 1  ;;  %v3936_v28 = vadd.f32 %v3935_v32, %v3934_v40  ;;  %v5243_v32 = vld [vmem:[%s7685_s21 + $0x30] ss:$0 sps:$4 sm:$0x33]  }
 0xa6a   :  { %v3944_v31 = vadd.f32 %v3943_v10, %v3942_v24 }
 0xa6b   :  { %v3928_v13 = vadd.f32 %v3927_v48, %v3926_v15  ;;  %v5242_v15 = vld [vmem:[%s7685_s21 + $0x28] sm:$0xff]   ;;  %v4308_v48 = vsel %vm4306_vm15, %v5243_v32, 0 }
 0xa6c   :  { %4846 = vmatpush3.bf16.msra.mxu1 %v5242_v15 }
 0xa6d   :  { %v3937_v38 = vadd.f32 %v3936_v28, %v3928_v13  ;;  %4847 = vmatprep.subr.bf16.mxu1 %v5288_v1  ;;  %v4533_v28 = vld [vmem:[%s7684_s20] ss:$0 sm:$0xff]  ;;  %s5290_s20 = smov [#allocation8]  }
 0xa6f   :  { %v3945_v42 = vadd.f32 %v3944_v31, %v3937_v38 }
 0xa70   :  { %4848 = vmatpush3.bf16.msra.mxu1 %v4308_v48 }
 0xa71   :  { %v3946_v33 = vmul.f32 0.16666667, %v3945_v42 }
 0xa73   :  { %v3947_v0 = vsub.f32 %v3908_v62, %v3946_v33  ;;  %v3957_v23 = vsub.f32 %v3914_v25, %v3946_v33  ;;  %v7583_v45 = vsub.f32 %v3920_v61, %v3946_v33  ;;  %v4527_v25 = vld [vmem:[%s7682_s18] ss:$0 sm:$0xff] }
 0xa75   :  { %v3948_v47 = vmul.f32 %v3947_v0, %v3947_v0  ;;  %v3958_v55 = vmul.f32 %v3957_v23, %v3957_v23  ;;  %v3968_v2 = vmul.f32 %v7583_v45, %v7583_v45 }
 0xa77   :  { %v3949_v4 = vsel %vm3921_vm14, %v3948_v47, 0.0  ;;  %v3959_v41 = vsel %vm3921_vm14, %v3958_v55, 0.0  ;;  %v3969_v56 = vsel %vm3921_vm14, %v3968_v2, 0.0 }
 0xa78   :  { %v3950_v7 = vrot.slane %v3949_v4, 4  ;;  %v3960_v18 = vrot.slane %v3959_v41, 4  ;;  %v3970_v59 = vrot.slane %v3969_v56, 4 }
 0xa7a   :  { %v3951_v19 = vadd.f32 %v3950_v7, %v3949_v4  ;;  %v3961_v53 = vadd.f32 %v3960_v18, %v3959_v41  ;;  %v3971_v58 = vadd.f32 %v3970_v59, %v3969_v56 }
 0xa7c   :  { %v3952_v6 = vrot.slane %v3951_v19, 2  ;;  %v3962_v49 = vrot.slane %v3961_v53, 2  ;;  %v3972_v30 = vrot.slane %v3971_v58, 2 }
 0xa7e   :  { %v3953_v21 = vadd.f32 %v3952_v6, %v3951_v19  ;;  %v3963_v54 = vadd.f32 %v3962_v49, %v3961_v53  ;;  %v3973_v60 = vadd.f32 %v3972_v30, %v3971_v58 }
 0xa80   :  { %v3954_v50 = vrot.slane %v3953_v21, 1  ;;  %v3964_v36 = vrot.slane %v3963_v54, 1  ;;  %v3974_v63 = vrot.slane %v3973_v60, 1 }
 0xa82   :  { %v3955_v44 = vadd.f32 %v3954_v50, %v3953_v21  ;;  %v3965_v16 = vadd.f32 %v3964_v36, %v3963_v54  ;;  %v3975_v26 = vadd.f32 %v3974_v63, %v3973_v60 }
 0xa84   :  { %v3966_v5 = vadd.f32 %v3965_v16, %v3955_v44 }
 0xa86   :  { %v3976_v3 = vadd.f32 %v3975_v26, %v3966_v5 }
 0xa88   :  { %v3977_v14 = vmul.f32 0.16666667, %v3976_v3 }
 0xa8a   :  { %v3979_v20 = vadd.f32 1e-05, %v3977_v14 }
 0xa8c   :  { %5254 = vrsqrt.f32 %v3979_v20 }
 0xa96   :  { %v5255_v57 = vpop.eup %5254 }
 0xa97   :  { %v3981_v43 = vmul.f32 %v5255_v57, %v3978_v52 }
 0xa99   :  { %v3987_v46 = vrot.slane %v3981_v43, %v5978_v22  ;;  %v5231_v22 = vld [vmem:[%s7683_s19 + $0x30] sm:$0xff]  }
 0xa9b   :  { %v3989_v61 = vmul.f32 %v3987_v46, %v3947_v0  ;;  %v4081_v39 = vmul.f32 %v3987_v46, %v3957_v23  ;;  %v4161_v12 = vmul.f32 %v3987_v46, %v7583_v45  ;;  %v4560_v23 = vld [vmem:[%s7686_s22] ss:$0 sm:$0xff]  ;;  %s4370_s22 = sshll.u32 %s5290_s20, 4  ;;  %s4371_s22 = int_to_ptr.vmem [resolvable:$true] %s4370_s22 }
 0xa9c   :  { %s5260_s4 = scalar_lea.vmem %s4371_s22, 32  ;;  %p5265_p1 = scmp.lt.s32.totalorder %s4371_s22, %s4371_s22 }
 0xa9d   :  { %v3997_v62 = vadd.f32 %v4527_v25, %v3989_v61  ;;  %v4082_v29 = vadd.f32 %v4527_v25, %v4081_v39  ;;  %v4162_v40 = vadd.f32 %v4527_v25, %v4161_v12  ;;  %p5261_p0 = scmp.ne.s32.totalorder %s4371_s22, %s5260_s4  ;;  %p5266_p2 = scmp.lt.s32.totalorder %s5260_s4, %s5260_s4 }
 0xa9f   :  { %v3998_v35 = vpack.c.bf16 %v3997_v62, %v3997_v62  ;;  %v4083_v8 = vpack.c.bf16 %v4082_v29, %v4082_v29  ;;  %v4163_v24 = vpack.c.bf16 %v4162_v40, %v4162_v40  ;;  %p5267_p3 = por %p5266_p2, %p5265_p1 }
 0xaa1   :  { %4808 = vmatmul.mubr.msk.bf16.vlgmr.msra.gmra.mrb[72].mxu0 %vm332_vm0, %v3998_v35  ;;  %p5268_p4 = pnand %p5267_p3, %p5261_p0 }
 0xaa2   :  { %4812 = vmatpush3.bf16.msra.mxu0 %v5229_v11  ;;  %4819 = vmatprep.mubr.msk.bf16.mxu0 %vm5289_vm2, %v5288_v1 }
 0xaa3   :  { %4813 = vmatprep.subr.bf16.mxu0 %v5288_v1 }
 0xaa6   :  { %4814 = vmatpush3.bf16.msra.mxu0 %v5230_v37 }
 0xaa7   :  { %4815 = vmatprep.subr.bf16.mxu0 %v5288_v1 }
 0xaaa   :  { %4816 = vmatpush3.bf16.msra.mxu0 %v5231_v22 }
 0xaab   :  { %4817 = vmatprep.subr.bf16.mxu0 %v5288_v1 }
 0xaae   :  { %4818 = vmatpush3.bf16.msra.mxu0 %v5232_v9 }
 0xaaf   :  { %4823 = vmatprep.subr.bf16.mxu0 %v5288_v1 }
 0xab1   :  { %4820 = vmatmul.mubr.msk.bf16.vlgmr.msra.gmra.mrb[72].mxu0 %vm332_vm0, %v4083_v8 }
 0xab2   :  { %4824 = vmatpush3.bf16.msra.mxu0 %v5233_v34  ;;  %4831 = vmatprep.mubr.msk.bf16.mxu0 %vm5289_vm2, %v5288_v1 }
 0xab3   :  { %4825 = vmatprep.subr.bf16.mxu0 %v5288_v1 }
 0xab6   :  { %4826 = vmatpush3.bf16.msra.mxu0 %v5234_v17 }
 0xab7   :  { %4827 = vmatprep.subr.bf16.mxu0 %v5288_v1 }
 0xaba   :  { %4828 = vmatpush3.bf16.msra.mxu0 %v5235_v27 }
 0xabb   :  { %4829 = vmatprep.subr.bf16.mxu0 %v5288_v1 }
 0xabe   :  { %4830 = vmatpush3.bf16.msra.mxu0 %v5236_v51 }
 0xac1   :  { %4832 = vmatmul.mubr.msk.bf16.vlgmr.msra.gmra.mrb[72].mxu0 %vm332_vm0, %v4163_v24  ;;  %vm4302_vm0 = vcmask 818176  }
 0xb94   :  { %v4234_v10 = vpop.f32.mrb[72].mxu0 }
 0xb95   :  { %v4853_v13 = vadd.f32 %v4533_v28, %v4234_v10  ;;  %v4833_v38 = vpop.f32.mrb[73].mxu0 }
 0xb96   :  { %v4237_v31 = vpop.f32.mrb[74].mxu0 }
 0xb97   :  { %v4241_v42 = vmax.f32 %v4853_v13, 0.0  ;;  %v4834_v33 = vpop.f32.mrb[75].mxu0 }
 0xb99   :  { %v4242_v0 = vpack.c.bf16 %v4241_v42, %v4241_v42 }
 0xb9b   :  { %4850 = vmatmul.mubr.msk.bf16.vlgmr.msra.gmra.mrb[68].mxu1 %vm4302_vm0, %v4242_v0 }
 0xc6e   :  { %v4344_v1 = vpop.f32.mrb[68].mxu1 }
 0xc6f   :  { %v4345_v45 = vadd.f32 %v4560_v23, %v4344_v1  ;;  %v4851_v47 = vpop.f32.mrb[69].mxu1 }
 0xc70   :  { %v4347_v55 = vpop.f32.mrb[70].mxu1 }
 0xc71   :  { %v4852_v2 = vpop.f32.mrb[71].mxu1  ;;  %v4351_v4 = vsel %vm4350_vm1, %v4345_v45, -inf }
 0xc72   :  { %4352 = vmax.xlane.f32.xlu1 %v4351_v4 }
 0xcff   :  { %v4353_v41 = vpop.xlane.xlu1 %4352 }
 0xd00   :  { %v4354_v56 = vsub.f32 %v4345_v45, %v4353_v41 }
 0xd02   :  { %v4355_v7 = vmul.f32 1.442695, %v4354_v56 }
 0xd04   :  { %5256 = vpow2.f32 %v4355_v7 }
 0xd0e   :  { %v5257_v18 = vpop.eup %5256 }
 0xd0f   :  { %v4357_v59 = vsel %vm4350_vm1, %v5257_v18, 0.0 }
 0xd10   :  { %4358 = vadd.xlane.f32.xlu0 %v4357_v59 }
 0xd9d   :  { %v4359_v19 = vpop.xlane.xlu0 %4358 }
 0xd9e   :  { %5258 = vlog2.f32 %v4359_v19 }
 0xda8   :  { %v5259_v53 = vpop.eup %5258 }
 0xda9   :  { %v4361_v58 = vmul.f32 0.6931472, %v5259_v53 }
 0xdab   :  { %v4362_v6 = vsub.f32 %v4354_v56, %v4361_v58 }
 0xdad   :  { %4363 = vst.msk [vmem:[#allocation8] sm:$0x3] %vm4350_vm1, %v4362_v6 }
 0xdae   :  { %5271 = shalt.err (!%p5268_p4)
}
 0xdaf   :  { %s5272_s24 = scalar_lea.hbm %s7687_s23, 32 }
 0xdb0   :  { %p5273_p5 = scmp.ne.s32.totalorder %s7687_s23, %s5272_s24  ;;  %p5276_p6 = scmp.lt.u32.totalorder %s5272_s24, %s7687_s23 }
 0xdb2   :  { %p5278_p7 = pnand %p5276_p6, %p5273_p5 }
 0xdb4   :  { %5281 = shalt.err (!%p5278_p7)
}
 0xdb5   :  { %4373 = dma.vmem_to_hbm [thread:$0]  %s4371_s22, 32, %s7687_s23, [#allocation9]  }
 0xdb6   :  { %5282 = dma.done.wait [#allocation9], 32  }
 0xdb7   :  { %5283 = vsyncadd [#allocation9], 4294967264 }
 0xdb8   :  { %4377 = vsyncpa [#allocation9], 1 }

</bundles_post_ra>
